<compile_context>
chip_gen: v5e
topology: v5e:2x2
jax: 0.10.0
libtpu: 0.0.40
codegen_flags: <defaults>
</compile_context>

<pallas_src>
import jax
import jax.numpy as jnp
from jax import lax
from jax.experimental import pallas as pl
from jax.experimental.pallas import tpu as pltpu

LANE = 128            # lanes per sublane-row
SUB = 32              # rows per inner sub-tile (live set ~44 vregs < 64)
MAX_BLOCK_ROWS = 1024 # rows per pipelined DMA block (512 KiB per block)
MIN_SPLIT_ROWS = 128  # only split the grid 2-way if each half has >= this
H = 5                 # hidden width of the MLP
NPARAMS = (1 * H + H) + 4 * (H * H + H) + (H * 1 + 1)   # = 136


def _round_up(x, m):
    return ((x + m - 1) // m) * m


def _choose_tiling(n):
    """Pick (total rows S, rows-per-block TS) for an N-element batch laid out
    as (S, 128) f32.  S is a multiple of TS and TS is a multiple of SUB."""
    s_needed = max(SUB, _round_up(pl.cdiv(n, LANE), SUB))
    if s_needed <= MAX_BLOCK_ROWS:
        if s_needed >= 2 * MIN_SPLIT_ROWS:
            # big enough that a 2-way split pays for itself on megacore (v7x)
            ts = _round_up(pl.cdiv(s_needed, 2), SUB)
        else:
            ts = s_needed           # single grid step: no wasted step on 1-TC chips
    else:
        ts = MAX_BLOCK_ROWS
    s = _round_up(s_needed, ts)
    return s, ts


def _sigmoid(x):
    # logistic(x) == 0.5*tanh(0.5*x) + 0.5 : 1 EUP op + 2 VALU ops,
    # avoids a full-precision divide landing on the (binding) VALU slot.
    return 0.5 * jnp.tanh(0.5 * x) + 0.5


def _mlp_kernel(p_ref, x_ref, o_ref):
    """p_ref: (136,) f32 in SMEM (flattened weights+biases, weights (in,out)).
    x_ref/o_ref: (TS, 128) f32 blocks of the batch (batch on sublanes+lanes).
    Streams the block in 32-row sub-tiles to keep the vreg live-set < 64."""
    # Hoist all scalar parameter reads out of the inner loop.
    p = [p_ref[i] for i in range(NPARAMS)]

    num_sub = x_ref.shape[0] // SUB

    def body(k, carry):
        r0 = pl.multiple_of(k * SUB, SUB)
        x = x_ref[pl.ds(r0, SUB), :]                       # (SUB, 128)

        # layer 1: Linear(1, 5) + sigmoid   (w1 at [0:5], b1 at [5:10])
        h = [_sigmoid(x * p[j] + p[H + j]) for j in range(H)]

        # layers 2..5: Linear(5, 5) + sigmoid
        off = 2 * H
        for _ in range(4):
            new_h = []
            for j in range(H):
                acc = h[0] * p[off + 0 * H + j]            # W stored (in, out)
                for i in range(1, H):
                    acc = acc + h[i] * p[off + i * H + j]
                new_h.append(_sigmoid(acc + p[off + H * H + j]))
            h = new_h
            off += H * H + H

        # output layer: Linear(5, 1), no activation
        acc = h[0] * p[off + 0]
        for i in range(1, H):
            acc = acc + h[i] * p[off + i]
        o_ref[pl.ds(r0, SUB), :] = acc + p[off + H]
        return carry

    lax.fori_loop(0, num_sub, body, 0)


def _pack_params(params):
    """Flatten [(w, b), ...] (w stored (in, out)) into one f32 vector."""
    flat = []
    for w, b in params:
        flat.append(jnp.ravel(w.astype(jnp.float32)))
        flat.append(jnp.ravel(b.astype(jnp.float32)))
    return jnp.concatenate(flat)      # (136,)


@jax.jit
def net_forward(t, params):
    """t: (N, 1) or (N,) float32.  Returns (N, 1) float32."""
    t = jnp.asarray(t, jnp.float32)
    n = t.shape[0]
    flat_p = _pack_params(params)

    s, ts = _choose_tiling(n)
    n_pad = s * LANE

    flat = t.reshape(-1)
    if n_pad != n:                      # static decision: skip pad when exact fit
        flat = jnp.pad(flat, (0, n_pad - n))
    x = flat.reshape(s, LANE)

    row_spec = pl.BlockSpec((ts, LANE), lambda i: (i, 0))

    out = pl.pallas_call(
        _mlp_kernel,
        out_shape=jax.ShapeDtypeStruct((s, LANE), jnp.float32),
        grid_spec=pltpu.PrefetchScalarGridSpec(
            num_scalar_prefetch=0,
            grid=(s // ts,),
            in_specs=[
                pl.BlockSpec(memory_space=pltpu.MemorySpace.SMEM),  # params
                row_spec,                                           # inputs
            ],
            out_specs=row_spec,
        ),
        compiler_params=pltpu.CompilerParams(
            dimension_semantics=("parallel",)),
    )(flat_p, x)

    out_flat = out.reshape(n_pad)
    if n_pad != n:
        out_flat = out_flat[:n]
    return out_flat.reshape(n, 1)


def init_params(key):
    """Deterministic init matching torch.nn.Linear default
    (U[-1/sqrt(in), 1/sqrt(in)]).  Weights stored as (in, out)."""
    dims = [(1, 5), (5, 5), (5, 5), (5, 5), (5, 5), (5, 1)]
    params = []
    for (fan_in, fan_out) in dims:
        key, kw, kb = jax.random.split(key, 3)
        bound = 1.0 / jnp.sqrt(float(fan_in))
        w = jax.random.uniform(kw, (fan_in, fan_out), jnp.float32,
                               minval=-bound, maxval=bound)
        b = jax.random.uniform(kb, (fan_out,), jnp.float32,
                               minval=-bound, maxval=bound)
        params.append((w, b))
    return params


def _reference_forward(t, params):
    h = jnp.asarray(t, jnp.float32).reshape(-1, 1)
    for (w, b) in params[:-1]:
        h = jax.nn.sigmoid(h @ w + b)
    w, b = params[-1]
    return h @ w + b


if __name__ == "__main__":
    key = jax.random.PRNGKey(0)
    params = init_params(key)

    # small analog of t = np.arange(0, 5, 0.001)[:, None]; N deliberately not
    # a multiple of 128 to exercise the padding path.
    N = 1000
    t = jnp.linspace(0.0, 5.0, N, dtype=jnp.float32).reshape(N, 1)

    out = net_forward(t, params)
    out = jax.block_until_ready(out)

    ref = _reference_forward(t, params)
    assert out.shape == (N, 1)
    assert jnp.allclose(out, ref, atol=1e-5, rtol=1e-5)

    print("KERNEL_OK")
</pallas_src>

<mosaic_0001>
module attributes {stable_mosaic.version = 11 : i64} {
  func.func @_mlp_kernel(%arg0: i32, %arg1: memref<136xf32, #tpu.memory_space<smem>>, %arg2: memref<32x128xf32, #tpu.memory_space<vmem>>, %arg3: memref<32x128xf32, #tpu.memory_space<vmem>>) attributes {dimension_semantics = [#tpu.dimension_semantics<parallel>], iteration_bounds = array<i64: 1>, scalar_prefetch = 0 : i64, scratch_operands = 0 : i64, tpu.core_type = #tpu.core_type<tc>, window_params = [{transform_indices = @transform_0, window_bounds = array<i64: 136>}, {transform_indices = @transform_1, window_bounds = array<i64: 32, 128>}, {transform_indices = @transform_2, window_bounds = array<i64: 32, 128>}]} {
    %c0 = arith.constant 0 : index
    %0 = memref.load %arg1[%c0] : memref<136xf32, #tpu.memory_space<smem>>
    %c1 = arith.constant 1 : index
    %1 = memref.load %arg1[%c1] : memref<136xf32, #tpu.memory_space<smem>>
    %c2 = arith.constant 2 : index
    %2 = memref.load %arg1[%c2] : memref<136xf32, #tpu.memory_space<smem>>
    %c3 = arith.constant 3 : index
    %3 = memref.load %arg1[%c3] : memref<136xf32, #tpu.memory_space<smem>>
    %c4 = arith.constant 4 : index
    %4 = memref.load %arg1[%c4] : memref<136xf32, #tpu.memory_space<smem>>
    %c5 = arith.constant 5 : index
    %5 = memref.load %arg1[%c5] : memref<136xf32, #tpu.memory_space<smem>>
    %c6 = arith.constant 6 : index
    %6 = memref.load %arg1[%c6] : memref<136xf32, #tpu.memory_space<smem>>
    %c7 = arith.constant 7 : index
    %7 = memref.load %arg1[%c7] : memref<136xf32, #tpu.memory_space<smem>>
    %c8 = arith.constant 8 : index
    %8 = memref.load %arg1[%c8] : memref<136xf32, #tpu.memory_space<smem>>
    %c9 = arith.constant 9 : index
    %9 = memref.load %arg1[%c9] : memref<136xf32, #tpu.memory_space<smem>>
    %c10 = arith.constant 10 : index
    %10 = memref.load %arg1[%c10] : memref<136xf32, #tpu.memory_space<smem>>
    %c11 = arith.constant 11 : index
    %11 = memref.load %arg1[%c11] : memref<136xf32, #tpu.memory_space<smem>>
    %c12 = arith.constant 12 : index
    %12 = memref.load %arg1[%c12] : memref<136xf32, #tpu.memory_space<smem>>
    %c13 = arith.constant 13 : index
    %13 = memref.load %arg1[%c13] : memref<136xf32, #tpu.memory_space<smem>>
    %c14 = arith.constant 14 : index
    %14 = memref.load %arg1[%c14] : memref<136xf32, #tpu.memory_space<smem>>
    %c15 = arith.constant 15 : index
    %15 = memref.load %arg1[%c15] : memref<136xf32, #tpu.memory_space<smem>>
    %c16 = arith.constant 16 : index
    %16 = memref.load %arg1[%c16] : memref<136xf32, #tpu.memory_space<smem>>
    %c17 = arith.constant 17 : index
    %17 = memref.load %arg1[%c17] : memref<136xf32, #tpu.memory_space<smem>>
    %c18 = arith.constant 18 : index
    %18 = memref.load %arg1[%c18] : memref<136xf32, #tpu.memory_space<smem>>
    %c19 = arith.constant 19 : index
    %19 = memref.load %arg1[%c19] : memref<136xf32, #tpu.memory_space<smem>>
    %c20 = arith.constant 20 : index
    %20 = memref.load %arg1[%c20] : memref<136xf32, #tpu.memory_space<smem>>
    %c21 = arith.constant 21 : index
    %21 = memref.load %arg1[%c21] : memref<136xf32, #tpu.memory_space<smem>>
    %c22 = arith.constant 22 : index
    %22 = memref.load %arg1[%c22] : memref<136xf32, #tpu.memory_space<smem>>
    %c23 = arith.constant 23 : index
    %23 = memref.load %arg1[%c23] : memref<136xf32, #tpu.memory_space<smem>>
    %c24 = arith.constant 24 : index
    %24 = memref.load %arg1[%c24] : memref<136xf32, #tpu.memory_space<smem>>
    %c25 = arith.constant 25 : index
    %25 = memref.load %arg1[%c25] : memref<136xf32, #tpu.memory_space<smem>>
    %c26 = arith.constant 26 : index
    %26 = memref.load %arg1[%c26] : memref<136xf32, #tpu.memory_space<smem>>
    %c27 = arith.constant 27 : index
    %27 = memref.load %arg1[%c27] : memref<136xf32, #tpu.memory_space<smem>>
    %c28 = arith.constant 28 : index
    %28 = memref.load %arg1[%c28] : memref<136xf32, #tpu.memory_space<smem>>
    %c29 = arith.constant 29 : index
    %29 = memref.load %arg1[%c29] : memref<136xf32, #tpu.memory_space<smem>>
    %c30 = arith.constant 30 : index
    %30 = memref.load %arg1[%c30] : memref<136xf32, #tpu.memory_space<smem>>
    %c31 = arith.constant 31 : index
    %31 = memref.load %arg1[%c31] : memref<136xf32, #tpu.memory_space<smem>>
    %c32 = arith.constant 32 : index
    %32 = memref.load %arg1[%c32] : memref<136xf32, #tpu.memory_space<smem>>
    %c33 = arith.constant 33 : index
    %33 = memref.load %arg1[%c33] : memref<136xf32, #tpu.memory_space<smem>>
    %c34 = arith.constant 34 : index
    %34 = memref.load %arg1[%c34] : memref<136xf32, #tpu.memory_space<smem>>
    %c35 = arith.constant 35 : index
    %35 = memref.load %arg1[%c35] : memref<136xf32, #tpu.memory_space<smem>>
    %c36 = arith.constant 36 : index
    %36 = memref.load %arg1[%c36] : memref<136xf32, #tpu.memory_space<smem>>
    %c37 = arith.constant 37 : index
    %37 = memref.load %arg1[%c37] : memref<136xf32, #tpu.memory_space<smem>>
    %c38 = arith.constant 38 : index
    %38 = memref.load %arg1[%c38] : memref<136xf32, #tpu.memory_space<smem>>
    %c39 = arith.constant 39 : index
    %39 = memref.load %arg1[%c39] : memref<136xf32, #tpu.memory_space<smem>>
    %c40 = arith.constant 40 : index
    %40 = memref.load %arg1[%c40] : memref<136xf32, #tpu.memory_space<smem>>
    %c41 = arith.constant 41 : index
    %41 = memref.load %arg1[%c41] : memref<136xf32, #tpu.memory_space<smem>>
    %c42 = arith.constant 42 : index
    %42 = memref.load %arg1[%c42] : memref<136xf32, #tpu.memory_space<smem>>
    %c43 = arith.constant 43 : index
    %43 = memref.load %arg1[%c43] : memref<136xf32, #tpu.memory_space<smem>>
    %c44 = arith.constant 44 : index
    %44 = memref.load %arg1[%c44] : memref<136xf32, #tpu.memory_space<smem>>
    %c45 = arith.constant 45 : index
    %45 = memref.load %arg1[%c45] : memref<136xf32, #tpu.memory_space<smem>>
    %c46 = arith.constant 46 : index
    %46 = memref.load %arg1[%c46] : memref<136xf32, #tpu.memory_space<smem>>
    %c47 = arith.constant 47 : index
    %47 = memref.load %arg1[%c47] : memref<136xf32, #tpu.memory_space<smem>>
    %c48 = arith.constant 48 : index
    %48 = memref.load %arg1[%c48] : memref<136xf32, #tpu.memory_space<smem>>
    %c49 = arith.constant 49 : index
    %49 = memref.load %arg1[%c49] : memref<136xf32, #tpu.memory_space<smem>>
    %c50 = arith.constant 50 : index
    %50 = memref.load %arg1[%c50] : memref<136xf32, #tpu.memory_space<smem>>
    %c51 = arith.constant 51 : index
    %51 = memref.load %arg1[%c51] : memref<136xf32, #tpu.memory_space<smem>>
    %c52 = arith.constant 52 : index
    %52 = memref.load %arg1[%c52] : memref<136xf32, #tpu.memory_space<smem>>
    %c53 = arith.constant 53 : index
    %53 = memref.load %arg1[%c53] : memref<136xf32, #tpu.memory_space<smem>>
    %c54 = arith.constant 54 : index
    %54 = memref.load %arg1[%c54] : memref<136xf32, #tpu.memory_space<smem>>
    %c55 = arith.constant 55 : index
    %55 = memref.load %arg1[%c55] : memref<136xf32, #tpu.memory_space<smem>>
    %c56 = arith.constant 56 : index
    %56 = memref.load %arg1[%c56] : memref<136xf32, #tpu.memory_space<smem>>
    %c57 = arith.constant 57 : index
    %57 = memref.load %arg1[%c57] : memref<136xf32, #tpu.memory_space<smem>>
    %c58 = arith.constant 58 : index
    %58 = memref.load %arg1[%c58] : memref<136xf32, #tpu.memory_space<smem>>
    %c59 = arith.constant 59 : index
    %59 = memref.load %arg1[%c59] : memref<136xf32, #tpu.memory_space<smem>>
    %c60 = arith.constant 60 : index
    %60 = memref.load %arg1[%c60] : memref<136xf32, #tpu.memory_space<smem>>
    %c61 = arith.constant 61 : index
    %61 = memref.load %arg1[%c61] : memref<136xf32, #tpu.memory_space<smem>>
    %c62 = arith.constant 62 : index
    %62 = memref.load %arg1[%c62] : memref<136xf32, #tpu.memory_space<smem>>
    %c63 = arith.constant 63 : index
    %63 = memref.load %arg1[%c63] : memref<136xf32, #tpu.memory_space<smem>>
    %c64 = arith.constant 64 : index
    %64 = memref.load %arg1[%c64] : memref<136xf32, #tpu.memory_space<smem>>
    %c65 = arith.constant 65 : index
    %65 = memref.load %arg1[%c65] : memref<136xf32, #tpu.memory_space<smem>>
    %c66 = arith.constant 66 : index
    %66 = memref.load %arg1[%c66] : memref<136xf32, #tpu.memory_space<smem>>
    %c67 = arith.constant 67 : index
    %67 = memref.load %arg1[%c67] : memref<136xf32, #tpu.memory_space<smem>>
    %c68 = arith.constant 68 : index
    %68 = memref.load %arg1[%c68] : memref<136xf32, #tpu.memory_space<smem>>
    %c69 = arith.constant 69 : index
    %69 = memref.load %arg1[%c69] : memref<136xf32, #tpu.memory_space<smem>>
    %c70 = arith.constant 70 : index
    %70 = memref.load %arg1[%c70] : memref<136xf32, #tpu.memory_space<smem>>
    %c71 = arith.constant 71 : index
    %71 = memref.load %arg1[%c71] : memref<136xf32, #tpu.memory_space<smem>>
    %c72 = arith.constant 72 : index
    %72 = memref.load %arg1[%c72] : memref<136xf32, #tpu.memory_space<smem>>
    %c73 = arith.constant 73 : index
    %73 = memref.load %arg1[%c73] : memref<136xf32, #tpu.memory_space<smem>>
    %c74 = arith.constant 74 : index
    %74 = memref.load %arg1[%c74] : memref<136xf32, #tpu.memory_space<smem>>
    %c75 = arith.constant 75 : index
    %75 = memref.load %arg1[%c75] : memref<136xf32, #tpu.memory_space<smem>>
    %c76 = arith.constant 76 : index
    %76 = memref.load %arg1[%c76] : memref<136xf32, #tpu.memory_space<smem>>
    %c77 = arith.constant 77 : index
    %77 = memref.load %arg1[%c77] : memref<136xf32, #tpu.memory_space<smem>>
    %c78 = arith.constant 78 : index
    %78 = memref.load %arg1[%c78] : memref<136xf32, #tpu.memory_space<smem>>
    %c79 = arith.constant 79 : index
    %79 = memref.load %arg1[%c79] : memref<136xf32, #tpu.memory_space<smem>>
    %c80 = arith.constant 80 : index
    %80 = memref.load %arg1[%c80] : memref<136xf32, #tpu.memory_space<smem>>
    %c81 = arith.constant 81 : index
    %81 = memref.load %arg1[%c81] : memref<136xf32, #tpu.memory_space<smem>>
    %c82 = arith.constant 82 : index
    %82 = memref.load %arg1[%c82] : memref<136xf32, #tpu.memory_space<smem>>
    %c83 = arith.constant 83 : index
    %83 = memref.load %arg1[%c83] : memref<136xf32, #tpu.memory_space<smem>>
    %c84 = arith.constant 84 : index
    %84 = memref.load %arg1[%c84] : memref<136xf32, #tpu.memory_space<smem>>
    %c85 = arith.constant 85 : index
    %85 = memref.load %arg1[%c85] : memref<136xf32, #tpu.memory_space<smem>>
    %c86 = arith.constant 86 : index
    %86 = memref.load %arg1[%c86] : memref<136xf32, #tpu.memory_space<smem>>
    %c87 = arith.constant 87 : index
    %87 = memref.load %arg1[%c87] : memref<136xf32, #tpu.memory_space<smem>>
    %c88 = arith.constant 88 : index
    %88 = memref.load %arg1[%c88] : memref<136xf32, #tpu.memory_space<smem>>
    %c89 = arith.constant 89 : index
    %89 = memref.load %arg1[%c89] : memref<136xf32, #tpu.memory_space<smem>>
    %c90 = arith.constant 90 : index
    %90 = memref.load %arg1[%c90] : memref<136xf32, #tpu.memory_space<smem>>
    %c91 = arith.constant 91 : index
    %91 = memref.load %arg1[%c91] : memref<136xf32, #tpu.memory_space<smem>>
    %c92 = arith.constant 92 : index
    %92 = memref.load %arg1[%c92] : memref<136xf32, #tpu.memory_space<smem>>
    %c93 = arith.constant 93 : index
    %93 = memref.load %arg1[%c93] : memref<136xf32, #tpu.memory_space<smem>>
    %c94 = arith.constant 94 : index
    %94 = memref.load %arg1[%c94] : memref<136xf32, #tpu.memory_space<smem>>
    %c95 = arith.constant 95 : index
    %95 = memref.load %arg1[%c95] : memref<136xf32, #tpu.memory_space<smem>>
    %c96 = arith.constant 96 : index
    %96 = memref.load %arg1[%c96] : memref<136xf32, #tpu.memory_space<smem>>
    %c97 = arith.constant 97 : index
    %97 = memref.load %arg1[%c97] : memref<136xf32, #tpu.memory_space<smem>>
    %c98 = arith.constant 98 : index
    %98 = memref.load %arg1[%c98] : memref<136xf32, #tpu.memory_space<smem>>
    %c99 = arith.constant 99 : index
    %99 = memref.load %arg1[%c99] : memref<136xf32, #tpu.memory_space<smem>>
    %c100 = arith.constant 100 : index
    %100 = memref.load %arg1[%c100] : memref<136xf32, #tpu.memory_space<smem>>
    %c101 = arith.constant 101 : index
    %101 = memref.load %arg1[%c101] : memref<136xf32, #tpu.memory_space<smem>>
    %c102 = arith.constant 102 : index
    %102 = memref.load %arg1[%c102] : memref<136xf32, #tpu.memory_space<smem>>
    %c103 = arith.constant 103 : index
    %103 = memref.load %arg1[%c103] : memref<136xf32, #tpu.memory_space<smem>>
    %c104 = arith.constant 104 : index
    %104 = memref.load %arg1[%c104] : memref<136xf32, #tpu.memory_space<smem>>
    %c105 = arith.constant 105 : index
    %105 = memref.load %arg1[%c105] : memref<136xf32, #tpu.memory_space<smem>>
    %c106 = arith.constant 106 : index
    %106 = memref.load %arg1[%c106] : memref<136xf32, #tpu.memory_space<smem>>
    %c107 = arith.constant 107 : index
    %107 = memref.load %arg1[%c107] : memref<136xf32, #tpu.memory_space<smem>>
    %c108 = arith.constant 108 : index
    %108 = memref.load %arg1[%c108] : memref<136xf32, #tpu.memory_space<smem>>
    %c109 = arith.constant 109 : index
    %109 = memref.load %arg1[%c109] : memref<136xf32, #tpu.memory_space<smem>>
    %c110 = arith.constant 110 : index
    %110 = memref.load %arg1[%c110] : memref<136xf32, #tpu.memory_space<smem>>
    %c111 = arith.constant 111 : index
    %111 = memref.load %arg1[%c111] : memref<136xf32, #tpu.memory_space<smem>>
    %c112 = arith.constant 112 : index
    %112 = memref.load %arg1[%c112] : memref<136xf32, #tpu.memory_space<smem>>
    %c113 = arith.constant 113 : index
    %113 = memref.load %arg1[%c113] : memref<136xf32, #tpu.memory_space<smem>>
    %c114 = arith.constant 114 : index
    %114 = memref.load %arg1[%c114] : memref<136xf32, #tpu.memory_space<smem>>
    %c115 = arith.constant 115 : index
    %115 = memref.load %arg1[%c115] : memref<136xf32, #tpu.memory_space<smem>>
    %c116 = arith.constant 116 : index
    %116 = memref.load %arg1[%c116] : memref<136xf32, #tpu.memory_space<smem>>
    %c117 = arith.constant 117 : index
    %117 = memref.load %arg1[%c117] : memref<136xf32, #tpu.memory_space<smem>>
    %c118 = arith.constant 118 : index
    %118 = memref.load %arg1[%c118] : memref<136xf32, #tpu.memory_space<smem>>
    %c119 = arith.constant 119 : index
    %119 = memref.load %arg1[%c119] : memref<136xf32, #tpu.memory_space<smem>>
    %c120 = arith.constant 120 : index
    %120 = memref.load %arg1[%c120] : memref<136xf32, #tpu.memory_space<smem>>
    %c121 = arith.constant 121 : index
    %121 = memref.load %arg1[%c121] : memref<136xf32, #tpu.memory_space<smem>>
    %c122 = arith.constant 122 : index
    %122 = memref.load %arg1[%c122] : memref<136xf32, #tpu.memory_space<smem>>
    %c123 = arith.constant 123 : index
    %123 = memref.load %arg1[%c123] : memref<136xf32, #tpu.memory_space<smem>>
    %c124 = arith.constant 124 : index
    %124 = memref.load %arg1[%c124] : memref<136xf32, #tpu.memory_space<smem>>
    %c125 = arith.constant 125 : index
    %125 = memref.load %arg1[%c125] : memref<136xf32, #tpu.memory_space<smem>>
    %c126 = arith.constant 126 : index
    %126 = memref.load %arg1[%c126] : memref<136xf32, #tpu.memory_space<smem>>
    %c127 = arith.constant 127 : index
    %127 = memref.load %arg1[%c127] : memref<136xf32, #tpu.memory_space<smem>>
    %c128 = arith.constant 128 : index
    %128 = memref.load %arg1[%c128] : memref<136xf32, #tpu.memory_space<smem>>
    %c129 = arith.constant 129 : index
    %129 = memref.load %arg1[%c129] : memref<136xf32, #tpu.memory_space<smem>>
    %c130 = arith.constant 130 : index
    %130 = memref.load %arg1[%c130] : memref<136xf32, #tpu.memory_space<smem>>
    %c131 = arith.constant 131 : index
    %131 = memref.load %arg1[%c131] : memref<136xf32, #tpu.memory_space<smem>>
    %c132 = arith.constant 132 : index
    %132 = memref.load %arg1[%c132] : memref<136xf32, #tpu.memory_space<smem>>
    %c133 = arith.constant 133 : index
    %133 = memref.load %arg1[%c133] : memref<136xf32, #tpu.memory_space<smem>>
    %c134 = arith.constant 134 : index
    %134 = memref.load %arg1[%c134] : memref<136xf32, #tpu.memory_space<smem>>
    %c135 = arith.constant 135 : index
    %135 = memref.load %arg1[%c135] : memref<136xf32, #tpu.memory_space<smem>>
    %c0_i32 = arith.constant 0 : i32
    %c32_i32 = arith.constant 32 : i32
    %136 = arith.muli %c0_i32, %c32_i32 : i32
    %137 = tpu.assume_multiple %136, 32 : i32
    %138 = arith.index_cast %137 : i32 to index
    %c0_0 = arith.constant 0 : index
    %139 = vector.load %arg2[%138, %c0_0] : memref<32x128xf32, #tpu.memory_space<vmem>>, vector<32x128xf32>
    %140 = vector.broadcast %0 : f32 to vector<32x128xf32>
    %141 = arith.mulf %139, %140 : vector<32x128xf32>
    %142 = vector.broadcast %5 : f32 to vector<32x128xf32>
    %143 = arith.addf %141, %142 : vector<32x128xf32>
    %cst = arith.constant 5.000000e-01 : f32
    %144 = vector.broadcast %cst : f32 to vector<32x128xf32>
    %145 = arith.mulf %144, %143 : vector<32x128xf32>
    %146 = math.tanh %145 : vector<32x128xf32>
    %cst_1 = arith.constant 5.000000e-01 : f32
    %147 = vector.broadcast %cst_1 : f32 to vector<32x128xf32>
    %148 = arith.mulf %147, %146 : vector<32x128xf32>
    %cst_2 = arith.constant 5.000000e-01 : f32
    %149 = vector.broadcast %cst_2 : f32 to vector<32x128xf32>
    %150 = arith.addf %148, %149 : vector<32x128xf32>
    %151 = vector.broadcast %1 : f32 to vector<32x128xf32>
    %152 = arith.mulf %139, %151 : vector<32x128xf32>
    %153 = vector.broadcast %6 : f32 to vector<32x128xf32>
    %154 = arith.addf %152, %153 : vector<32x128xf32>
    %cst_3 = arith.constant 5.000000e-01 : f32
    %155 = vector.broadcast %cst_3 : f32 to vector<32x128xf32>
    %156 = arith.mulf %155, %154 : vector<32x128xf32>
    %157 = math.tanh %156 : vector<32x128xf32>
    %cst_4 = arith.constant 5.000000e-01 : f32
    %158 = vector.broadcast %cst_4 : f32 to vector<32x128xf32>
    %159 = arith.mulf %158, %157 : vector<32x128xf32>
    %cst_5 = arith.constant 5.000000e-01 : f32
    %160 = vector.broadcast %cst_5 : f32 to vector<32x128xf32>
    %161 = arith.addf %159, %160 : vector<32x128xf32>
    %162 = vector.broadcast %2 : f32 to vector<32x128xf32>
    %163 = arith.mulf %139, %162 : vector<32x128xf32>
    %164 = vector.broadcast %7 : f32 to vector<32x128xf32>
    %165 = arith.addf %163, %164 : vector<32x128xf32>
    %cst_6 = arith.constant 5.000000e-01 : f32
    %166 = vector.broadcast %cst_6 : f32 to vector<32x128xf32>
    %167 = arith.mulf %166, %165 : vector<32x128xf32>
    %168 = math.tanh %167 : vector<32x128xf32>
    %cst_7 = arith.constant 5.000000e-01 : f32
    %169 = vector.broadcast %cst_7 : f32 to vector<32x128xf32>
    %170 = arith.mulf %169, %168 : vector<32x128xf32>
    %cst_8 = arith.constant 5.000000e-01 : f32
    %171 = vector.broadcast %cst_8 : f32 to vector<32x128xf32>
    %172 = arith.addf %170, %171 : vector<32x128xf32>
    %173 = vector.broadcast %3 : f32 to vector<32x128xf32>
    %174 = arith.mulf %139, %173 : vector<32x128xf32>
    %175 = vector.broadcast %8 : f32 to vector<32x128xf32>
    %176 = arith.addf %174, %175 : vector<32x128xf32>
    %cst_9 = arith.constant 5.000000e-01 : f32
    %177 = vector.broadcast %cst_9 : f32 to vector<32x128xf32>
    %178 = arith.mulf %177, %176 : vector<32x128xf32>
    %179 = math.tanh %178 : vector<32x128xf32>
    %cst_10 = arith.constant 5.000000e-01 : f32
    %180 = vector.broadcast %cst_10 : f32 to vector<32x128xf32>
    %181 = arith.mulf %180, %179 : vector<32x128xf32>
    %cst_11 = arith.constant 5.000000e-01 : f32
    %182 = vector.broadcast %cst_11 : f32 to vector<32x128xf32>
    %183 = arith.addf %181, %182 : vector<32x128xf32>
    %184 = vector.broadcast %4 : f32 to vector<32x128xf32>
    %185 = arith.mulf %139, %184 : vector<32x128xf32>
    %186 = vector.broadcast %9 : f32 to vector<32x128xf32>
    %187 = arith.addf %185, %186 : vector<32x128xf32>
    %cst_12 = arith.constant 5.000000e-01 : f32
    %188 = vector.broadcast %cst_12 : f32 to vector<32x128xf32>
    %189 = arith.mulf %188, %187 : vector<32x128xf32>
    %190 = math.tanh %189 : vector<32x128xf32>
    %cst_13 = arith.constant 5.000000e-01 : f32
    %191 = vector.broadcast %cst_13 : f32 to vector<32x128xf32>
    %192 = arith.mulf %191, %190 : vector<32x128xf32>
    %cst_14 = arith.constant 5.000000e-01 : f32
    %193 = vector.broadcast %cst_14 : f32 to vector<32x128xf32>
    %194 = arith.addf %192, %193 : vector<32x128xf32>
    %195 = vector.broadcast %10 : f32 to vector<32x128xf32>
    %196 = arith.mulf %150, %195 : vector<32x128xf32>
    %197 = vector.broadcast %15 : f32 to vector<32x128xf32>
    %198 = arith.mulf %161, %197 : vector<32x128xf32>
    %199 = arith.addf %196, %198 : vector<32x128xf32>
    %200 = vector.broadcast %20 : f32 to vector<32x128xf32>
    %201 = arith.mulf %172, %200 : vector<32x128xf32>
    %202 = arith.addf %199, %201 : vector<32x128xf32>
    %203 = vector.broadcast %25 : f32 to vector<32x128xf32>
    %204 = arith.mulf %183, %203 : vector<32x128xf32>
    %205 = arith.addf %202, %204 : vector<32x128xf32>
    %206 = vector.broadcast %30 : f32 to vector<32x128xf32>
    %207 = arith.mulf %194, %206 : vector<32x128xf32>
    %208 = arith.addf %205, %207 : vector<32x128xf32>
    %209 = vector.broadcast %35 : f32 to vector<32x128xf32>
    %210 = arith.addf %208, %209 : vector<32x128xf32>
    %cst_15 = arith.constant 5.000000e-01 : f32
    %211 = vector.broadcast %cst_15 : f32 to vector<32x128xf32>
    %212 = arith.mulf %211, %210 : vector<32x128xf32>
    %213 = math.tanh %212 : vector<32x128xf32>
    %cst_16 = arith.constant 5.000000e-01 : f32
    %214 = vector.broadcast %cst_16 : f32 to vector<32x128xf32>
    %215 = arith.mulf %214, %213 : vector<32x128xf32>
    %cst_17 = arith.constant 5.000000e-01 : f32
    %216 = vector.broadcast %cst_17 : f32 to vector<32x128xf32>
    %217 = arith.addf %215, %216 : vector<32x128xf32>
    %218 = vector.broadcast %11 : f32 to vector<32x128xf32>
    %219 = arith.mulf %150, %218 : vector<32x128xf32>
    %220 = vector.broadcast %16 : f32 to vector<32x128xf32>
    %221 = arith.mulf %161, %220 : vector<32x128xf32>
    %222 = arith.addf %219, %221 : vector<32x128xf32>
    %223 = vector.broadcast %21 : f32 to vector<32x128xf32>
    %224 = arith.mulf %172, %223 : vector<32x128xf32>
    %225 = arith.addf %222, %224 : vector<32x128xf32>
    %226 = vector.broadcast %26 : f32 to vector<32x128xf32>
    %227 = arith.mulf %183, %226 : vector<32x128xf32>
    %228 = arith.addf %225, %227 : vector<32x128xf32>
    %229 = vector.broadcast %31 : f32 to vector<32x128xf32>
    %230 = arith.mulf %194, %229 : vector<32x128xf32>
    %231 = arith.addf %228, %230 : vector<32x128xf32>
    %232 = vector.broadcast %36 : f32 to vector<32x128xf32>
    %233 = arith.addf %231, %232 : vector<32x128xf32>
    %cst_18 = arith.constant 5.000000e-01 : f32
    %234 = vector.broadcast %cst_18 : f32 to vector<32x128xf32>
    %235 = arith.mulf %234, %233 : vector<32x128xf32>
    %236 = math.tanh %235 : vector<32x128xf32>
    %cst_19 = arith.constant 5.000000e-01 : f32
    %237 = vector.broadcast %cst_19 : f32 to vector<32x128xf32>
    %238 = arith.mulf %237, %236 : vector<32x128xf32>
    %cst_20 = arith.constant 5.000000e-01 : f32
    %239 = vector.broadcast %cst_20 : f32 to vector<32x128xf32>
    %240 = arith.addf %238, %239 : vector<32x128xf32>
    %241 = vector.broadcast %12 : f32 to vector<32x128xf32>
    %242 = arith.mulf %150, %241 : vector<32x128xf32>
    %243 = vector.broadcast %17 : f32 to vector<32x128xf32>
    %244 = arith.mulf %161, %243 : vector<32x128xf32>
    %245 = arith.addf %242, %244 : vector<32x128xf32>
    %246 = vector.broadcast %22 : f32 to vector<32x128xf32>
    %247 = arith.mulf %172, %246 : vector<32x128xf32>
    %248 = arith.addf %245, %247 : vector<32x128xf32>
    %249 = vector.broadcast %27 : f32 to vector<32x128xf32>
    %250 = arith.mulf %183, %249 : vector<32x128xf32>
    %251 = arith.addf %248, %250 : vector<32x128xf32>
    %252 = vector.broadcast %32 : f32 to vector<32x128xf32>
    %253 = arith.mulf %194, %252 : vector<32x128xf32>
    %254 = arith.addf %251, %253 : vector<32x128xf32>
    %255 = vector.broadcast %37 : f32 to vector<32x128xf32>
    %256 = arith.addf %254, %255 : vector<32x128xf32>
    %cst_21 = arith.constant 5.000000e-01 : f32
    %257 = vector.broadcast %cst_21 : f32 to vector<32x128xf32>
    %258 = arith.mulf %257, %256 : vector<32x128xf32>
    %259 = math.tanh %258 : vector<32x128xf32>
    %cst_22 = arith.constant 5.000000e-01 : f32
    %260 = vector.broadcast %cst_22 : f32 to vector<32x128xf32>
    %261 = arith.mulf %260, %259 : vector<32x128xf32>
    %cst_23 = arith.constant 5.000000e-01 : f32
    %262 = vector.broadcast %cst_23 : f32 to vector<32x128xf32>
    %263 = arith.addf %261, %262 : vector<32x128xf32>
    %264 = vector.broadcast %13 : f32 to vector<32x128xf32>
    %265 = arith.mulf %150, %264 : vector<32x128xf32>
    %266 = vector.broadcast %18 : f32 to vector<32x128xf32>
    %267 = arith.mulf %161, %266 : vector<32x128xf32>
    %268 = arith.addf %265, %267 : vector<32x128xf32>
    %269 = vector.broadcast %23 : f32 to vector<32x128xf32>
    %270 = arith.mulf %172, %269 : vector<32x128xf32>
    %271 = arith.addf %268, %270 : vector<32x128xf32>
    %272 = vector.broadcast %28 : f32 to vector<32x128xf32>
    %273 = arith.mulf %183, %272 : vector<32x128xf32>
    %274 = arith.addf %271, %273 : vector<32x128xf32>
    %275 = vector.broadcast %33 : f32 to vector<32x128xf32>
    %276 = arith.mulf %194, %275 : vector<32x128xf32>
    %277 = arith.addf %274, %276 : vector<32x128xf32>
    %278 = vector.broadcast %38 : f32 to vector<32x128xf32>
    %279 = arith.addf %277, %278 : vector<32x128xf32>
    %cst_24 = arith.constant 5.000000e-01 : f32
    %280 = vector.broadcast %cst_24 : f32 to vector<32x128xf32>
    %281 = arith.mulf %280, %279 : vector<32x128xf32>
    %282 = math.tanh %281 : vector<32x128xf32>
    %cst_25 = arith.constant 5.000000e-01 : f32
    %283 = vector.broadcast %cst_25 : f32 to vector<32x128xf32>
    %284 = arith.mulf %283, %282 : vector<32x128xf32>
    %cst_26 = arith.constant 5.000000e-01 : f32
    %285 = vector.broadcast %cst_26 : f32 to vector<32x128xf32>
    %286 = arith.addf %284, %285 : vector<32x128xf32>
    %287 = vector.broadcast %14 : f32 to vector<32x128xf32>
    %288 = arith.mulf %150, %287 : vector<32x128xf32>
    %289 = vector.broadcast %19 : f32 to vector<32x128xf32>
    %290 = arith.mulf %161, %289 : vector<32x128xf32>
    %291 = arith.addf %288, %290 : vector<32x128xf32>
    %292 = vector.broadcast %24 : f32 to vector<32x128xf32>
    %293 = arith.mulf %172, %292 : vector<32x128xf32>
    %294 = arith.addf %291, %293 : vector<32x128xf32>
    %295 = vector.broadcast %29 : f32 to vector<32x128xf32>
    %296 = arith.mulf %183, %295 : vector<32x128xf32>
    %297 = arith.addf %294, %296 : vector<32x128xf32>
    %298 = vector.broadcast %34 : f32 to vector<32x128xf32>
    %299 = arith.mulf %194, %298 : vector<32x128xf32>
    %300 = arith.addf %297, %299 : vector<32x128xf32>
    %301 = vector.broadcast %39 : f32 to vector<32x128xf32>
    %302 = arith.addf %300, %301 : vector<32x128xf32>
    %cst_27 = arith.constant 5.000000e-01 : f32
    %303 = vector.broadcast %cst_27 : f32 to vector<32x128xf32>
    %304 = arith.mulf %303, %302 : vector<32x128xf32>
    %305 = math.tanh %304 : vector<32x128xf32>
    %cst_28 = arith.constant 5.000000e-01 : f32
    %306 = vector.broadcast %cst_28 : f32 to vector<32x128xf32>
    %307 = arith.mulf %306, %305 : vector<32x128xf32>
    %cst_29 = arith.constant 5.000000e-01 : f32
    %308 = vector.broadcast %cst_29 : f32 to vector<32x128xf32>
    %309 = arith.addf %307, %308 : vector<32x128xf32>
    %310 = vector.broadcast %40 : f32 to vector<32x128xf32>
    %311 = arith.mulf %217, %310 : vector<32x128xf32>
    %312 = vector.broadcast %45 : f32 to vector<32x128xf32>
    %313 = arith.mulf %240, %312 : vector<32x128xf32>
    %314 = arith.addf %311, %313 : vector<32x128xf32>
    %315 = vector.broadcast %50 : f32 to vector<32x128xf32>
    %316 = arith.mulf %263, %315 : vector<32x128xf32>
    %317 = arith.addf %314, %316 : vector<32x128xf32>
    %318 = vector.broadcast %55 : f32 to vector<32x128xf32>
    %319 = arith.mulf %286, %318 : vector<32x128xf32>
    %320 = arith.addf %317, %319 : vector<32x128xf32>
    %321 = vector.broadcast %60 : f32 to vector<32x128xf32>
    %322 = arith.mulf %309, %321 : vector<32x128xf32>
    %323 = arith.addf %320, %322 : vector<32x128xf32>
    %324 = vector.broadcast %65 : f32 to vector<32x128xf32>
    %325 = arith.addf %323, %324 : vector<32x128xf32>
    %cst_30 = arith.constant 5.000000e-01 : f32
    %326 = vector.broadcast %cst_30 : f32 to vector<32x128xf32>
    %327 = arith.mulf %326, %325 : vector<32x128xf32>
    %328 = math.tanh %327 : vector<32x128xf32>
    %cst_31 = arith.constant 5.000000e-01 : f32
    %329 = vector.broadcast %cst_31 : f32 to vector<32x128xf32>
    %330 = arith.mulf %329, %328 : vector<32x128xf32>
    %cst_32 = arith.constant 5.000000e-01 : f32
    %331 = vector.broadcast %cst_32 : f32 to vector<32x128xf32>
    %332 = arith.addf %330, %331 : vector<32x128xf32>
    %333 = vector.broadcast %41 : f32 to vector<32x128xf32>
    %334 = arith.mulf %217, %333 : vector<32x128xf32>
    %335 = vector.broadcast %46 : f32 to vector<32x128xf32>
    %336 = arith.mulf %240, %335 : vector<32x128xf32>
    %337 = arith.addf %334, %336 : vector<32x128xf32>
    %338 = vector.broadcast %51 : f32 to vector<32x128xf32>
    %339 = arith.mulf %263, %338 : vector<32x128xf32>
    %340 = arith.addf %337, %339 : vector<32x128xf32>
    %341 = vector.broadcast %56 : f32 to vector<32x128xf32>
    %342 = arith.mulf %286, %341 : vector<32x128xf32>
    %343 = arith.addf %340, %342 : vector<32x128xf32>
    %344 = vector.broadcast %61 : f32 to vector<32x128xf32>
    %345 = arith.mulf %309, %344 : vector<32x128xf32>
    %346 = arith.addf %343, %345 : vector<32x128xf32>
    %347 = vector.broadcast %66 : f32 to vector<32x128xf32>
    %348 = arith.addf %346, %347 : vector<32x128xf32>
    %cst_33 = arith.constant 5.000000e-01 : f32
    %349 = vector.broadcast %cst_33 : f32 to vector<32x128xf32>
    %350 = arith.mulf %349, %348 : vector<32x128xf32>
    %351 = math.tanh %350 : vector<32x128xf32>
    %cst_34 = arith.constant 5.000000e-01 : f32
    %352 = vector.broadcast %cst_34 : f32 to vector<32x128xf32>
    %353 = arith.mulf %352, %351 : vector<32x128xf32>
    %cst_35 = arith.constant 5.000000e-01 : f32
    %354 = vector.broadcast %cst_35 : f32 to vector<32x128xf32>
    %355 = arith.addf %353, %354 : vector<32x128xf32>
    %356 = vector.broadcast %42 : f32 to vector<32x128xf32>
    %357 = arith.mulf %217, %356 : vector<32x128xf32>
    %358 = vector.broadcast %47 : f32 to vector<32x128xf32>
    %359 = arith.mulf %240, %358 : vector<32x128xf32>
    %360 = arith.addf %357, %359 : vector<32x128xf32>
    %361 = vector.broadcast %52 : f32 to vector<32x128xf32>
    %362 = arith.mulf %263, %361 : vector<32x128xf32>
    %363 = arith.addf %360, %362 : vector<32x128xf32>
    %364 = vector.broadcast %57 : f32 to vector<32x128xf32>
    %365 = arith.mulf %286, %364 : vector<32x128xf32>
    %366 = arith.addf %363, %365 : vector<32x128xf32>
    %367 = vector.broadcast %62 : f32 to vector<32x128xf32>
    %368 = arith.mulf %309, %367 : vector<32x128xf32>
    %369 = arith.addf %366, %368 : vector<32x128xf32>
    %370 = vector.broadcast %67 : f32 to vector<32x128xf32>
    %371 = arith.addf %369, %370 : vector<32x128xf32>
    %cst_36 = arith.constant 5.000000e-01 : f32
    %372 = vector.broadcast %cst_36 : f32 to vector<32x128xf32>
    %373 = arith.mulf %372, %371 : vector<32x128xf32>
    %374 = math.tanh %373 : vector<32x128xf32>
    %cst_37 = arith.constant 5.000000e-01 : f32
    %375 = vector.broadcast %cst_37 : f32 to vector<32x128xf32>
    %376 = arith.mulf %375, %374 : vector<32x128xf32>
    %cst_38 = arith.constant 5.000000e-01 : f32
    %377 = vector.broadcast %cst_38 : f32 to vector<32x128xf32>
    %378 = arith.addf %376, %377 : vector<32x128xf32>
    %379 = vector.broadcast %43 : f32 to vector<32x128xf32>
    %380 = arith.mulf %217, %379 : vector<32x128xf32>
    %381 = vector.broadcast %48 : f32 to vector<32x128xf32>
    %382 = arith.mulf %240, %381 : vector<32x128xf32>
    %383 = arith.addf %380, %382 : vector<32x128xf32>
    %384 = vector.broadcast %53 : f32 to vector<32x128xf32>
    %385 = arith.mulf %263, %384 : vector<32x128xf32>
    %386 = arith.addf %383, %385 : vector<32x128xf32>
    %387 = vector.broadcast %58 : f32 to vector<32x128xf32>
    %388 = arith.mulf %286, %387 : vector<32x128xf32>
    %389 = arith.addf %386, %388 : vector<32x128xf32>
    %390 = vector.broadcast %63 : f32 to vector<32x128xf32>
    %391 = arith.mulf %309, %390 : vector<32x128xf32>
    %392 = arith.addf %389, %391 : vector<32x128xf32>
    %393 = vector.broadcast %68 : f32 to vector<32x128xf32>
    %394 = arith.addf %392, %393 : vector<32x128xf32>
    %cst_39 = arith.constant 5.000000e-01 : f32
    %395 = vector.broadcast %cst_39 : f32 to vector<32x128xf32>
    %396 = arith.mulf %395, %394 : vector<32x128xf32>
    %397 = math.tanh %396 : vector<32x128xf32>
    %cst_40 = arith.constant 5.000000e-01 : f32
    %398 = vector.broadcast %cst_40 : f32 to vector<32x128xf32>
    %399 = arith.mulf %398, %397 : vector<32x128xf32>
    %cst_41 = arith.constant 5.000000e-01 : f32
    %400 = vector.broadcast %cst_41 : f32 to vector<32x128xf32>
    %401 = arith.addf %399, %400 : vector<32x128xf32>
    %402 = vector.broadcast %44 : f32 to vector<32x128xf32>
    %403 = arith.mulf %217, %402 : vector<32x128xf32>
    %404 = vector.broadcast %49 : f32 to vector<32x128xf32>
    %405 = arith.mulf %240, %404 : vector<32x128xf32>
    %406 = arith.addf %403, %405 : vector<32x128xf32>
    %407 = vector.broadcast %54 : f32 to vector<32x128xf32>
    %408 = arith.mulf %263, %407 : vector<32x128xf32>
    %409 = arith.addf %406, %408 : vector<32x128xf32>
    %410 = vector.broadcast %59 : f32 to vector<32x128xf32>
    %411 = arith.mulf %286, %410 : vector<32x128xf32>
    %412 = arith.addf %409, %411 : vector<32x128xf32>
    %413 = vector.broadcast %64 : f32 to vector<32x128xf32>
    %414 = arith.mulf %309, %413 : vector<32x128xf32>
    %415 = arith.addf %412, %414 : vector<32x128xf32>
    %416 = vector.broadcast %69 : f32 to vector<32x128xf32>
    %417 = arith.addf %415, %416 : vector<32x128xf32>
    %cst_42 = arith.constant 5.000000e-01 : f32
    %418 = vector.broadcast %cst_42 : f32 to vector<32x128xf32>
    %419 = arith.mulf %418, %417 : vector<32x128xf32>
    %420 = math.tanh %419 : vector<32x128xf32>
    %cst_43 = arith.constant 5.000000e-01 : f32
    %421 = vector.broadcast %cst_43 : f32 to vector<32x128xf32>
    %422 = arith.mulf %421, %420 : vector<32x128xf32>
    %cst_44 = arith.constant 5.000000e-01 : f32
    %423 = vector.broadcast %cst_44 : f32 to vector<32x128xf32>
    %424 = arith.addf %422, %423 : vector<32x128xf32>
    %425 = vector.broadcast %70 : f32 to vector<32x128xf32>
    %426 = arith.mulf %332, %425 : vector<32x128xf32>
    %427 = vector.broadcast %75 : f32 to vector<32x128xf32>
    %428 = arith.mulf %355, %427 : vector<32x128xf32>
    %429 = arith.addf %426, %428 : vector<32x128xf32>
    %430 = vector.broadcast %80 : f32 to vector<32x128xf32>
    %431 = arith.mulf %378, %430 : vector<32x128xf32>
    %432 = arith.addf %429, %431 : vector<32x128xf32>
    %433 = vector.broadcast %85 : f32 to vector<32x128xf32>
    %434 = arith.mulf %401, %433 : vector<32x128xf32>
    %435 = arith.addf %432, %434 : vector<32x128xf32>
    %436 = vector.broadcast %90 : f32 to vector<32x128xf32>
    %437 = arith.mulf %424, %436 : vector<32x128xf32>
    %438 = arith.addf %435, %437 : vector<32x128xf32>
    %439 = vector.broadcast %95 : f32 to vector<32x128xf32>
    %440 = arith.addf %438, %439 : vector<32x128xf32>
    %cst_45 = arith.constant 5.000000e-01 : f32
    %441 = vector.broadcast %cst_45 : f32 to vector<32x128xf32>
    %442 = arith.mulf %441, %440 : vector<32x128xf32>
    %443 = math.tanh %442 : vector<32x128xf32>
    %cst_46 = arith.constant 5.000000e-01 : f32
    %444 = vector.broadcast %cst_46 : f32 to vector<32x128xf32>
    %445 = arith.mulf %444, %443 : vector<32x128xf32>
    %cst_47 = arith.constant 5.000000e-01 : f32
    %446 = vector.broadcast %cst_47 : f32 to vector<32x128xf32>
    %447 = arith.addf %445, %446 : vector<32x128xf32>
    %448 = vector.broadcast %71 : f32 to vector<32x128xf32>
    %449 = arith.mulf %332, %448 : vector<32x128xf32>
    %450 = vector.broadcast %76 : f32 to vector<32x128xf32>
    %451 = arith.mulf %355, %450 : vector<32x128xf32>
    %452 = arith.addf %449, %451 : vector<32x128xf32>
    %453 = vector.broadcast %81 : f32 to vector<32x128xf32>
    %454 = arith.mulf %378, %453 : vector<32x128xf32>
    %455 = arith.addf %452, %454 : vector<32x128xf32>
    %456 = vector.broadcast %86 : f32 to vector<32x128xf32>
    %457 = arith.mulf %401, %456 : vector<32x128xf32>
    %458 = arith.addf %455, %457 : vector<32x128xf32>
    %459 = vector.broadcast %91 : f32 to vector<32x128xf32>
    %460 = arith.mulf %424, %459 : vector<32x128xf32>
    %461 = arith.addf %458, %460 : vector<32x128xf32>
    %462 = vector.broadcast %96 : f32 to vector<32x128xf32>
    %463 = arith.addf %461, %462 : vector<32x128xf32>
    %cst_48 = arith.constant 5.000000e-01 : f32
    %464 = vector.broadcast %cst_48 : f32 to vector<32x128xf32>
    %465 = arith.mulf %464, %463 : vector<32x128xf32>
    %466 = math.tanh %465 : vector<32x128xf32>
    %cst_49 = arith.constant 5.000000e-01 : f32
    %467 = vector.broadcast %cst_49 : f32 to vector<32x128xf32>
    %468 = arith.mulf %467, %466 : vector<32x128xf32>
    %cst_50 = arith.constant 5.000000e-01 : f32
    %469 = vector.broadcast %cst_50 : f32 to vector<32x128xf32>
    %470 = arith.addf %468, %469 : vector<32x128xf32>
    %471 = vector.broadcast %72 : f32 to vector<32x128xf32>
    %472 = arith.mulf %332, %471 : vector<32x128xf32>
    %473 = vector.broadcast %77 : f32 to vector<32x128xf32>
    %474 = arith.mulf %355, %473 : vector<32x128xf32>
    %475 = arith.addf %472, %474 : vector<32x128xf32>
    %476 = vector.broadcast %82 : f32 to vector<32x128xf32>
    %477 = arith.mulf %378, %476 : vector<32x128xf32>
    %478 = arith.addf %475, %477 : vector<32x128xf32>
    %479 = vector.broadcast %87 : f32 to vector<32x128xf32>
    %480 = arith.mulf %401, %479 : vector<32x128xf32>
    %481 = arith.addf %478, %480 : vector<32x128xf32>
    %482 = vector.broadcast %92 : f32 to vector<32x128xf32>
    %483 = arith.mulf %424, %482 : vector<32x128xf32>
    %484 = arith.addf %481, %483 : vector<32x128xf32>
    %485 = vector.broadcast %97 : f32 to vector<32x128xf32>
    %486 = arith.addf %484, %485 : vector<32x128xf32>
    %cst_51 = arith.constant 5.000000e-01 : f32
    %487 = vector.broadcast %cst_51 : f32 to vector<32x128xf32>
    %488 = arith.mulf %487, %486 : vector<32x128xf32>
    %489 = math.tanh %488 : vector<32x128xf32>
    %cst_52 = arith.constant 5.000000e-01 : f32
    %490 = vector.broadcast %cst_52 : f32 to vector<32x128xf32>
    %491 = arith.mulf %490, %489 : vector<32x128xf32>
    %cst_53 = arith.constant 5.000000e-01 : f32
    %492 = vector.broadcast %cst_53 : f32 to vector<32x128xf32>
    %493 = arith.addf %491, %492 : vector<32x128xf32>
    %494 = vector.broadcast %73 : f32 to vector<32x128xf32>
    %495 = arith.mulf %332, %494 : vector<32x128xf32>
    %496 = vector.broadcast %78 : f32 to vector<32x128xf32>
    %497 = arith.mulf %355, %496 : vector<32x128xf32>
    %498 = arith.addf %495, %497 : vector<32x128xf32>
    %499 = vector.broadcast %83 : f32 to vector<32x128xf32>
    %500 = arith.mulf %378, %499 : vector<32x128xf32>
    %501 = arith.addf %498, %500 : vector<32x128xf32>
    %502 = vector.broadcast %88 : f32 to vector<32x128xf32>
    %503 = arith.mulf %401, %502 : vector<32x128xf32>
    %504 = arith.addf %501, %503 : vector<32x128xf32>
    %505 = vector.broadcast %93 : f32 to vector<32x128xf32>
    %506 = arith.mulf %424, %505 : vector<32x128xf32>
    %507 = arith.addf %504, %506 : vector<32x128xf32>
    %508 = vector.broadcast %98 : f32 to vector<32x128xf32>
    %509 = arith.addf %507, %508 : vector<32x128xf32>
    %cst_54 = arith.constant 5.000000e-01 : f32
    %510 = vector.broadcast %cst_54 : f32 to vector<32x128xf32>
    %511 = arith.mulf %510, %509 : vector<32x128xf32>
    %512 = math.tanh %511 : vector<32x128xf32>
    %cst_55 = arith.constant 5.000000e-01 : f32
    %513 = vector.broadcast %cst_55 : f32 to vector<32x128xf32>
    %514 = arith.mulf %513, %512 : vector<32x128xf32>
    %cst_56 = arith.constant 5.000000e-01 : f32
    %515 = vector.broadcast %cst_56 : f32 to vector<32x128xf32>
    %516 = arith.addf %514, %515 : vector<32x128xf32>
    %517 = vector.broadcast %74 : f32 to vector<32x128xf32>
    %518 = arith.mulf %332, %517 : vector<32x128xf32>
    %519 = vector.broadcast %79 : f32 to vector<32x128xf32>
    %520 = arith.mulf %355, %519 : vector<32x128xf32>
    %521 = arith.addf %518, %520 : vector<32x128xf32>
    %522 = vector.broadcast %84 : f32 to vector<32x128xf32>
    %523 = arith.mulf %378, %522 : vector<32x128xf32>
    %524 = arith.addf %521, %523 : vector<32x128xf32>
    %525 = vector.broadcast %89 : f32 to vector<32x128xf32>
    %526 = arith.mulf %401, %525 : vector<32x128xf32>
    %527 = arith.addf %524, %526 : vector<32x128xf32>
    %528 = vector.broadcast %94 : f32 to vector<32x128xf32>
    %529 = arith.mulf %424, %528 : vector<32x128xf32>
    %530 = arith.addf %527, %529 : vector<32x128xf32>
    %531 = vector.broadcast %99 : f32 to vector<32x128xf32>
    %532 = arith.addf %530, %531 : vector<32x128xf32>
    %cst_57 = arith.constant 5.000000e-01 : f32
    %533 = vector.broadcast %cst_57 : f32 to vector<32x128xf32>
    %534 = arith.mulf %533, %532 : vector<32x128xf32>
    %535 = math.tanh %534 : vector<32x128xf32>
    %cst_58 = arith.constant 5.000000e-01 : f32
    %536 = vector.broadcast %cst_58 : f32 to vector<32x128xf32>
    %537 = arith.mulf %536, %535 : vector<32x128xf32>
    %cst_59 = arith.constant 5.000000e-01 : f32
    %538 = vector.broadcast %cst_59 : f32 to vector<32x128xf32>
    %539 = arith.addf %537, %538 : vector<32x128xf32>
    %540 = vector.broadcast %100 : f32 to vector<32x128xf32>
    %541 = arith.mulf %447, %540 : vector<32x128xf32>
    %542 = vector.broadcast %105 : f32 to vector<32x128xf32>
    %543 = arith.mulf %470, %542 : vector<32x128xf32>
    %544 = arith.addf %541, %543 : vector<32x128xf32>
    %545 = vector.broadcast %110 : f32 to vector<32x128xf32>
    %546 = arith.mulf %493, %545 : vector<32x128xf32>
    %547 = arith.addf %544, %546 : vector<32x128xf32>
    %548 = vector.broadcast %115 : f32 to vector<32x128xf32>
    %549 = arith.mulf %516, %548 : vector<32x128xf32>
    %550 = arith.addf %547, %549 : vector<32x128xf32>
    %551 = vector.broadcast %120 : f32 to vector<32x128xf32>
    %552 = arith.mulf %539, %551 : vector<32x128xf32>
    %553 = arith.addf %550, %552 : vector<32x128xf32>
    %554 = vector.broadcast %125 : f32 to vector<32x128xf32>
    %555 = arith.addf %553, %554 : vector<32x128xf32>
    %cst_60 = arith.constant 5.000000e-01 : f32
    %556 = vector.broadcast %cst_60 : f32 to vector<32x128xf32>
    %557 = arith.mulf %556, %555 : vector<32x128xf32>
    %558 = math.tanh %557 : vector<32x128xf32>
    %cst_61 = arith.constant 5.000000e-01 : f32
    %559 = vector.broadcast %cst_61 : f32 to vector<32x128xf32>
    %560 = arith.mulf %559, %558 : vector<32x128xf32>
    %cst_62 = arith.constant 5.000000e-01 : f32
    %561 = vector.broadcast %cst_62 : f32 to vector<32x128xf32>
    %562 = arith.addf %560, %561 : vector<32x128xf32>
    %563 = vector.broadcast %101 : f32 to vector<32x128xf32>
    %564 = arith.mulf %447, %563 : vector<32x128xf32>
    %565 = vector.broadcast %106 : f32 to vector<32x128xf32>
    %566 = arith.mulf %470, %565 : vector<32x128xf32>
    %567 = arith.addf %564, %566 : vector<32x128xf32>
    %568 = vector.broadcast %111 : f32 to vector<32x128xf32>
    %569 = arith.mulf %493, %568 : vector<32x128xf32>
    %570 = arith.addf %567, %569 : vector<32x128xf32>
    %571 = vector.broadcast %116 : f32 to vector<32x128xf32>
    %572 = arith.mulf %516, %571 : vector<32x128xf32>
    %573 = arith.addf %570, %572 : vector<32x128xf32>
    %574 = vector.broadcast %121 : f32 to vector<32x128xf32>
    %575 = arith.mulf %539, %574 : vector<32x128xf32>
    %576 = arith.addf %573, %575 : vector<32x128xf32>
    %577 = vector.broadcast %126 : f32 to vector<32x128xf32>
    %578 = arith.addf %576, %577 : vector<32x128xf32>
    %cst_63 = arith.constant 5.000000e-01 : f32
    %579 = vector.broadcast %cst_63 : f32 to vector<32x128xf32>
    %580 = arith.mulf %579, %578 : vector<32x128xf32>
    %581 = math.tanh %580 : vector<32x128xf32>
    %cst_64 = arith.constant 5.000000e-01 : f32
    %582 = vector.broadcast %cst_64 : f32 to vector<32x128xf32>
    %583 = arith.mulf %582, %581 : vector<32x128xf32>
    %cst_65 = arith.constant 5.000000e-01 : f32
    %584 = vector.broadcast %cst_65 : f32 to vector<32x128xf32>
    %585 = arith.addf %583, %584 : vector<32x128xf32>
    %586 = vector.broadcast %102 : f32 to vector<32x128xf32>
    %587 = arith.mulf %447, %586 : vector<32x128xf32>
    %588 = vector.broadcast %107 : f32 to vector<32x128xf32>
    %589 = arith.mulf %470, %588 : vector<32x128xf32>
    %590 = arith.addf %587, %589 : vector<32x128xf32>
    %591 = vector.broadcast %112 : f32 to vector<32x128xf32>
    %592 = arith.mulf %493, %591 : vector<32x128xf32>
    %593 = arith.addf %590, %592 : vector<32x128xf32>
    %594 = vector.broadcast %117 : f32 to vector<32x128xf32>
    %595 = arith.mulf %516, %594 : vector<32x128xf32>
    %596 = arith.addf %593, %595 : vector<32x128xf32>
    %597 = vector.broadcast %122 : f32 to vector<32x128xf32>
    %598 = arith.mulf %539, %597 : vector<32x128xf32>
    %599 = arith.addf %596, %598 : vector<32x128xf32>
    %600 = vector.broadcast %127 : f32 to vector<32x128xf32>
    %601 = arith.addf %599, %600 : vector<32x128xf32>
    %cst_66 = arith.constant 5.000000e-01 : f32
    %602 = vector.broadcast %cst_66 : f32 to vector<32x128xf32>
    %603 = arith.mulf %602, %601 : vector<32x128xf32>
    %604 = math.tanh %603 : vector<32x128xf32>
    %cst_67 = arith.constant 5.000000e-01 : f32
    %605 = vector.broadcast %cst_67 : f32 to vector<32x128xf32>
    %606 = arith.mulf %605, %604 : vector<32x128xf32>
    %cst_68 = arith.constant 5.000000e-01 : f32
    %607 = vector.broadcast %cst_68 : f32 to vector<32x128xf32>
    %608 = arith.addf %606, %607 : vector<32x128xf32>
    %609 = vector.broadcast %103 : f32 to vector<32x128xf32>
    %610 = arith.mulf %447, %609 : vector<32x128xf32>
    %611 = vector.broadcast %108 : f32 to vector<32x128xf32>
    %612 = arith.mulf %470, %611 : vector<32x128xf32>
    %613 = arith.addf %610, %612 : vector<32x128xf32>
    %614 = vector.broadcast %113 : f32 to vector<32x128xf32>
    %615 = arith.mulf %493, %614 : vector<32x128xf32>
    %616 = arith.addf %613, %615 : vector<32x128xf32>
    %617 = vector.broadcast %118 : f32 to vector<32x128xf32>
    %618 = arith.mulf %516, %617 : vector<32x128xf32>
    %619 = arith.addf %616, %618 : vector<32x128xf32>
    %620 = vector.broadcast %123 : f32 to vector<32x128xf32>
    %621 = arith.mulf %539, %620 : vector<32x128xf32>
    %622 = arith.addf %619, %621 : vector<32x128xf32>
    %623 = vector.broadcast %128 : f32 to vector<32x128xf32>
    %624 = arith.addf %622, %623 : vector<32x128xf32>
    %cst_69 = arith.constant 5.000000e-01 : f32
    %625 = vector.broadcast %cst_69 : f32 to vector<32x128xf32>
    %626 = arith.mulf %625, %624 : vector<32x128xf32>
    %627 = math.tanh %626 : vector<32x128xf32>
    %cst_70 = arith.constant 5.000000e-01 : f32
    %628 = vector.broadcast %cst_70 : f32 to vector<32x128xf32>
    %629 = arith.mulf %628, %627 : vector<32x128xf32>
    %cst_71 = arith.constant 5.000000e-01 : f32
    %630 = vector.broadcast %cst_71 : f32 to vector<32x128xf32>
    %631 = arith.addf %629, %630 : vector<32x128xf32>
    %632 = vector.broadcast %104 : f32 to vector<32x128xf32>
    %633 = arith.mulf %447, %632 : vector<32x128xf32>
    %634 = vector.broadcast %109 : f32 to vector<32x128xf32>
    %635 = arith.mulf %470, %634 : vector<32x128xf32>
    %636 = arith.addf %633, %635 : vector<32x128xf32>
    %637 = vector.broadcast %114 : f32 to vector<32x128xf32>
    %638 = arith.mulf %493, %637 : vector<32x128xf32>
    %639 = arith.addf %636, %638 : vector<32x128xf32>
    %640 = vector.broadcast %119 : f32 to vector<32x128xf32>
    %641 = arith.mulf %516, %640 : vector<32x128xf32>
    %642 = arith.addf %639, %641 : vector<32x128xf32>
    %643 = vector.broadcast %124 : f32 to vector<32x128xf32>
    %644 = arith.mulf %539, %643 : vector<32x128xf32>
    %645 = arith.addf %642, %644 : vector<32x128xf32>
    %646 = vector.broadcast %129 : f32 to vector<32x128xf32>
    %647 = arith.addf %645, %646 : vector<32x128xf32>
    %cst_72 = arith.constant 5.000000e-01 : f32
    %648 = vector.broadcast %cst_72 : f32 to vector<32x128xf32>
    %649 = arith.mulf %648, %647 : vector<32x128xf32>
    %650 = math.tanh %649 : vector<32x128xf32>
    %cst_73 = arith.constant 5.000000e-01 : f32
    %651 = vector.broadcast %cst_73 : f32 to vector<32x128xf32>
    %652 = arith.mulf %651, %650 : vector<32x128xf32>
    %cst_74 = arith.constant 5.000000e-01 : f32
    %653 = vector.broadcast %cst_74 : f32 to vector<32x128xf32>
    %654 = arith.addf %652, %653 : vector<32x128xf32>
    %655 = vector.broadcast %130 : f32 to vector<32x128xf32>
    %656 = arith.mulf %562, %655 : vector<32x128xf32>
    %657 = vector.broadcast %131 : f32 to vector<32x128xf32>
    %658 = arith.mulf %585, %657 : vector<32x128xf32>
    %659 = arith.addf %656, %658 : vector<32x128xf32>
    %660 = vector.broadcast %132 : f32 to vector<32x128xf32>
    %661 = arith.mulf %608, %660 : vector<32x128xf32>
    %662 = arith.addf %659, %661 : vector<32x128xf32>
    %663 = vector.broadcast %133 : f32 to vector<32x128xf32>
    %664 = arith.mulf %631, %663 : vector<32x128xf32>
    %665 = arith.addf %662, %664 : vector<32x128xf32>
    %666 = vector.broadcast %134 : f32 to vector<32x128xf32>
    %667 = arith.mulf %654, %666 : vector<32x128xf32>
    %668 = arith.addf %665, %667 : vector<32x128xf32>
    %669 = vector.broadcast %135 : f32 to vector<32x128xf32>
    %670 = arith.addf %668, %669 : vector<32x128xf32>
    %671 = arith.index_cast %137 : i32 to index
    %c0_75 = arith.constant 0 : index
    %672 = vector.load %arg3[%671, %c0_75] : memref<32x128xf32, #tpu.memory_space<vmem>>, vector<32x128xf32>
    tpu.vector_store %arg3[%671, %c0_75], %670 {strides = array<i32>} : memref<32x128xf32, #tpu.memory_space<vmem>>, vector<32x128xf32>,
    %c1_i32 = arith.constant 1 : i32
    return
  }
  func.func @transform_0(%arg0: i32) -> i32 {
    %c0_i32 = arith.constant 0 : i32
    %c0_i32_0 = arith.constant 0 : i32
    return %c0_i32 : i32
  }
  func.func @transform_1(%arg0: i32) -> (i32, i32) {
    %c0_i32 = arith.constant 0 : i32
    %c0_i32_0 = arith.constant 0 : i32
    return %arg0, %c0_i32 : i32, i32
  }
  func.func @transform_2(%arg0: i32) -> (i32, i32) {
    %c0_i32 = arith.constant 0 : i32
    %c0_i32_0 = arith.constant 0 : i32
    return %arg0, %c0_i32 : i32, i32
  }
}

</mosaic_0001>

<bundles_post_ra>
// kernel: net_forward.1
= control target key start
LH: loop header
LB: loop body
LE: loop exit
PB: predicated region body
PF: predicated region fallthrough
CT: control target
= control target key end

     0   :  { %7 = vsyncpa [#allocation3], 0  ;;  %s1939_s12 = smov [#allocation2]   ;;  %s2996_s0 = inlined_call_operand.vmem [shape: f32[136], index: 0, kind: input, shape index: {}]   ;;  %s2997_s1 = inlined_call_operand.vmem [shape: f32[32,128], index: 1, kind: input, shape index: {}]   ;;  %s2998_s2 = inlined_call_operand.vmem [shape: f32[32,128], index: 2, kind: output, shape index: {}]  }
   0x1   :  { %s13_s11 = sshll.u32 %s2996_s0, 4  ;;  %s14_s11 = int_to_ptr.vmem [resolvable:$true] %s13_s11 }
   0x2   :  { %16 = dma.vmem_to_smem %s14_s11, 32, %s1939_s12, [#allocation3]  }
   0x3   :  { %1937 = dma.done.wait [#allocation3], 32  }
   0x4   :  { %1938 = vsyncadd [#allocation3], 4294967264 }
   0x5   :  { %23 = sfence }
   0x6   :  { %s24_s13 = sld [smem:[#allocation2]]  ;;  %v1961_v0 = vld [vmem:[%s2997_s1] sm:$0xff]  ;;  %v1966_v1 = vld [vmem:[%s2997_s1 + $0x8] sm:$0xff]  ;;  %v1971_v2 = vld [vmem:[%s2997_s1 + $0x10] sm:$0xff] }
   0x7   :  { %s1589_s14 = sld [smem:[#allocation2 + $0x1]]  ;;  %v1976_v3 = vld [vmem:[%s2997_s1 + $0x18] sm:$0xff] }
   0x8   :  { %s1590_s15 = sld [smem:[#allocation2 + $0x2]] }
   0x9   :  { %s1591_s16 = sld [smem:[#allocation2 + $0x3]] }
   0xa   :  { %s1592_s17 = sld [smem:[#allocation2 + $0x4]] }
   0xb   :  { %s1593_s0 = sld [smem:[#allocation2 + $0x5]] }
   0xc   :  { %s1594_s26 = sld [smem:[#allocation2 + $0x6]]  ;;  %v164_v4 = vstv %s24_s13 }
   0xd   :  { %s1595_s27 = sld [smem:[#allocation2 + $0x7]]  ;;  %v165_v5 = vmul.f32 %v164_v4, %v1961_v0  ;;  %v166_v6 = vmul.f32 %v164_v4, %v1966_v1  ;;  %v167_v7 = vmul.f32 %v164_v4, %v1971_v2  ;;  %v168_v8 = vmul.f32 %v164_v4, %v1976_v3 }
   0xe   :  { %v190_v9 = vstv %s1589_s14  ;;  %v216_v10 = vstv %s1590_s15  ;;  %s1992_s1 = sld [smem:[#allocation2 + $0x8]] }
   0xf   :  { %v191_v11 = vmul.f32 %v190_v9, %v1961_v0  ;;  %v192_v12 = vmul.f32 %v190_v9, %v1966_v1  ;;  %v193_v13 = vmul.f32 %v190_v9, %v1971_v2  ;;  %v194_v14 = vmul.f32 %v190_v9, %v1976_v3  ;;  %s1996_s28 = sld [smem:[#allocation2 + $0x9]] }
  0x10   :  { %v217_v15 = vmul.f32 %v216_v10, %v1961_v0  ;;  %v218_v16 = vmul.f32 %v216_v10, %v1966_v1  ;;  %v219_v17 = vmul.f32 %v216_v10, %v1971_v2  ;;  %v220_v19 = vmul.f32 %v216_v10, %v1976_v3  ;;  %s2009_s29 = sld [smem:[#allocation2 + $0xa]] }
  0x11   :  { %v169_v18 = vstv %s1593_s0  ;;  %v242_v20 = vstv %s1591_s16  ;;  %v1990_v21 = vstv %s1592_s17  ;;  %s2022_s30 = sld [smem:[#allocation2 + $0xf]] }
  0x12   :  { %v170_v22 = vadd.f32 %v169_v18, %v165_v5  ;;  %v171_v23 = vadd.f32 %v169_v18, %v166_v6  ;;  %v172_v24 = vadd.f32 %v169_v18, %v167_v7  ;;  %v173_v25 = vadd.f32 %v169_v18, %v168_v8  ;;  %s2026_s3 = sld [smem:[#allocation2 + $0x14]] }
  0x13   :  { %v195_v26 = vstv %s1594_s26  ;;  %v221_v27 = vstv %s1595_s27  ;;  %v243_v28 = vmul.f32 %v242_v20, %v1961_v0  ;;  %v244_v29 = vmul.f32 %v242_v20, %v1966_v1  ;;  %s2030_s4 = sld [smem:[#allocation2 + $0x19]] }
  0x14   :  { %v174_v30 = vmul.f32 0.5, %v170_v22  ;;  %v175_v31 = vmul.f32 0.5, %v171_v23  ;;  %v176_v32 = vmul.f32 0.5, %v172_v24  ;;  %v177_v33 = vmul.f32 0.5, %v173_v25  ;;  %s2045_s5 = sld [smem:[#allocation2 + $0xb]] }
  0x15   :  { %v196_v34 = vadd.f32 %v195_v26, %v191_v11  ;;  %v197_v35 = vadd.f32 %v195_v26, %v192_v12  ;;  %v198_v36 = vadd.f32 %v195_v26, %v193_v13  ;;  %v199_v37 = vadd.f32 %v195_v26, %v194_v14  ;;  %s2050_s6 = sld [smem:[#allocation2 + $0x1e]] }
  0x16   :  { %1725 = vtanh.f32 %v174_v30  ;;  %v222_v38 = vadd.f32 %v221_v27, %v217_v15  ;;  %v223_v39 = vadd.f32 %v221_v27, %v218_v16  ;;  %v224_v40 = vadd.f32 %v221_v27, %v219_v17  ;;  %s2056_s7 = sld [smem:[#allocation2 + $0x23]] }
  0x17   :  { %1727 = vtanh.f32 %v175_v31  ;;  %v200_v41 = vmul.f32 0.5, %v196_v34  ;;  %v201_v42 = vmul.f32 0.5, %v197_v35  ;;  %v202_v43 = vmul.f32 0.5, %v198_v36  ;;  %s2070_s8 = sld [smem:[#allocation2 + $0x10]] }
  0x18   :  { %1729 = vtanh.f32 %v176_v32  ;;  %v203_v44 = vmul.f32 0.5, %v199_v37  ;;  %v225_v45 = vadd.f32 %v221_v27, %v220_v19  ;;  %v226_v46 = vmul.f32 0.5, %v222_v38  ;;  %s2081_s9 = sld [smem:[#allocation2 + $0x15]] }
  0x19   :  { %1731 = vtanh.f32 %v177_v33  ;;  %v227_v47 = vmul.f32 0.5, %v223_v39  ;;  %v228_v48 = vmul.f32 0.5, %v224_v40  ;;  %v245_v49 = vmul.f32 %v242_v20, %v1971_v2  ;;  %s2088_s10 = sld [smem:[#allocation2 + $0x1a]] }
  0x1a   :  { %1733 = vtanh.f32 %v200_v41  ;;  %v229_v50 = vmul.f32 0.5, %v225_v45  ;;  %v246_v51 = vmul.f32 %v242_v20, %v1976_v3  ;;  %v247_v52 = vstv %s1992_s1  ;;  %s2093_s11 = sld [smem:[#allocation2 + $0x1f]] }
  0x1b   :  { %1735 = vtanh.f32 %v201_v42  ;;  %v248_v53 = vadd.f32 %v247_v52, %v243_v28  ;;  %v249_v54 = vadd.f32 %v247_v52, %v244_v29  ;;  %v250_v55 = vadd.f32 %v247_v52, %v245_v49  ;;  %s2108_s12 = sld [smem:[#allocation2 + $0x24]] }
  0x1c   :  { %v1726_v56 = vpop.eup %1725  ;;  %1737 = vtanh.f32 %v202_v43  ;;  %v251_v57 = vadd.f32 %v247_v52, %v246_v51  ;;  %v269_v58 = vmul.f32 %v1990_v21, %v1961_v0  ;;  %v270_v59 = vmul.f32 %v1990_v21, %v1966_v1  ;;  %s2110_s13 = sld [smem:[#allocation2 + $0xc]] }
  0x1d   :  { %v1728_v60 = vpop.eup %1727  ;;  %v182_v61 = vmul.f32 0.5, %v1726_v56  ;;  %1739 = vtanh.f32 %v203_v44  ;;  %v252_v62 = vmul.f32 0.5, %v248_v53  ;;  %v253_v63 = vmul.f32 0.5, %v249_v54  ;;  %s2121_s14 = sld [smem:[#allocation2 + $0x11]] }
  0x1e   :  { %v1730_v4 = vpop.eup %1729  ;;  %v183_v5 = vmul.f32 0.5, %v1728_v60  ;;  %1741 = vtanh.f32 %v226_v46  ;;  %v254_v6 = vmul.f32 0.5, %v250_v55  ;;  %v255_v7 = vmul.f32 0.5, %v251_v57  ;;  %s2126_s15 = sld [smem:[#allocation2 + $0x16]] }
  0x1f   :  { %v1732_v8 = vpop.eup %1731  ;;  %v184_v9 = vmul.f32 0.5, %v1730_v4  ;;  %v2005_v10 = vadd.f32 0.5, %v182_v61  ;;  %1743 = vtanh.f32 %v227_v47  ;;  %v271_v0 = vmul.f32 %v1990_v21, %v1971_v2  ;;  %s2134_s16 = sld [smem:[#allocation2 + $0x1b]] }
  0x20   :  { %v1734_v1 = vpop.eup %1733  ;;  %v185_v11 = vmul.f32 0.5, %v1732_v8  ;;  %v2011_v12 = vadd.f32 0.5, %v183_v5  ;;  %1745 = vtanh.f32 %v228_v48  ;;  %v272_v13 = vmul.f32 %v1990_v21, %v1976_v3  ;;  %s2143_s17 = sld [smem:[#allocation2 + $0x20]] }
  0x21   :  { %v1736_v14 = vpop.eup %1735  ;;  %v2015_v15 = vadd.f32 0.5, %v184_v9  ;;  %v208_v16 = vmul.f32 0.5, %v1734_v1  ;;  %1747 = vtanh.f32 %v229_v50  ;;  %v273_v17 = vstv %s1996_s28  ;;  %s2157_s18 = sld [smem:[#allocation2 + $0x25]] }
  0x22   :  { %v1738_v18 = vpop.eup %1737  ;;  %v2018_v19 = vadd.f32 0.5, %v185_v11  ;;  %v209_v2 = vmul.f32 0.5, %v1736_v14  ;;  %1749 = vtanh.f32 %v252_v62  ;;  %v274_v20 = vadd.f32 %v273_v17, %v269_v58  ;;  %s2159_s19 = sld [smem:[#allocation2 + $0xd]] }
  0x23   :  { %v1740_v22 = vpop.eup %1739  ;;  %v210_v23 = vmul.f32 0.5, %v1738_v18  ;;  %v2020_v24 = vadd.f32 0.5, %v208_v16  ;;  %1751 = vtanh.f32 %v253_v63  ;;  %v275_v25 = vadd.f32 %v273_v17, %v270_v59  ;;  %s2166_s20 = sld [smem:[#allocation2 + $0x12]] }
  0x24   :  { %v1742_v26 = vpop.eup %1741  ;;  %v211_v3 = vmul.f32 0.5, %v1740_v22  ;;  %v2024_v21 = vadd.f32 0.5, %v209_v2  ;;  %1753 = vtanh.f32 %v254_v6  ;;  %v276_v27 = vadd.f32 %v273_v17, %v271_v0  ;;  %s2170_s21 = sld [smem:[#allocation2 + $0x17]] }
  0x25   :  { %v1744_v28 = vpop.eup %1743  ;;  %v2028_v29 = vadd.f32 0.5, %v210_v23  ;;  %v234_v30 = vmul.f32 0.5, %v1742_v26  ;;  %1755 = vtanh.f32 %v255_v7  ;;  %v277_v31 = vadd.f32 %v273_v17, %v272_v13  ;;  %s2184_s0 = sld [smem:[#allocation2 + $0x1c]] }
  0x26   :  { %v1746_v32 = vpop.eup %1745  ;;  %v2032_v33 = vadd.f32 0.5, %v211_v3  ;;  %v235_v34 = vmul.f32 0.5, %v1744_v28  ;;  %v278_v35 = vmul.f32 0.5, %v274_v20  ;;  %v279_v36 = vmul.f32 0.5, %v275_v25  ;;  %s2189_s22 = sld [smem:[#allocation2 + $0x21]] }
  0x27   :  { %v1748_v37 = vpop.eup %1747  ;;  %v236_v38 = vmul.f32 0.5, %v1746_v32  ;;  %v2034_v39 = vadd.f32 0.5, %v234_v30  ;;  %v280_v40 = vmul.f32 0.5, %v276_v27  ;;  %v281_v41 = vmul.f32 0.5, %v277_v31  ;;  %s2193_s23 = sld [smem:[#allocation2 + $0x26]] }
  0x28   :  { %v1750_v42 = vpop.eup %1749  ;;  %v237_v43 = vmul.f32 0.5, %v1748_v37  ;;  %v2036_v44 = vadd.f32 0.5, %v235_v34  ;;  %1757 = vtanh.f32 %v278_v35  ;;  %v294_v45 = vstv %s2009_s29  ;;  %s2205_s24 = sld [smem:[#allocation2 + $0xe]] }
  0x29   :  { %v1752_v46 = vpop.eup %1751  ;;  %v2039_v47 = vadd.f32 0.5, %v236_v38  ;;  %v260_v48 = vmul.f32 0.5, %v1750_v42  ;;  %1759 = vtanh.f32 %v279_v36  ;;  %v295_v49 = vmul.f32 %v294_v45, %v2005_v10  ;;  %s2213_s25 = sld [smem:[#allocation2 + $0x13]] }
  0x2a   :  { %v1754_v50 = vpop.eup %1753  ;;  %v2042_v51 = vadd.f32 0.5, %v237_v43  ;;  %v261_v52 = vmul.f32 0.5, %v1752_v46  ;;  %1761 = vtanh.f32 %v280_v40  ;;  %v296_v53 = vmul.f32 %v294_v45, %v2011_v12  ;;  %s2218_s26 = sld [smem:[#allocation2 + $0x18]] }
  0x2b   :  { %v1756_v54 = vpop.eup %1755  ;;  %v262_v55 = vmul.f32 0.5, %v1754_v50  ;;  %v2047_v56 = vadd.f32 0.5, %v260_v48  ;;  %1763 = vtanh.f32 %v281_v41  ;;  %v297_v57 = vmul.f32 %v294_v45, %v2015_v15  ;;  %s2226_s27 = sld [smem:[#allocation2 + $0x1d]] }
  0x2c   :  { %v263_v58 = vmul.f32 0.5, %v1756_v54  ;;  %v2052_v59 = vadd.f32 0.5, %v261_v52  ;;  %v298_v60 = vmul.f32 %v294_v45, %v2018_v19  ;;  %v299_v61 = vstv %s2022_s30  ;;  %s2230_s1 = sld [smem:[#allocation2 + $0x22]] }
  0x2d   :  { %v2058_v62 = vadd.f32 0.5, %v262_v55  ;;  %v300_v63 = vmul.f32 %v299_v61, %v2020_v24  ;;  %v301_v4 = vmul.f32 %v299_v61, %v2024_v21  ;;  %v302_v5 = vmul.f32 %v299_v61, %v2028_v29  ;;  %s2235_s28 = sld [smem:[#allocation2 + $0x27]] }
  0x2e   :  { %v1758_v6 = vpop.eup %1757  ;;  %v2063_v7 = vadd.f32 0.5, %v263_v58  ;;  %v303_v8 = vmul.f32 %v299_v61, %v2032_v33  ;;  %v308_v9 = vstv %s2026_s3  ;;  %v317_v0 = vstv %s2030_s4  ;;  %s2251_s29 = sld [smem:[#allocation2 + $0x28]] }
  0x2f   :  { %v1760_v1 = vpop.eup %1759  ;;  %v286_v11 = vmul.f32 0.5, %v1758_v6  ;;  %v304_v13 = vadd.f32 %v300_v63, %v295_v49  ;;  %v305_v14 = vadd.f32 %v301_v4, %v296_v53  ;;  %v306_v16 = vadd.f32 %v302_v5, %v297_v57  ;;  %s2260_s30 = sld [smem:[#allocation2 + $0x2d]] }
  0x30   :  { %v1762_v17 = vpop.eup %1761  ;;  %v287_v18 = vmul.f32 0.5, %v1760_v1  ;;  %v307_v2 = vadd.f32 %v303_v8, %v298_v60  ;;  %v309_v20 = vmul.f32 %v308_v9, %v2034_v39  ;;  %v310_v22 = vmul.f32 %v308_v9, %v2036_v44  ;;  %s2266_s3 = sld [smem:[#allocation2 + $0x32]] }
  0x31   :  { %v1764_v23 = vpop.eup %1763  ;;  %v288_v25 = vmul.f32 0.5, %v1762_v17  ;;  %v2072_v26 = vadd.f32 0.5, %v286_v11  ;;  %v311_v3 = vmul.f32 %v308_v9, %v2039_v47  ;;  %v312_v27 = vmul.f32 %v308_v9, %v2042_v51  ;;  %s2269_s4 = sld [smem:[#allocation2 + $0x37]] }
  0x32   :  { %v289_v28 = vmul.f32 0.5, %v1764_v23  ;;  %v2076_v30 = vadd.f32 0.5, %v287_v18  ;;  %v313_v31 = vadd.f32 %v309_v20, %v304_v13  ;;  %v314_v32 = vadd.f32 %v310_v22, %v305_v14 }
  0x33   :  { %v2078_v34 = vadd.f32 0.5, %v288_v25  ;;  %v315_v35 = vadd.f32 %v311_v3, %v306_v16  ;;  %v316_v36 = vadd.f32 %v312_v27, %v307_v2  ;;  %v318_v37 = vmul.f32 %v317_v0, %v2047_v56 }
  0x34   :  { %v2083_v38 = vadd.f32 0.5, %v289_v28  ;;  %v319_v40 = vmul.f32 %v317_v0, %v2052_v59  ;;  %v320_v41 = vmul.f32 %v317_v0, %v2058_v62  ;;  %v321_v42 = vmul.f32 %v317_v0, %v2063_v7 }
  0x35   :  { %v322_v43 = vadd.f32 %v318_v37, %v313_v31  ;;  %v326_v45 = vstv %s2050_s6  ;;  %v335_v46 = vstv %s2056_s7  ;;  %v356_v48 = vstv %s2045_s5  ;;  %s2279_s5 = sld [smem:[#allocation2 + $0x3c]] }
  0x36   :  { %v323_v49 = vadd.f32 %v319_v40, %v314_v32  ;;  %v324_v50 = vadd.f32 %v320_v41, %v315_v35  ;;  %v325_v52 = vadd.f32 %v321_v42, %v316_v36  ;;  %v327_v53 = vmul.f32 %v326_v45, %v2072_v26  ;;  %s2284_s6 = sld [smem:[#allocation2 + $0x41]] }
  0x37   :  { %v328_v54 = vmul.f32 %v326_v45, %v2076_v30  ;;  %v329_v55 = vmul.f32 %v326_v45, %v2078_v34  ;;  %v330_v57 = vmul.f32 %v326_v45, %v2083_v38  ;;  %v357_v58 = vmul.f32 %v356_v48, %v2005_v10  ;;  %s2288_s7 = sld [smem:[#allocation2 + $0x29]] }
  0x38   :  { %v331_v60 = vadd.f32 %v327_v53, %v322_v43  ;;  %v358_v61 = vmul.f32 %v356_v48, %v2011_v12  ;;  %v359_v63 = vmul.f32 %v356_v48, %v2015_v15  ;;  %v360_v4 = vmul.f32 %v356_v48, %v2018_v19 }
  0x39   :  { %v332_v5 = vadd.f32 %v328_v54, %v323_v49  ;;  %v333_v6 = vadd.f32 %v329_v55, %v324_v50  ;;  %v334_v8 = vadd.f32 %v330_v57, %v325_v52  ;;  %v361_v9 = vstv %s2070_s8  ;;  %s2298_s8 = sld [smem:[#allocation2 + $0x2e]] }
  0x3a   :  { %v336_v0 = vadd.f32 %v335_v46, %v331_v60  ;;  %v362_v1 = vmul.f32 %v361_v9, %v2020_v24  ;;  %v363_v11 = vmul.f32 %v361_v9, %v2024_v21  ;;  %v364_v13 = vmul.f32 %v361_v9, %v2028_v29 }
  0x3b   :  { %v337_v14 = vadd.f32 %v335_v46, %v332_v5  ;;  %v338_v16 = vadd.f32 %v335_v46, %v333_v6  ;;  %v339_v17 = vadd.f32 %v335_v46, %v334_v8  ;;  %v365_v18 = vmul.f32 %v361_v9, %v2032_v33 }
  0x3c   :  { %v340_v2 = vmul.f32 0.5, %v336_v0  ;;  %v366_v20 = vadd.f32 %v362_v1, %v357_v58  ;;  %v367_v22 = vadd.f32 %v363_v11, %v358_v61  ;;  %v368_v23 = vadd.f32 %v364_v13, %v359_v63 }
  0x3d   :  { %v341_v25 = vmul.f32 0.5, %v337_v14  ;;  %v342_v3 = vmul.f32 0.5, %v338_v16  ;;  %v343_v27 = vmul.f32 0.5, %v339_v17  ;;  %v369_v28 = vadd.f32 %v365_v18, %v360_v4 }
  0x3e   :  { %1765 = vtanh.f32 %v340_v2  ;;  %v370_v31 = vstv %s2081_s9  ;;  %v379_v32 = vstv %s2088_s10  ;;  %v388_v35 = vstv %s2093_s11  ;;  %s2308_s9 = sld [smem:[#allocation2 + $0x33]] }
  0x3f   :  { %1767 = vtanh.f32 %v341_v25  ;;  %v371_v36 = vmul.f32 %v370_v31, %v2034_v39  ;;  %v372_v37 = vmul.f32 %v370_v31, %v2036_v44  ;;  %v373_v40 = vmul.f32 %v370_v31, %v2039_v47  ;;  %s2312_s10 = sld [smem:[#allocation2 + $0x38]] }
  0x40   :  { %1769 = vtanh.f32 %v342_v3  ;;  %v374_v41 = vmul.f32 %v370_v31, %v2042_v51  ;;  %v380_v42 = vmul.f32 %v379_v32, %v2047_v56  ;;  %v381_v43 = vmul.f32 %v379_v32, %v2052_v59  ;;  %s2334_s11 = sld [smem:[#allocation2 + $0x3d]] }
  0x41   :  { %1771 = vtanh.f32 %v343_v27  ;;  %v375_v45 = vadd.f32 %v371_v36, %v366_v20  ;;  %v376_v46 = vadd.f32 %v372_v37, %v367_v22  ;;  %v377_v48 = vadd.f32 %v373_v40, %v368_v23 }
  0x42   :  { %v378_v49 = vadd.f32 %v374_v41, %v369_v28  ;;  %v382_v50 = vmul.f32 %v379_v32, %v2058_v62  ;;  %v383_v52 = vmul.f32 %v379_v32, %v2063_v7  ;;  %v389_v53 = vmul.f32 %v388_v35, %v2072_v26 }
  0x43   :  { %v384_v54 = vadd.f32 %v380_v42, %v375_v45  ;;  %v385_v55 = vadd.f32 %v381_v43, %v376_v46  ;;  %v390_v57 = vmul.f32 %v388_v35, %v2076_v30  ;;  %v391_v58 = vmul.f32 %v388_v35, %v2078_v34 }
  0x44   :  { %v1766_v60 = vpop.eup %1765  ;;  %v386_v61 = vadd.f32 %v382_v50, %v377_v48  ;;  %v387_v63 = vadd.f32 %v383_v52, %v378_v49  ;;  %v392_v4 = vmul.f32 %v388_v35, %v2083_v38  ;;  %v397_v5 = vstv %s2108_s12  ;;  %s2338_s12 = sld [smem:[#allocation2 + $0x2a]] }
  0x45   :  { %v1768_v6 = vpop.eup %1767  ;;  %v348_v8 = vmul.f32 0.5, %v1766_v60  ;;  %v393_v9 = vadd.f32 %v389_v53, %v384_v54  ;;  %v394_v0 = vadd.f32 %v390_v57, %v385_v55  ;;  %v418_v1 = vstv %s2110_s13  ;;  %s2342_s13 = sld [smem:[#allocation2 + $0x42]] }
  0x46   :  { %v1770_v11 = vpop.eup %1769  ;;  %v349_v13 = vmul.f32 0.5, %v1768_v6  ;;  %v395_v14 = vadd.f32 %v391_v58, %v386_v61  ;;  %v396_v16 = vadd.f32 %v392_v4, %v387_v63  ;;  %v419_v17 = vmul.f32 %v418_v1, %v2005_v10 }
  0x47   :  { %v1772_v18 = vpop.eup %1771  ;;  %v350_v2 = vmul.f32 0.5, %v1770_v11  ;;  %v2136_v20 = vadd.f32 0.5, %v348_v8  ;;  %v398_v22 = vadd.f32 %v397_v5, %v393_v9  ;;  %v399_v23 = vadd.f32 %v397_v5, %v394_v0 }
  0x48   :  { %v351_v25 = vmul.f32 0.5, %v1772_v18  ;;  %v2138_v3 = vadd.f32 0.5, %v349_v13  ;;  %v400_v27 = vadd.f32 %v397_v5, %v395_v14  ;;  %v401_v28 = vadd.f32 %v397_v5, %v396_v16 }
  0x49   :  { %v2140_v31 = vadd.f32 0.5, %v350_v2  ;;  %v402_v32 = vmul.f32 0.5, %v398_v22  ;;  %v403_v35 = vmul.f32 0.5, %v399_v23  ;;  %v420_v36 = vmul.f32 %v418_v1, %v2011_v12 }
  0x4a   :  { %v2145_v37 = vadd.f32 0.5, %v351_v25  ;;  %v404_v40 = vmul.f32 0.5, %v400_v27  ;;  %v405_v41 = vmul.f32 0.5, %v401_v28  ;;  %v421_v42 = vmul.f32 %v418_v1, %v2015_v15 }
  0x4b   :  { %1773 = vtanh.f32 %v402_v32  ;;  %v422_v43 = vmul.f32 %v418_v1, %v2018_v19  ;;  %v423_v45 = vstv %s2121_s14  ;;  %v432_v46 = vstv %s2126_s15  ;;  %s2353_s14 = sld [smem:[#allocation2 + $0x2f]] }
  0x4c   :  { %1775 = vtanh.f32 %v403_v35  ;;  %v424_v48 = vmul.f32 %v423_v45, %v2020_v24  ;;  %v425_v49 = vmul.f32 %v423_v45, %v2024_v21  ;;  %v426_v50 = vmul.f32 %v423_v45, %v2028_v29  ;;  %s2358_s15 = sld [smem:[#allocation2 + $0x34]] }
  0x4d   :  { %1777 = vtanh.f32 %v404_v40  ;;  %v427_v52 = vmul.f32 %v423_v45, %v2032_v33  ;;  %v433_v53 = vmul.f32 %v432_v46, %v2034_v39  ;;  %v434_v54 = vmul.f32 %v432_v46, %v2036_v44 }
  0x4e   :  { %1779 = vtanh.f32 %v405_v41  ;;  %v428_v55 = vadd.f32 %v424_v48, %v419_v17  ;;  %v429_v57 = vadd.f32 %v425_v49, %v420_v36  ;;  %v430_v58 = vadd.f32 %v426_v50, %v421_v42 }
  0x4f   :  { %v431_v60 = vadd.f32 %v427_v52, %v422_v43  ;;  %v435_v61 = vmul.f32 %v432_v46, %v2039_v47  ;;  %v436_v63 = vmul.f32 %v432_v46, %v2042_v51  ;;  %v441_v4 = vstv %s2134_s16  ;;  %s2365_s16 = sld [smem:[#allocation2 + $0x39]] }
  0x50   :  { %v437_v5 = vadd.f32 %v433_v53, %v428_v55  ;;  %v438_v6 = vadd.f32 %v434_v54, %v429_v57  ;;  %v442_v8 = vmul.f32 %v441_v4, %v2047_v56  ;;  %v443_v9 = vmul.f32 %v441_v4, %v2052_v59 }
  0x51   :  { %v1774_v0 = vpop.eup %1773  ;;  %v439_v1 = vadd.f32 %v435_v61, %v430_v58  ;;  %v440_v11 = vadd.f32 %v436_v63, %v431_v60  ;;  %v444_v13 = vmul.f32 %v441_v4, %v2058_v62  ;;  %v445_v14 = vmul.f32 %v441_v4, %v2063_v7 }
  0x52   :  { %v1776_v16 = vpop.eup %1775  ;;  %v410_v17 = vmul.f32 0.5, %v1774_v0  ;;  %v446_v18 = vadd.f32 %v442_v8, %v437_v5  ;;  %v447_v2 = vadd.f32 %v443_v9, %v438_v6  ;;  %v450_v22 = vstv %s2143_s17  ;;  %s2368_s17 = sld [smem:[#allocation2 + $0x3e]] }
  0x53   :  { %v1778_v23 = vpop.eup %1777  ;;  %v411_v25 = vmul.f32 0.5, %v1776_v16  ;;  %v448_v27 = vadd.f32 %v444_v13, %v439_v1  ;;  %v449_v28 = vadd.f32 %v445_v14, %v440_v11  ;;  %v451_v32 = vmul.f32 %v450_v22, %v2072_v26 }
  0x54   :  { %v1780_v35 = vpop.eup %1779  ;;  %v412_v36 = vmul.f32 0.5, %v1778_v23  ;;  %v2174_v40 = vadd.f32 0.5, %v410_v17  ;;  %v452_v41 = vmul.f32 %v450_v22, %v2076_v30  ;;  %v453_v42 = vmul.f32 %v450_v22, %v2078_v34 }
  0x55   :  { %v413_v43 = vmul.f32 0.5, %v1780_v35  ;;  %v2178_v45 = vadd.f32 0.5, %v411_v25  ;;  %v454_v46 = vmul.f32 %v450_v22, %v2083_v38  ;;  %v455_v48 = vadd.f32 %v451_v32, %v446_v18 }
  0x56   :  { %v2181_v49 = vadd.f32 0.5, %v412_v36  ;;  %v456_v50 = vadd.f32 %v452_v41, %v447_v2  ;;  %v457_v52 = vadd.f32 %v453_v42, %v448_v27  ;;  %v459_v53 = vstv %s2157_s18  ;;  %s2385_s18 = sld [smem:[#allocation2 + $0x43]] }
  0x57   :  { %v2186_v54 = vadd.f32 0.5, %v413_v43  ;;  %v458_v55 = vadd.f32 %v454_v46, %v449_v28  ;;  %v460_v57 = vadd.f32 %v459_v53, %v455_v48  ;;  %v480_v58 = vstv %s2159_s19  ;;  %s2388_s19 = sld [smem:[#allocation2 + $0x2b]] }
  0x58   :  { %v461_v60 = vadd.f32 %v459_v53, %v456_v50  ;;  %v462_v61 = vadd.f32 %v459_v53, %v457_v52  ;;  %v481_v63 = vmul.f32 %v480_v58, %v2005_v10  ;;  %v482_v4 = vmul.f32 %v480_v58, %v2011_v12 }
  0x59   :  { %v463_v5 = vadd.f32 %v459_v53, %v458_v55  ;;  %v464_v6 = vmul.f32 0.5, %v460_v57  ;;  %v483_v8 = vmul.f32 %v480_v58, %v2015_v15  ;;  %v484_v9 = vmul.f32 %v480_v58, %v2018_v19 }
  0x5a   :  { %v465_v0 = vmul.f32 0.5, %v461_v60  ;;  %v466_v1 = vmul.f32 0.5, %v462_v61  ;;  %v485_v11 = vstv %s2166_s20  ;;  %v494_v13 = vstv %s2170_s21  ;;  %s2395_s20 = sld [smem:[#allocation2 + $0x30]] }
  0x5b   :  { %v467_v14 = vmul.f32 0.5, %v463_v5  ;;  %1781 = vtanh.f32 %v464_v6  ;;  %v486_v16 = vmul.f32 %v485_v11, %v2020_v24  ;;  %v487_v17 = vmul.f32 %v485_v11, %v2024_v21  ;;  %s2399_s21 = sld [smem:[#allocation2 + $0x35]] }
  0x5c   :  { %1783 = vtanh.f32 %v465_v0  ;;  %v488_v18 = vmul.f32 %v485_v11, %v2028_v29  ;;  %v489_v2 = vmul.f32 %v485_v11, %v2032_v33  ;;  %v495_v22 = vmul.f32 %v494_v13, %v2034_v39 }
  0x5d   :  { %1785 = vtanh.f32 %v466_v1  ;;  %v490_v23 = vadd.f32 %v486_v16, %v481_v63  ;;  %v491_v25 = vadd.f32 %v487_v17, %v482_v4  ;;  %v496_v27 = vmul.f32 %v494_v13, %v2036_v44 }
  0x5e   :  { %1787 = vtanh.f32 %v467_v14  ;;  %v492_v28 = vadd.f32 %v488_v18, %v483_v8  ;;  %v493_v32 = vadd.f32 %v489_v2, %v484_v9  ;;  %v497_v35 = vmul.f32 %v494_v13, %v2039_v47 }
  0x5f   :  { %v498_v36 = vmul.f32 %v494_v13, %v2042_v51  ;;  %v499_v41 = vadd.f32 %v495_v22, %v490_v23  ;;  %v500_v42 = vadd.f32 %v496_v27, %v491_v25  ;;  %v503_v43 = vstv %s2184_s0  ;;  %s2410_s0 = sld [smem:[#allocation2 + $0x3a]] }
  0x60   :  { %v501_v46 = vadd.f32 %v497_v35, %v492_v28  ;;  %v504_v48 = vmul.f32 %v503_v43, %v2047_v56  ;;  %v505_v50 = vmul.f32 %v503_v43, %v2052_v59  ;;  %v506_v52 = vmul.f32 %v503_v43, %v2058_v62 }
  0x61   :  { %v1782_v53 = vpop.eup %1781  ;;  %v502_v55 = vadd.f32 %v498_v36, %v493_v32  ;;  %v507_v57 = vmul.f32 %v503_v43, %v2063_v7  ;;  %v512_v58 = vstv %s2189_s22  ;;  %v521_v60 = vstv %s2193_s23  ;;  %s2416_s22 = sld [smem:[#allocation2 + $0x3f]] }
  0x62   :  { %v1784_v61 = vpop.eup %1783  ;;  %v472_v63 = vmul.f32 0.5, %v1782_v53  ;;  %v508_v4 = vadd.f32 %v504_v48, %v499_v41  ;;  %v509_v5 = vadd.f32 %v505_v50, %v500_v42  ;;  %v510_v6 = vadd.f32 %v506_v52, %v501_v46  ;;  %s2421_s23 = sld [smem:[#allocation2 + $0x44]] }
  0x63   :  { %v1786_v8 = vpop.eup %1785  ;;  %v473_v9 = vmul.f32 0.5, %v1784_v61  ;;  %v511_v0 = vadd.f32 %v507_v57, %v502_v55  ;;  %v513_v1 = vmul.f32 %v512_v58, %v2072_v26  ;;  %v514_v11 = vmul.f32 %v512_v58, %v2076_v30 }
  0x64   :  { %v1788_v13 = vpop.eup %1787  ;;  %v474_v14 = vmul.f32 0.5, %v1786_v8  ;;  %v2222_v16 = vadd.f32 0.5, %v472_v63  ;;  %v515_v17 = vmul.f32 %v512_v58, %v2078_v34  ;;  %v516_v18 = vmul.f32 %v512_v58, %v2083_v38 }
  0x65   :  { %v475_v2 = vmul.f32 0.5, %v1788_v13  ;;  %v2228_v22 = vadd.f32 0.5, %v473_v9  ;;  %v517_v23 = vadd.f32 %v513_v1, %v508_v4  ;;  %v518_v25 = vadd.f32 %v514_v11, %v509_v5 }
  0x66   :  { %v2232_v27 = vadd.f32 0.5, %v474_v14  ;;  %v519_v28 = vadd.f32 %v515_v17, %v510_v6  ;;  %v520_v32 = vadd.f32 %v516_v18, %v511_v0  ;;  %v542_v35 = vstv %s2205_s24  ;;  %s2435_s24 = sld [smem:[#allocation2 + $0x2c]] }
  0x67   :  { %v2237_v36 = vadd.f32 0.5, %v475_v2  ;;  %v522_v41 = vadd.f32 %v521_v60, %v517_v23  ;;  %v523_v42 = vadd.f32 %v521_v60, %v518_v25  ;;  %v543_v43 = vmul.f32 %v542_v35, %v2005_v10 }
  0x68   :  { %v524_v46 = vadd.f32 %v521_v60, %v519_v28  ;;  %v525_v48 = vadd.f32 %v521_v60, %v520_v32  ;;  %v544_v50 = vmul.f32 %v542_v35, %v2011_v12  ;;  %v545_v52 = vmul.f32 %v542_v35, %v2015_v15 }
  0x69   :  { %v526_v53 = vmul.f32 0.5, %v522_v41  ;;  %v527_v55 = vmul.f32 0.5, %v523_v42  ;;  %v546_v57 = vmul.f32 %v542_v35, %v2018_v19  ;;  %v547_v58 = vstv %s2213_s25  ;;  %s2444_s25 = sld [smem:[#allocation2 + $0x31]] }
  0x6a   :  { %v528_v61 = vmul.f32 0.5, %v524_v46  ;;  %v529_v63 = vmul.f32 0.5, %v525_v48  ;;  %v548_v4 = vmul.f32 %v547_v58, %v2020_v24  ;;  %v549_v5 = vmul.f32 %v547_v58, %v2024_v21 }
  0x6b   :  { %1789 = vtanh.f32 %v526_v53  ;;  %v550_v10 = vmul.f32 %v547_v58, %v2028_v29  ;;  %v551_v60 = vmul.f32 %v547_v58, %v2032_v33  ;;  %v556_v12 = vstv %s2218_s26  ;;  %s2450_s26 = sld [smem:[#allocation2 + $0x36]] }
  0x6c   :  { %1791 = vtanh.f32 %v527_v55  ;;  %v552_v15 = vadd.f32 %v548_v4, %v543_v43  ;;  %v553_v6 = vadd.f32 %v549_v5, %v544_v50  ;;  %v557_v19 = vmul.f32 %v556_v12, %v2034_v39 }
  0x6d   :  { %1793 = vtanh.f32 %v528_v61  ;;  %v554_v8 = vadd.f32 %v550_v10, %v545_v52  ;;  %v555_v9 = vadd.f32 %v551_v60, %v546_v57  ;;  %v558_v24 = vmul.f32 %v556_v12, %v2036_v44 }
  0x6e   :  { %1795 = vtanh.f32 %v529_v63  ;;  %v559_v21 = vmul.f32 %v556_v12, %v2039_v47  ;;  %v560_v29 = vmul.f32 %v556_v12, %v2042_v51  ;;  %v561_v33 = vadd.f32 %v557_v19, %v552_v15 }
  0x6f   :  { %v562_v0 = vadd.f32 %v558_v24, %v553_v6  ;;  %v565_v1 = vstv %s2226_s27  ;;  %v574_v11 = vstv %s2230_s1  ;;  %v583_v13 = vstv %s2235_s28  ;;  %s2453_s27 = sld [smem:[#allocation2 + $0x3b]] }
  0x70   :  { %v563_v14 = vadd.f32 %v559_v21, %v554_v8  ;;  %v564_v17 = vadd.f32 %v560_v29, %v555_v9  ;;  %v566_v39 = vmul.f32 %v565_v1, %v2047_v56  ;;  %v567_v18 = vmul.f32 %v565_v1, %v2052_v59  ;;  %s2463_s1 = sld [smem:[#allocation2 + $0x40]] }
  0x71   :  { %v1790_v2 = vpop.eup %1789  ;;  %v568_v44 = vmul.f32 %v565_v1, %v2058_v62  ;;  %v569_v47 = vmul.f32 %v565_v1, %v2063_v7  ;;  %v575_v51 = vmul.f32 %v574_v11, %v2072_v26  ;;  %v576_v23 = vmul.f32 %v574_v11, %v2076_v30  ;;  %s2468_s28 = sld [smem:[#allocation2 + $0x45]] }
  0x72   :  { %v1792_v25 = vpop.eup %1791  ;;  %v534_v28 = vmul.f32 0.5, %v1790_v2  ;;  %v570_v32 = vadd.f32 %v566_v39, %v561_v33  ;;  %v571_v35 = vadd.f32 %v567_v18, %v562_v0  ;;  %v577_v56 = vmul.f32 %v574_v11, %v2078_v34 }
  0x73   :  { %v1794_v59 = vpop.eup %1793  ;;  %v535_v41 = vmul.f32 0.5, %v1792_v25  ;;  %v572_v62 = vadd.f32 %v568_v44, %v563_v14  ;;  %v573_v42 = vadd.f32 %v569_v47, %v564_v17  ;;  %v578_v7 = vmul.f32 %v574_v11, %v2083_v38 }
  0x74   :  { %v1796_v26 = vpop.eup %1795  ;;  %v536_v43 = vmul.f32 0.5, %v1794_v59  ;;  %v2272_v30 = vadd.f32 0.5, %v534_v28  ;;  %v579_v46 = vadd.f32 %v575_v51, %v570_v32  ;;  %v580_v48 = vadd.f32 %v576_v23, %v571_v35 }
  0x75   :  { %v537_v50 = vmul.f32 0.5, %v1796_v26  ;;  %v2274_v52 = vadd.f32 0.5, %v535_v41  ;;  %v581_v53 = vadd.f32 %v577_v56, %v572_v62  ;;  %v582_v34 = vadd.f32 %v578_v7, %v573_v42 }
  0x76   :  { %v2276_v55 = vadd.f32 0.5, %v536_v43  ;;  %v584_v57 = vadd.f32 %v583_v13, %v579_v46  ;;  %v585_v58 = vadd.f32 %v583_v13, %v580_v48  ;;  %v604_v61 = vstv %s2251_s29  ;;  %s2480_s29 = sld [smem:[#allocation2 + $0x46]] }
  0x77   :  { %v2281_v38 = vadd.f32 0.5, %v537_v50  ;;  %v586_v63 = vadd.f32 %v583_v13, %v581_v53  ;;  %v587_v4 = vadd.f32 %v583_v13, %v582_v34  ;;  %v605_v5 = vmul.f32 %v604_v61, %v2136_v20 }
  0x78   :  { %v588_v10 = vmul.f32 0.5, %v584_v57  ;;  %v589_v60 = vmul.f32 0.5, %v585_v58  ;;  %v606_v12 = vmul.f32 %v604_v61, %v2138_v3  ;;  %v607_v15 = vmul.f32 %v604_v61, %v2140_v31 }
  0x79   :  { %v590_v6 = vmul.f32 0.5, %v586_v63  ;;  %v591_v19 = vmul.f32 0.5, %v587_v4  ;;  %v608_v8 = vmul.f32 %v604_v61, %v2145_v37  ;;  %v609_v9 = vstv %s2260_s30  ;;  %s2490_s30 = sld [smem:[#allocation2 + $0x4b]] }
  0x7a   :  { %1797 = vtanh.f32 %v588_v10  ;;  %v610_v24 = vmul.f32 %v609_v9, %v2174_v40  ;;  %v611_v21 = vmul.f32 %v609_v9, %v2178_v45  ;;  %v612_v29 = vmul.f32 %v609_v9, %v2181_v49 }
  0x7b   :  { %1799 = vtanh.f32 %v589_v60  ;;  %v613_v33 = vmul.f32 %v609_v9, %v2186_v54  ;;  %v618_v0 = vstv %s2266_s3  ;;  %v627_v1 = vstv %s2269_s4  ;;  %s2495_s3 = sld [smem:[#allocation2 + $0x50]] }
  0x7c   :  { %1801 = vtanh.f32 %v590_v6  ;;  %v614_v11 = vadd.f32 %v610_v24, %v605_v5  ;;  %v615_v13 = vadd.f32 %v611_v21, %v606_v12  ;;  %v616_v14 = vadd.f32 %v612_v29, %v607_v15  ;;  %s2502_s4 = sld [smem:[#allocation2 + $0x55]] }
  0x7d   :  { %1803 = vtanh.f32 %v591_v19  ;;  %v617_v17 = vadd.f32 %v613_v33, %v608_v8  ;;  %v619_v39 = vmul.f32 %v618_v0, %v2222_v16  ;;  %v620_v18 = vmul.f32 %v618_v0, %v2228_v22 }
  0x7e   :  { %v621_v2 = vmul.f32 %v618_v0, %v2232_v27  ;;  %v622_v44 = vmul.f32 %v618_v0, %v2237_v36  ;;  %v628_v47 = vmul.f32 %v627_v1, %v2272_v30  ;;  %v629_v51 = vmul.f32 %v627_v1, %v2274_v52 }
  0x7f   :  { %v623_v23 = vadd.f32 %v619_v39, %v614_v11  ;;  %v624_v25 = vadd.f32 %v620_v18, %v615_v13  ;;  %v630_v28 = vmul.f32 %v627_v1, %v2276_v55  ;;  %v631_v32 = vmul.f32 %v627_v1, %v2281_v38 }
  0x80   :  { %v1798_v35 = vpop.eup %1797  ;;  %v625_v56 = vadd.f32 %v621_v2, %v616_v14  ;;  %v626_v59 = vadd.f32 %v622_v44, %v617_v17  ;;  %v636_v41 = vstv %s2279_s5  ;;  %v645_v62 = vstv %s2284_s6  ;;  %s2506_s5 = sld [smem:[#allocation2 + $0x5a]] }
  0x81   :  { %v1800_v42 = vpop.eup %1799  ;;  %v596_v7 = vmul.f32 0.5, %v1798_v35  ;;  %v632_v26 = vadd.f32 %v628_v47, %v623_v23  ;;  %v633_v43 = vadd.f32 %v629_v51, %v624_v25  ;;  %v666_v46 = vstv %s2288_s7  ;;  %s2511_s6 = sld [smem:[#allocation2 + $0x5f]] }
  0x82   :  { %v1802_v48 = vpop.eup %1801  ;;  %v597_v50 = vmul.f32 0.5, %v1800_v42  ;;  %v634_v53 = vadd.f32 %v630_v28, %v625_v56  ;;  %v635_v34 = vadd.f32 %v631_v32, %v626_v59  ;;  %v667_v57 = vmul.f32 %v666_v46, %v2136_v20  ;;  %s2516_s7 = sld [smem:[#allocation2 + $0x47]] }
  0x83   :  { %v1804_v58 = vpop.eup %1803  ;;  %v598_v61 = vmul.f32 0.5, %v1802_v48  ;;  %v2316_v63 = vadd.f32 0.5, %v596_v7  ;;  %v668_v4 = vmul.f32 %v666_v46, %v2138_v3  ;;  %v669_v5 = vmul.f32 %v666_v46, %v2140_v31 }
  0x84   :  { %v599_v10 = vmul.f32 0.5, %v1804_v58  ;;  %v2320_v60 = vadd.f32 0.5, %v597_v50  ;;  %v670_v12 = vmul.f32 %v666_v46, %v2145_v37  ;;  %v671_v15 = vstv %s2298_s8  ;;  %s2520_s8 = sld [smem:[#allocation2 + $0x4c]] }
  0x85   :  { %v2324_v6 = vadd.f32 0.5, %v598_v61  ;;  %v637_v19 = vmul.f32 %v636_v41, %v2316_v63  ;;  %v672_v8 = vmul.f32 %v671_v15, %v2174_v40  ;;  %v673_v9 = vmul.f32 %v671_v15, %v2178_v45 }
  0x86   :  { %v2329_v24 = vadd.f32 0.5, %v599_v10  ;;  %v638_v21 = vmul.f32 %v636_v41, %v2320_v60  ;;  %v674_v29 = vmul.f32 %v671_v15, %v2181_v49  ;;  %v675_v33 = vmul.f32 %v671_v15, %v2186_v54 }
  0x87   :  { %v639_v0 = vmul.f32 %v636_v41, %v2324_v6  ;;  %v641_v1 = vadd.f32 %v637_v19, %v632_v26  ;;  %v676_v11 = vadd.f32 %v672_v8, %v667_v57  ;;  %v677_v13 = vadd.f32 %v673_v9, %v668_v4 }
  0x88   :  { %v640_v14 = vmul.f32 %v636_v41, %v2329_v24  ;;  %v642_v17 = vadd.f32 %v638_v21, %v633_v43  ;;  %v678_v39 = vadd.f32 %v674_v29, %v669_v5  ;;  %v679_v18 = vadd.f32 %v675_v33, %v670_v12 }
  0x89   :  { %v643_v2 = vadd.f32 %v639_v0, %v634_v53  ;;  %v646_v44 = vadd.f32 %v645_v62, %v641_v1  ;;  %v680_v47 = vstv %s2308_s9  ;;  %v689_v51 = vstv %s2312_s10  ;;  %s2538_s9 = sld [smem:[#allocation2 + $0x51]] }
  0x8a   :  { %v644_v23 = vadd.f32 %v640_v14, %v635_v34  ;;  %v647_v25 = vadd.f32 %v645_v62, %v642_v17  ;;  %v681_v28 = vmul.f32 %v680_v47, %v2222_v16  ;;  %v682_v32 = vmul.f32 %v680_v47, %v2228_v22  ;;  %s2542_s10 = sld [smem:[#allocation2 + $0x56]] }
  0x8b   :  { %v648_v35 = vadd.f32 %v645_v62, %v643_v2  ;;  %v650_v56 = vmul.f32 0.5, %v646_v44  ;;  %v683_v59 = vmul.f32 %v680_v47, %v2232_v27  ;;  %v684_v41 = vmul.f32 %v680_v47, %v2237_v36 }
  0x8c   :  { %v649_v42 = vadd.f32 %v645_v62, %v644_v23  ;;  %v651_v7 = vmul.f32 0.5, %v647_v25  ;;  %v685_v26 = vadd.f32 %v681_v28, %v676_v11  ;;  %v686_v43 = vadd.f32 %v682_v32, %v677_v13 }
  0x8d   :  { %v652_v46 = vmul.f32 0.5, %v648_v35  ;;  %1805 = vtanh.f32 %v650_v56  ;;  %v687_v48 = vadd.f32 %v683_v59, %v678_v39  ;;  %v688_v50 = vadd.f32 %v684_v41, %v679_v18 }
  0x8e   :  { %v653_v53 = vmul.f32 0.5, %v649_v42  ;;  %1807 = vtanh.f32 %v651_v7  ;;  %v690_v34 = vmul.f32 %v689_v51, %v2272_v30  ;;  %v691_v57 = vmul.f32 %v689_v51, %v2274_v52 }
  0x8f   :  { %1809 = vtanh.f32 %v652_v46  ;;  %v692_v58 = vmul.f32 %v689_v51, %v2276_v55  ;;  %v693_v62 = vmul.f32 %v689_v51, %v2281_v38  ;;  %v698_v61 = vstv %s2334_s11  ;;  %s2563_s11 = sld [smem:[#allocation2 + $0x48]] }
  0x90   :  { %1811 = vtanh.f32 %v653_v53  ;;  %v694_v4 = vadd.f32 %v690_v34, %v685_v26  ;;  %v695_v5 = vadd.f32 %v691_v57, %v686_v43  ;;  %v699_v10 = vmul.f32 %v698_v61, %v2316_v63 }
  0x91   :  { %v696_v12 = vadd.f32 %v692_v58, %v687_v48  ;;  %v697_v15 = vadd.f32 %v693_v62, %v688_v50  ;;  %v700_v19 = vmul.f32 %v698_v61, %v2320_v60  ;;  %v701_v8 = vmul.f32 %v698_v61, %v2324_v6 }
  0x92   :  { %v702_v9 = vmul.f32 %v698_v61, %v2329_v24  ;;  %v703_v21 = vadd.f32 %v699_v10, %v694_v4  ;;  %v707_v29 = vstv %s2342_s13  ;;  %v728_v33 = vstv %s2338_s12  ;;  %s2568_s12 = sld [smem:[#allocation2 + $0x5b]] }
  0x93   :  { %v1806_v0 = vpop.eup %1805  ;;  %v704_v1 = vadd.f32 %v700_v19, %v695_v5  ;;  %v705_v11 = vadd.f32 %v701_v8, %v696_v12  ;;  %v729_v13 = vmul.f32 %v728_v33, %v2136_v20  ;;  %v730_v14 = vmul.f32 %v728_v33, %v2138_v3  ;;  %s2571_s13 = sld [smem:[#allocation2 + $0x4d]] }
  0x94   :  { %v1808_v17 = vpop.eup %1807  ;;  %v658_v39 = vmul.f32 0.5, %v1806_v0  ;;  %v706_v18 = vadd.f32 %v702_v9, %v697_v15  ;;  %v708_v2 = vadd.f32 %v707_v29, %v703_v21  ;;  %v731_v44 = vmul.f32 %v728_v33, %v2140_v31 }
  0x95   :  { %v1810_v47 = vpop.eup %1809  ;;  %v659_v51 = vmul.f32 0.5, %v1808_v17  ;;  %v709_v23 = vadd.f32 %v707_v29, %v704_v1  ;;  %v710_v25 = vadd.f32 %v707_v29, %v705_v11  ;;  %v732_v28 = vmul.f32 %v728_v33, %v2145_v37 }
  0x96   :  { %v1812_v32 = vpop.eup %1811  ;;  %v660_v35 = vmul.f32 0.5, %v1810_v47  ;;  %v2371_v56 = vadd.f32 0.5, %v658_v39  ;;  %v711_v59 = vadd.f32 %v707_v29, %v706_v18  ;;  %v712_v41 = vmul.f32 0.5, %v708_v2 }
  0x97   :  { %v661_v42 = vmul.f32 0.5, %v1812_v32  ;;  %v2373_v7 = vadd.f32 0.5, %v659_v51  ;;  %v713_v26 = vmul.f32 0.5, %v709_v23  ;;  %v714_v43 = vmul.f32 0.5, %v710_v25 }
  0x98   :  { %v2375_v46 = vadd.f32 0.5, %v660_v35  ;;  %v715_v48 = vmul.f32 0.5, %v711_v59  ;;  %1813 = vtanh.f32 %v712_v41  ;;  %v733_v50 = vstv %s2353_s14  ;;  %s2576_s14 = sld [smem:[#allocation2 + $0x60]] }
  0x99   :  { %v2378_v53 = vadd.f32 0.5, %v661_v42  ;;  %1815 = vtanh.f32 %v713_v26  ;;  %v734_v34 = vmul.f32 %v733_v50, %v2174_v40  ;;  %v735_v57 = vmul.f32 %v733_v50, %v2178_v45 }
  0x9a   :  { %1817 = vtanh.f32 %v714_v43  ;;  %v736_v58 = vmul.f32 %v733_v50, %v2181_v49  ;;  %v737_v62 = vmul.f32 %v733_v50, %v2186_v54  ;;  %v742_v61 = vstv %s2358_s15  ;;  %s2581_s15 = sld [smem:[#allocation2 + $0x52]] }
  0x9b   :  { %1819 = vtanh.f32 %v715_v48  ;;  %v738_v4 = vadd.f32 %v734_v34, %v729_v13  ;;  %v739_v5 = vadd.f32 %v735_v57, %v730_v14  ;;  %v743_v10 = vmul.f32 %v742_v61, %v2222_v16 }
  0x9c   :  { %v740_v12 = vadd.f32 %v736_v58, %v731_v44  ;;  %v741_v15 = vadd.f32 %v737_v62, %v732_v28  ;;  %v744_v19 = vmul.f32 %v742_v61, %v2228_v22  ;;  %v745_v8 = vmul.f32 %v742_v61, %v2232_v27 }
  0x9d   :  { %v746_v9 = vmul.f32 %v742_v61, %v2237_v36  ;;  %v747_v21 = vadd.f32 %v743_v10, %v738_v4  ;;  %v751_v29 = vstv %s2365_s16  ;;  %v760_v33 = vstv %s2368_s17  ;;  %s2601_s16 = sld [smem:[#allocation2 + $0x57]] }
  0x9e   :  { %v1814_v0 = vpop.eup %1813  ;;  %v748_v1 = vadd.f32 %v744_v19, %v739_v5  ;;  %v749_v11 = vadd.f32 %v745_v8, %v740_v12  ;;  %v752_v13 = vmul.f32 %v751_v29, %v2272_v30  ;;  %v753_v14 = vmul.f32 %v751_v29, %v2274_v52  ;;  %s2604_s17 = sld [smem:[#allocation2 + $0x5c]] }
  0x9f   :  { %v1816_v17 = vpop.eup %1815  ;;  %v720_v39 = vmul.f32 0.5, %v1814_v0  ;;  %v750_v18 = vadd.f32 %v746_v9, %v741_v15  ;;  %v754_v2 = vmul.f32 %v751_v29, %v2276_v55  ;;  %v755_v44 = vmul.f32 %v751_v29, %v2281_v38 }
  0xa0   :  { %v1818_v47 = vpop.eup %1817  ;;  %v721_v51 = vmul.f32 0.5, %v1816_v17  ;;  %v756_v23 = vadd.f32 %v752_v13, %v747_v21  ;;  %v757_v25 = vadd.f32 %v753_v14, %v748_v1  ;;  %v761_v28 = vmul.f32 %v760_v33, %v2316_v63 }
  0xa1   :  { %v1820_v32 = vpop.eup %1819  ;;  %v722_v35 = vmul.f32 0.5, %v1818_v47  ;;  %v2404_v59 = vadd.f32 0.5, %v720_v39  ;;  %v758_v41 = vadd.f32 %v754_v2, %v749_v11  ;;  %v759_v42 = vadd.f32 %v755_v44, %v750_v18 }
  0xa2   :  { %v723_v26 = vmul.f32 0.5, %v1820_v32  ;;  %v2406_v43 = vadd.f32 0.5, %v721_v51  ;;  %v762_v48 = vmul.f32 %v760_v33, %v2320_v60  ;;  %v763_v50 = vmul.f32 %v760_v33, %v2324_v6 }
  0xa3   :  { %v2412_v34 = vadd.f32 0.5, %v722_v35  ;;  %v764_v57 = vmul.f32 %v760_v33, %v2329_v24  ;;  %v765_v58 = vadd.f32 %v761_v28, %v756_v23  ;;  %v769_v62 = vstv %s2385_s18  ;;  %s2608_s18 = sld [smem:[#allocation2 + $0x61]] }
  0xa4   :  { %v2418_v61 = vadd.f32 0.5, %v723_v26  ;;  %v766_v4 = vadd.f32 %v762_v48, %v757_v25  ;;  %v767_v5 = vadd.f32 %v763_v50, %v758_v41  ;;  %v790_v10 = vstv %s2388_s19  ;;  %s2624_s19 = sld [smem:[#allocation2 + $0x49]] }
  0xa5   :  { %v768_v12 = vadd.f32 %v764_v57, %v759_v42  ;;  %v770_v15 = vadd.f32 %v769_v62, %v765_v58  ;;  %v791_v19 = vmul.f32 %v790_v10, %v2136_v20  ;;  %v792_v8 = vmul.f32 %v790_v10, %v2138_v3 }
  0xa6   :  { %v771_v9 = vadd.f32 %v769_v62, %v766_v4  ;;  %v772_v21 = vadd.f32 %v769_v62, %v767_v5  ;;  %v793_v29 = vmul.f32 %v790_v10, %v2140_v31  ;;  %v794_v33 = vmul.f32 %v790_v10, %v2145_v37 }
  0xa7   :  { %v773_v0 = vadd.f32 %v769_v62, %v768_v12  ;;  %v774_v1 = vmul.f32 0.5, %v770_v15  ;;  %v795_v11 = vstv %s2395_s20  ;;  %v804_v13 = vstv %s2399_s21  ;;  %s2632_s20 = sld [smem:[#allocation2 + $0x4e]] }
  0xa8   :  { %v775_v14 = vmul.f32 0.5, %v771_v9  ;;  %v776_v17 = vmul.f32 0.5, %v772_v21  ;;  %v796_v39 = vmul.f32 %v795_v11, %v2174_v40  ;;  %v797_v18 = vmul.f32 %v795_v11, %v2178_v45  ;;  %s2640_s21 = sld [smem:[#allocation2 + $0x53]] }
  0xa9   :  { %v777_v2 = vmul.f32 0.5, %v773_v0  ;;  %1821 = vtanh.f32 %v774_v1  ;;  %v798_v44 = vmul.f32 %v795_v11, %v2181_v49  ;;  %v799_v47 = vmul.f32 %v795_v11, %v2186_v54 }
  0xaa   :  { %1823 = vtanh.f32 %v775_v14  ;;  %v800_v51 = vadd.f32 %v796_v39, %v791_v19  ;;  %v801_v23 = vadd.f32 %v797_v18, %v792_v8  ;;  %v805_v25 = vmul.f32 %v804_v13, %v2222_v16 }
  0xab   :  { %1825 = vtanh.f32 %v776_v17  ;;  %v802_v28 = vadd.f32 %v798_v44, %v793_v29  ;;  %v803_v32 = vadd.f32 %v799_v47, %v794_v33  ;;  %v806_v35 = vmul.f32 %v804_v13, %v2228_v22 }
  0xac   :  { %1827 = vtanh.f32 %v777_v2  ;;  %v807_v41 = vmul.f32 %v804_v13, %v2232_v27  ;;  %v808_v42 = vmul.f32 %v804_v13, %v2237_v36  ;;  %v809_v26 = vadd.f32 %v805_v25, %v800_v51 }
  0xad   :  { %v810_v48 = vadd.f32 %v806_v35, %v801_v23  ;;  %v813_v50 = vstv %s2410_s0  ;;  %v822_v57 = vstv %s2416_s22  ;;  %v831_v58 = vstv %s2421_s23  ;;  %s2648_s0 = sld [smem:[#allocation2 + $0x58]] }
  0xae   :  { %v811_v62 = vadd.f32 %v807_v41, %v802_v28  ;;  %v812_v4 = vadd.f32 %v808_v42, %v803_v32  ;;  %v814_v5 = vmul.f32 %v813_v50, %v2272_v30  ;;  %v815_v10 = vmul.f32 %v813_v50, %v2274_v52  ;;  %s2653_s22 = sld [smem:[#allocation2 + $0x5d]] }
  0xaf   :  { %v1822_v12 = vpop.eup %1821  ;;  %v816_v15 = vmul.f32 %v813_v50, %v2276_v55  ;;  %v817_v19 = vmul.f32 %v813_v50, %v2281_v38  ;;  %v823_v8 = vmul.f32 %v822_v57, %v2316_v63  ;;  %v824_v9 = vmul.f32 %v822_v57, %v2320_v60  ;;  %s2664_s23 = sld [smem:[#allocation2 + $0x4a]] }
  0xb0   :  { %v1824_v21 = vpop.eup %1823  ;;  %v782_v29 = vmul.f32 0.5, %v1822_v12  ;;  %v818_v33 = vadd.f32 %v814_v5, %v809_v26  ;;  %v819_v0 = vadd.f32 %v815_v10, %v810_v48  ;;  %v825_v1 = vmul.f32 %v822_v57, %v2324_v6 }
  0xb1   :  { %v1826_v11 = vpop.eup %1825  ;;  %v783_v13 = vmul.f32 0.5, %v1824_v21  ;;  %v820_v14 = vadd.f32 %v816_v15, %v811_v62  ;;  %v821_v17 = vadd.f32 %v817_v19, %v812_v4  ;;  %v826_v39 = vmul.f32 %v822_v57, %v2329_v24 }
  0xb2   :  { %v1828_v18 = vpop.eup %1827  ;;  %v784_v2 = vmul.f32 0.5, %v1826_v11  ;;  %v2456_v44 = vadd.f32 0.5, %v782_v29  ;;  %v827_v47 = vadd.f32 %v823_v8, %v818_v33  ;;  %v828_v51 = vadd.f32 %v824_v9, %v819_v0 }
  0xb3   :  { %v785_v23 = vmul.f32 0.5, %v1828_v18  ;;  %v2458_v25 = vadd.f32 0.5, %v783_v13  ;;  %v829_v28 = vadd.f32 %v825_v1, %v820_v14  ;;  %v830_v32 = vadd.f32 %v826_v39, %v821_v17 }
  0xb4   :  { %v2460_v35 = vadd.f32 0.5, %v784_v2  ;;  %v832_v41 = vadd.f32 %v831_v58, %v827_v47  ;;  %v833_v42 = vadd.f32 %v831_v58, %v828_v51  ;;  %v852_v26 = vstv %s2435_s24  ;;  %s2668_s24 = sld [smem:[#allocation2 + $0x62]] }
  0xb5   :  { %v2465_v48 = vadd.f32 0.5, %v785_v23  ;;  %v834_v50 = vadd.f32 %v831_v58, %v829_v28  ;;  %v835_v57 = vadd.f32 %v831_v58, %v830_v32  ;;  %v853_v62 = vmul.f32 %v852_v26, %v2136_v20 }
  0xb6   :  { %v836_v4 = vmul.f32 0.5, %v832_v41  ;;  %v837_v5 = vmul.f32 0.5, %v833_v42  ;;  %v854_v10 = vmul.f32 %v852_v26, %v2138_v3  ;;  %v855_v12 = vmul.f32 %v852_v26, %v2140_v31 }
  0xb7   :  { %v838_v15 = vmul.f32 0.5, %v834_v50  ;;  %v839_v19 = vmul.f32 0.5, %v835_v57  ;;  %v856_v8 = vmul.f32 %v852_v26, %v2145_v37  ;;  %v857_v9 = vstv %s2444_s25  ;;  %s2678_s25 = sld [smem:[#allocation2 + $0x4f]] }
  0xb8   :  { %1829 = vtanh.f32 %v836_v4  ;;  %v858_v58 = vmul.f32 %v857_v9, %v2174_v40  ;;  %v859_v20 = vmul.f32 %v857_v9, %v2178_v45  ;;  %v860_v21 = vmul.f32 %v857_v9, %v2181_v49 }
  0xb9   :  { %1831 = vtanh.f32 %v837_v5  ;;  %v861_v29 = vmul.f32 %v857_v9, %v2186_v54  ;;  %v866_v33 = vstv %s2450_s26  ;;  %v875_v0 = vstv %s2453_s27  ;;  %s2684_s26 = sld [smem:[#allocation2 + $0x54]] }
  0xba   :  { %1833 = vtanh.f32 %v838_v15  ;;  %v862_v3 = vadd.f32 %v858_v58, %v853_v62  ;;  %v863_v31 = vadd.f32 %v859_v20, %v854_v10  ;;  %v864_v1 = vadd.f32 %v860_v21, %v855_v12  ;;  %s2693_s27 = sld [smem:[#allocation2 + $0x59]] }
  0xbb   :  { %1835 = vtanh.f32 %v839_v19  ;;  %v865_v37 = vadd.f32 %v861_v29, %v856_v8  ;;  %v867_v40 = vmul.f32 %v866_v33, %v2222_v16  ;;  %v868_v45 = vmul.f32 %v866_v33, %v2228_v22 }
  0xbc   :  { %v869_v49 = vmul.f32 %v866_v33, %v2232_v27  ;;  %v870_v54 = vmul.f32 %v866_v33, %v2237_v36  ;;  %v876_v11 = vmul.f32 %v875_v0, %v2272_v30  ;;  %v877_v13 = vmul.f32 %v875_v0, %v2274_v52 }
  0xbd   :  { %v871_v14 = vadd.f32 %v867_v40, %v862_v3  ;;  %v872_v17 = vadd.f32 %v868_v45, %v863_v31  ;;  %v878_v39 = vmul.f32 %v875_v0, %v2276_v55  ;;  %v879_v18 = vmul.f32 %v875_v0, %v2281_v38 }
  0xbe   :  { %v1830_v2 = vpop.eup %1829  ;;  %v873_v16 = vadd.f32 %v869_v49, %v864_v1  ;;  %v874_v47 = vadd.f32 %v870_v54, %v865_v37  ;;  %v884_v22 = vstv %s2463_s1  ;;  %v893_v51 = vstv %s2468_s28  ;;  %s2703_s1 = sld [smem:[#allocation2 + $0x5e]] }
  0xbf   :  { %v1832_v27 = vpop.eup %1831  ;;  %v844_v23 = vmul.f32 0.5, %v1830_v2  ;;  %v880_v36 = vadd.f32 %v876_v11, %v871_v14  ;;  %v881_v28 = vadd.f32 %v877_v13, %v872_v17  ;;  %v885_v30 = vmul.f32 %v884_v22, %v2316_v63  ;;  %s2715_s28 = sld [smem:[#allocation2 + $0x63]] }
  0xc0   :  { %v1834_v52 = vpop.eup %1833  ;;  %v845_v32 = vmul.f32 0.5, %v1832_v27  ;;  %v882_v55 = vadd.f32 %v878_v39, %v873_v16  ;;  %v883_v41 = vadd.f32 %v879_v18, %v874_v47  ;;  %v886_v38 = vmul.f32 %v884_v22, %v2320_v60 }
  0xc1   :  { %v1836_v42 = vpop.eup %1835  ;;  %v846_v26 = vmul.f32 0.5, %v1834_v52  ;;  %v2498_v50 = vadd.f32 0.5, %v844_v23  ;;  %v887_v57 = vmul.f32 %v884_v22, %v2324_v6  ;;  %v888_v62 = vmul.f32 %v884_v22, %v2329_v24 }
  0xc2   :  { %v847_v63 = vmul.f32 0.5, %v1836_v42  ;;  %v2504_v4 = vadd.f32 0.5, %v845_v32  ;;  %v889_v5 = vadd.f32 %v885_v30, %v880_v36  ;;  %v890_v10 = vadd.f32 %v886_v38, %v881_v28 }
  0xc3   :  { %v2508_v12 = vadd.f32 0.5, %v846_v26  ;;  %v891_v60 = vadd.f32 %v887_v57, %v882_v55  ;;  %v892_v15 = vadd.f32 %v888_v62, %v883_v41  ;;  %v914_v19 = vstv %s2480_s29  ;;  %s2717_s29 = sld [smem:[#allocation2 + $0x64]] }
  0xc4   :  { %v2513_v6 = vadd.f32 0.5, %v847_v63  ;;  %v894_v24 = vadd.f32 %v893_v51, %v889_v5  ;;  %v895_v8 = vadd.f32 %v893_v51, %v890_v10  ;;  %v915_v9 = vmul.f32 %v914_v19, %v2371_v56 }
  0xc5   :  { %v896_v58 = vadd.f32 %v893_v51, %v891_v60  ;;  %v897_v20 = vadd.f32 %v893_v51, %v892_v15  ;;  %v916_v21 = vmul.f32 %v914_v19, %v2373_v7  ;;  %v917_v29 = vmul.f32 %v914_v19, %v2375_v46 }
  0xc6   :  { %v898_v33 = vmul.f32 0.5, %v894_v24  ;;  %v899_v0 = vmul.f32 0.5, %v895_v8  ;;  %v918_v3 = vmul.f32 %v914_v19, %v2378_v53  ;;  %v919_v31 = vstv %s2490_s30  ;;  %s2724_s30 = sld [smem:[#allocation2 + $0x69]] }
  0xc7   :  { %v900_v1 = vmul.f32 0.5, %v896_v58  ;;  %v901_v37 = vmul.f32 0.5, %v897_v20  ;;  %v920_v40 = vmul.f32 %v919_v31, %v2404_v59  ;;  %v921_v45 = vmul.f32 %v919_v31, %v2406_v43 }
  0xc8   :  { %1837 = vtanh.f32 %v898_v33  ;;  %v922_v49 = vmul.f32 %v919_v31, %v2412_v34  ;;  %v923_v54 = vmul.f32 %v919_v31, %v2418_v61  ;;  %v928_v11 = vstv %s2495_s3  ;;  %s2728_s3 = sld [smem:[#allocation2 + $0x6e]] }
  0xc9   :  { %1839 = vtanh.f32 %v899_v0  ;;  %v924_v13 = vadd.f32 %v920_v40, %v915_v9  ;;  %v925_v14 = vadd.f32 %v921_v45, %v916_v21  ;;  %v929_v17 = vmul.f32 %v928_v11, %v2456_v44 }
  0xca   :  { %1841 = vtanh.f32 %v900_v1  ;;  %v926_v39 = vadd.f32 %v922_v49, %v917_v29  ;;  %v927_v18 = vadd.f32 %v923_v54, %v918_v3  ;;  %v930_v2 = vmul.f32 %v928_v11, %v2458_v25 }
  0xcb   :  { %1843 = vtanh.f32 %v901_v37  ;;  %v931_v16 = vmul.f32 %v928_v11, %v2460_v35  ;;  %v932_v47 = vmul.f32 %v928_v11, %v2465_v48  ;;  %v933_v22 = vadd.f32 %v929_v17, %v924_v13 }
  0xcc   :  { %v934_v51 = vadd.f32 %v930_v2, %v925_v14  ;;  %v937_v27 = vstv %s2502_s4  ;;  %v946_v23 = vstv %s2506_s5  ;;  %v2536_v36 = vstv %s2511_s6  ;;  %s2742_s4 = sld [smem:[#allocation2 + $0x73]] }
  0xcd   :  { %v935_v28 = vadd.f32 %v931_v16, %v926_v39  ;;  %v936_v30 = vadd.f32 %v932_v47, %v927_v18  ;;  %v938_v52 = vmul.f32 %v937_v27, %v2498_v50  ;;  %v939_v32 = vmul.f32 %v937_v27, %v2504_v4  ;;  %s2747_s5 = sld [smem:[#allocation2 + $0x78]] }
  0xce   :  { %v1838_v55 = vpop.eup %1837  ;;  %v940_v41 = vmul.f32 %v937_v27, %v2508_v12  ;;  %v941_v38 = vmul.f32 %v937_v27, %v2513_v6  ;;  %v976_v42 = vstv %s2516_s7  ;;  %v981_v26 = vstv %s2520_s8  ;;  %s2751_s6 = sld [smem:[#allocation2 + $0x7d]] }
  0xcf   :  { %v1840_v57 = vpop.eup %1839  ;;  %v906_v62 = vmul.f32 0.5, %v1838_v55  ;;  %v942_v63 = vadd.f32 %v938_v52, %v933_v22  ;;  %v943_v5 = vadd.f32 %v939_v32, %v934_v51  ;;  %v977_v10 = vmul.f32 %v976_v42, %v2371_v56  ;;  %s2755_s7 = sld [smem:[#allocation2 + $0x65]] }
  0xd0   :  { %v1842_v60 = vpop.eup %1841  ;;  %v907_v15 = vmul.f32 0.5, %v1840_v57  ;;  %v944_v19 = vadd.f32 %v940_v41, %v935_v28  ;;  %v945_v24 = vadd.f32 %v941_v38, %v936_v30  ;;  %v978_v8 = vmul.f32 %v976_v42, %v2373_v7  ;;  %s2759_s8 = sld [smem:[#allocation2 + $0x6a]] }
  0xd1   :  { %v1844_v9 = vpop.eup %1843  ;;  %v908_v58 = vmul.f32 0.5, %v1842_v60  ;;  %v2550_v20 = vadd.f32 0.5, %v906_v62  ;;  %v979_v21 = vmul.f32 %v976_v42, %v2375_v46  ;;  %v980_v29 = vmul.f32 %v976_v42, %v2378_v53 }
  0xd2   :  { %v909_v33 = vmul.f32 0.5, %v1844_v9  ;;  %v2554_v0 = vadd.f32 0.5, %v907_v15  ;;  %v982_v3 = vmul.f32 %v981_v26, %v2404_v59  ;;  %v983_v31 = vmul.f32 %v981_v26, %v2406_v43 }
  0xd3   :  { %v2558_v1 = vadd.f32 0.5, %v908_v58  ;;  %v947_v37 = vmul.f32 %v946_v23, %v2550_v20  ;;  %v984_v40 = vmul.f32 %v981_v26, %v2412_v34  ;;  %v985_v45 = vmul.f32 %v981_v26, %v2418_v61 }
  0xd4   :  { %v2565_v49 = vadd.f32 0.5, %v909_v33  ;;  %v948_v54 = vmul.f32 %v946_v23, %v2554_v0  ;;  %v986_v11 = vadd.f32 %v982_v3, %v977_v10  ;;  %v987_v13 = vadd.f32 %v983_v31, %v978_v8 }
  0xd5   :  { %v949_v14 = vmul.f32 %v946_v23, %v2558_v1  ;;  %v951_v17 = vadd.f32 %v947_v37, %v942_v63  ;;  %v988_v39 = vadd.f32 %v984_v40, %v979_v21  ;;  %v989_v18 = vadd.f32 %v985_v45, %v980_v29 }
  0xd6   :  { %v950_v2 = vmul.f32 %v946_v23, %v2565_v49  ;;  %v952_v16 = vadd.f32 %v948_v54, %v943_v5  ;;  %v990_v47 = vstv %s2538_s9  ;;  %v999_v22 = vstv %s2542_s10  ;;  %s2773_s9 = sld [smem:[#allocation2 + $0x6f]] }
  0xd7   :  { %v953_v51 = vadd.f32 %v949_v14, %v944_v19  ;;  %v956_v27 = vadd.f32 %v2536_v36, %v951_v17  ;;  %v991_v28 = vmul.f32 %v990_v47, %v2456_v44  ;;  %v992_v30 = vmul.f32 %v990_v47, %v2458_v25  ;;  %s2778_s10 = sld [smem:[#allocation2 + $0x74]] }
  0xd8   :  { %v954_v52 = vadd.f32 %v950_v2, %v945_v24  ;;  %v957_v32 = vadd.f32 %v2536_v36, %v952_v16  ;;  %v993_v55 = vmul.f32 %v990_v47, %v2460_v35  ;;  %v994_v23 = vmul.f32 %v990_v47, %v2465_v48 }
  0xd9   :  { %v958_v41 = vadd.f32 %v2536_v36, %v953_v51  ;;  %v960_v38 = vmul.f32 0.5, %v956_v27  ;;  %v995_v42 = vadd.f32 %v991_v28, %v986_v11  ;;  %v996_v26 = vadd.f32 %v992_v30, %v987_v13 }
  0xda   :  { %v959_v57 = vadd.f32 %v2536_v36, %v954_v52  ;;  %v961_v62 = vmul.f32 0.5, %v957_v32  ;;  %v997_v63 = vadd.f32 %v993_v55, %v988_v39  ;;  %v998_v5 = vadd.f32 %v994_v23, %v989_v18 }
  0xdb   :  { %v962_v10 = vmul.f32 0.5, %v958_v41  ;;  %1845 = vtanh.f32 %v960_v38  ;;  %v1000_v60 = vmul.f32 %v999_v22, %v2498_v50  ;;  %v1001_v15 = vmul.f32 %v999_v22, %v2504_v4 }
  0xdc   :  { %v963_v19 = vmul.f32 0.5, %v959_v57  ;;  %1847 = vtanh.f32 %v961_v62  ;;  %v1002_v24 = vmul.f32 %v999_v22, %v2508_v12  ;;  %v1003_v8 = vmul.f32 %v999_v22, %v2513_v6 }
  0xdd   :  { %1849 = vtanh.f32 %v962_v10  ;;  %v1004_v36 = vadd.f32 %v1000_v60, %v995_v42  ;;  %v1005_v9 = vadd.f32 %v1001_v15, %v996_v26  ;;  %v1008_v58 = vstv %s2568_s12  ;;  %s2804_s12 = sld [smem:[#allocation2 + $0x66]] }
  0xde   :  { %1851 = vtanh.f32 %v963_v19  ;;  %v1006_v21 = vadd.f32 %v1002_v24, %v997_v63  ;;  %v1007_v29 = vadd.f32 %v1003_v8, %v998_v5  ;;  %v1009_v33 = vmul.f32 %v1008_v58, %v2550_v20 }
  0xdf   :  { %v1010_v3 = vmul.f32 %v1008_v58, %v2554_v0  ;;  %v1011_v31 = vmul.f32 %v1008_v58, %v2558_v1  ;;  %v1012_v37 = vmul.f32 %v1008_v58, %v2565_v49  ;;  %v1017_v40 = vstv %s2576_s14  ;;  %s2819_s14 = sld [smem:[#allocation2 + $0x6b]] }
  0xe0   :  { %v1013_v45 = vadd.f32 %v1009_v33, %v1004_v36  ;;  %v1038_v54 = vstv %s2563_s11  ;;  %v1043_v11 = vstv %s2571_s13  ;;  %v1052_v13 = vstv %s2581_s15  ;;  %s2800_s11 = sld [smem:[#allocation2 + $0x79]] }
  0xe1   :  { %v1846_v14 = vpop.eup %1845  ;;  %v1014_v17 = vadd.f32 %v1010_v3, %v1005_v9  ;;  %v1015_v39 = vadd.f32 %v1011_v31, %v1006_v21  ;;  %v1016_v18 = vadd.f32 %v1012_v37, %v1007_v29  ;;  %v1039_v2 = vmul.f32 %v1038_v54, %v2371_v56  ;;  %s2808_s13 = sld [smem:[#allocation2 + $0x7e]] }
  0xe2   :  { %v1848_v16 = vpop.eup %1847  ;;  %v968_v47 = vmul.f32 0.5, %v1846_v14  ;;  %v1018_v22 = vadd.f32 %v1017_v40, %v1013_v45  ;;  %v1040_v51 = vmul.f32 %v1038_v54, %v2373_v7  ;;  %v1041_v27 = vmul.f32 %v1038_v54, %v2375_v46  ;;  %s2824_s15 = sld [smem:[#allocation2 + $0x70]] }
  0xe3   :  { %v1850_v28 = vpop.eup %1849  ;;  %v969_v30 = vmul.f32 0.5, %v1848_v16  ;;  %v1019_v52 = vadd.f32 %v1017_v40, %v1014_v17  ;;  %v1020_v32 = vadd.f32 %v1017_v40, %v1015_v39  ;;  %v1021_v55 = vadd.f32 %v1017_v40, %v1016_v18 }
  0xe4   :  { %v1852_v23 = vpop.eup %1851  ;;  %v970_v41 = vmul.f32 0.5, %v1850_v28  ;;  %v2610_v38 = vadd.f32 0.5, %v968_v47  ;;  %v1022_v42 = vmul.f32 0.5, %v1018_v22  ;;  %v1042_v26 = vmul.f32 %v1038_v54, %v2378_v53 }
  0xe5   :  { %v971_v57 = vmul.f32 0.5, %v1852_v23  ;;  %v2613_v62 = vadd.f32 0.5, %v969_v30  ;;  %v1023_v63 = vmul.f32 0.5, %v1019_v52  ;;  %v1024_v5 = vmul.f32 0.5, %v1020_v32 }
  0xe6   :  { %v2615_v10 = vadd.f32 0.5, %v970_v41  ;;  %v1025_v60 = vmul.f32 0.5, %v1021_v55  ;;  %1853 = vtanh.f32 %v1022_v42  ;;  %v1044_v15 = vmul.f32 %v1043_v11, %v2404_v59 }
  0xe7   :  { %v2618_v19 = vadd.f32 0.5, %v971_v57  ;;  %1855 = vtanh.f32 %v1023_v63  ;;  %v1045_v24 = vmul.f32 %v1043_v11, %v2406_v43  ;;  %v1046_v8 = vmul.f32 %v1043_v11, %v2412_v34 }
  0xe8   :  { %1857 = vtanh.f32 %v1024_v5  ;;  %v1047_v36 = vmul.f32 %v1043_v11, %v2418_v61  ;;  %v1048_v9 = vadd.f32 %v1044_v15, %v1039_v2  ;;  %v1053_v58 = vmul.f32 %v1052_v13, %v2456_v44 }
  0xe9   :  { %1859 = vtanh.f32 %v1025_v60  ;;  %v1049_v21 = vadd.f32 %v1045_v24, %v1040_v51  ;;  %v1050_v29 = vadd.f32 %v1046_v8, %v1041_v27  ;;  %v1054_v33 = vmul.f32 %v1052_v13, %v2458_v25 }
  0xea   :  { %v1051_v3 = vadd.f32 %v1047_v36, %v1042_v26  ;;  %v1055_v31 = vmul.f32 %v1052_v13, %v2460_v35  ;;  %v1056_v37 = vmul.f32 %v1052_v13, %v2465_v48  ;;  %v1057_v40 = vadd.f32 %v1053_v58, %v1048_v9 }
  0xeb   :  { %v1058_v45 = vadd.f32 %v1054_v33, %v1049_v21  ;;  %v1061_v54 = vstv %s2601_s16  ;;  %v1070_v14 = vstv %s2604_s17  ;;  %v1079_v11 = vstv %s2608_s18  ;;  %s2829_s16 = sld [smem:[#allocation2 + $0x75]] }
  0xec   :  { %v1854_v17 = vpop.eup %1853  ;;  %v1059_v39 = vadd.f32 %v1055_v31, %v1050_v29  ;;  %v1060_v18 = vadd.f32 %v1056_v37, %v1051_v3  ;;  %v1062_v2 = vmul.f32 %v1061_v54, %v2498_v50  ;;  %v1063_v16 = vmul.f32 %v1061_v54, %v2504_v4  ;;  %s2831_s17 = sld [smem:[#allocation2 + $0x7a]] }
  0xed   :  { %v1856_v47 = vpop.eup %1855  ;;  %v1030_v22 = vmul.f32 0.5, %v1854_v17  ;;  %v1064_v51 = vmul.f32 %v1061_v54, %v2508_v12  ;;  %v1065_v13 = vmul.f32 %v1061_v54, %v2513_v6  ;;  %v1071_v27 = vmul.f32 %v1070_v14, %v2550_v20  ;;  %s2845_s18 = sld [smem:[#allocation2 + $0x7f]] }
  0xee   :  { %v1858_v28 = vpop.eup %1857  ;;  %v1031_v30 = vmul.f32 0.5, %v1856_v47  ;;  %v1066_v52 = vadd.f32 %v1062_v2, %v1057_v40  ;;  %v1067_v32 = vadd.f32 %v1063_v16, %v1058_v45  ;;  %v1072_v55 = vmul.f32 %v1070_v14, %v2554_v0 }
  0xef   :  { %v1860_v23 = vpop.eup %1859  ;;  %v1032_v41 = vmul.f32 0.5, %v1858_v28  ;;  %v2642_v42 = vadd.f32 0.5, %v1030_v22  ;;  %v1068_v26 = vadd.f32 %v1064_v51, %v1059_v39  ;;  %v1069_v57 = vadd.f32 %v1065_v13, %v1060_v18 }
  0xf0   :  { %v1033_v63 = vmul.f32 0.5, %v1860_v23  ;;  %v2644_v5 = vadd.f32 0.5, %v1031_v30  ;;  %v1073_v60 = vmul.f32 %v1070_v14, %v2558_v1  ;;  %v1074_v15 = vmul.f32 %v1070_v14, %v2565_v49 }
  0xf1   :  { %v2650_v24 = vadd.f32 0.5, %v1032_v41  ;;  %v1075_v8 = vadd.f32 %v1071_v27, %v1066_v52  ;;  %v1076_v36 = vadd.f32 %v1072_v55, %v1067_v32  ;;  %v1100_v9 = vstv %s2624_s19  ;;  %s2848_s19 = sld [smem:[#allocation2 + $0x67]] }
  0xf2   :  { %v2655_v58 = vadd.f32 0.5, %v1033_v63  ;;  %v1077_v21 = vadd.f32 %v1073_v60, %v1068_v26  ;;  %v1078_v29 = vadd.f32 %v1074_v15, %v1069_v57  ;;  %v1101_v33 = vmul.f32 %v1100_v9, %v2371_v56 }
  0xf3   :  { %v1080_v3 = vadd.f32 %v1079_v11, %v1075_v8  ;;  %v1081_v31 = vadd.f32 %v1079_v11, %v1076_v36  ;;  %v1102_v37 = vmul.f32 %v1100_v9, %v2373_v7  ;;  %v1103_v40 = vmul.f32 %v1100_v9, %v2375_v46 }
  0xf4   :  { %v1082_v45 = vadd.f32 %v1079_v11, %v1077_v21  ;;  %v1083_v54 = vadd.f32 %v1079_v11, %v1078_v29  ;;  %v1104_v14 = vmul.f32 %v1100_v9, %v2378_v53  ;;  %v1105_v17 = vstv %s2632_s20  ;;  %s2855_s20 = sld [smem:[#allocation2 + $0x6c]] }
  0xf5   :  { %v1084_v39 = vmul.f32 0.5, %v1080_v3  ;;  %v1085_v18 = vmul.f32 0.5, %v1081_v31  ;;  %v1106_v2 = vmul.f32 %v1105_v17, %v2404_v59  ;;  %v1107_v16 = vmul.f32 %v1105_v17, %v2406_v43 }
  0xf6   :  { %v1086_v47 = vmul.f32 0.5, %v1082_v45  ;;  %v1087_v22 = vmul.f32 0.5, %v1083_v54  ;;  %v1108_v51 = vmul.f32 %v1105_v17, %v2412_v34  ;;  %v1109_v13 = vmul.f32 %v1105_v17, %v2418_v61 }
  0xf7   :  { %1861 = vtanh.f32 %v1084_v39  ;;  %v1110_v11 = vadd.f32 %v1106_v2, %v1101_v33  ;;  %v1111_v27 = vadd.f32 %v1107_v16, %v1102_v37  ;;  %v1114_v28 = vstv %s2640_s21  ;;  %s2859_s21 = sld [smem:[#allocation2 + $0x71]] }
  0xf8   :  { %1863 = vtanh.f32 %v1085_v18  ;;  %v1112_v30 = vadd.f32 %v1108_v51, %v1103_v40  ;;  %v1113_v52 = vadd.f32 %v1109_v13, %v1104_v14  ;;  %v1115_v32 = vmul.f32 %v1114_v28, %v2456_v44 }
  0xf9   :  { %1865 = vtanh.f32 %v1086_v47  ;;  %v1116_v55 = vmul.f32 %v1114_v28, %v2458_v25  ;;  %v1117_v23 = vmul.f32 %v1114_v28, %v2460_v35  ;;  %v1118_v41 = vmul.f32 %v1114_v28, %v2465_v48 }
  0xfa   :  { %1867 = vtanh.f32 %v1087_v22  ;;  %v1119_v26 = vadd.f32 %v1115_v32, %v1110_v11  ;;  %v1123_v57 = vstv %s2648_s0  ;;  %v1132_v63 = vstv %s2653_s22  ;;  %s2878_s0 = sld [smem:[#allocation2 + $0x76]] }
  0xfb   :  { %v1120_v60 = vadd.f32 %v1116_v55, %v1111_v27  ;;  %v1121_v15 = vadd.f32 %v1117_v23, %v1112_v30  ;;  %v1122_v8 = vadd.f32 %v1118_v41, %v1113_v52  ;;  %v1124_v36 = vmul.f32 %v1123_v57, %v2498_v50  ;;  %s2883_s22 = sld [smem:[#allocation2 + $0x7b]] }
  0xfc   :  { %v1125_v9 = vmul.f32 %v1123_v57, %v2504_v4  ;;  %v1126_v21 = vmul.f32 %v1123_v57, %v2508_v12  ;;  %v1127_v29 = vmul.f32 %v1123_v57, %v2513_v6  ;;  %v1133_v33 = vmul.f32 %v1132_v63, %v2550_v20 }
  0xfd   :  { %v1862_v3 = vpop.eup %1861  ;;  %v1128_v31 = vadd.f32 %v1124_v36, %v1119_v26  ;;  %v1134_v37 = vmul.f32 %v1132_v63, %v2554_v0  ;;  %v1135_v40 = vmul.f32 %v1132_v63, %v2558_v1  ;;  %v1136_v45 = vmul.f32 %v1132_v63, %v2565_v49 }
  0xfe   :  { %v1864_v54 = vpop.eup %1863  ;;  %v1092_v14 = vmul.f32 0.5, %v1862_v3  ;;  %v1129_v17 = vadd.f32 %v1125_v9, %v1120_v60  ;;  %v1130_v39 = vadd.f32 %v1126_v21, %v1121_v15  ;;  %v1131_v18 = vadd.f32 %v1127_v29, %v1122_v8 }
  0xff   :  { %v1866_v2 = vpop.eup %1865  ;;  %v1093_v16 = vmul.f32 0.5, %v1864_v54  ;;  %v1137_v47 = vadd.f32 %v1133_v33, %v1128_v31  ;;  %v1141_v22 = vstv %s2668_s24  ;;  %v1162_v51 = vstv %s2664_s23  ;;  %s2893_s23 = sld [smem:[#allocation2 + $0x80]] }
 0x100   :  { %v1868_v13 = vpop.eup %1867  ;;  %v1094_v11 = vmul.f32 0.5, %v1866_v2  ;;  %v2691_v27 = vadd.f32 0.5, %v1092_v14  ;;  %v1138_v28 = vadd.f32 %v1134_v37, %v1129_v17  ;;  %v1139_v30 = vadd.f32 %v1135_v40, %v1130_v39  ;;  %s2899_s24 = sld [smem:[#allocation2 + $0x68]] }
 0x101   :  { %v1095_v52 = vmul.f32 0.5, %v1868_v13  ;;  %v2695_v32 = vadd.f32 0.5, %v1093_v16  ;;  %v1140_v55 = vadd.f32 %v1136_v45, %v1131_v18  ;;  %v1142_v23 = vadd.f32 %v1141_v22, %v1137_v47 }
 0x102   :  { %v2697_v41 = vadd.f32 0.5, %v1094_v11  ;;  %v1143_v26 = vadd.f32 %v1141_v22, %v1138_v28  ;;  %v1144_v57 = vadd.f32 %v1141_v22, %v1139_v30  ;;  %v1163_v63 = vmul.f32 %v1162_v51, %v2371_v56 }
 0x103   :  { %v2700_v60 = vadd.f32 0.5, %v1095_v52  ;;  %v1145_v15 = vadd.f32 %v1141_v22, %v1140_v55  ;;  %v1146_v8 = vmul.f32 0.5, %v1142_v23  ;;  %v1164_v36 = vmul.f32 %v1162_v51, %v2373_v7 }
 0x104   :  { %v1147_v9 = vmul.f32 0.5, %v1143_v26  ;;  %v1148_v21 = vmul.f32 0.5, %v1144_v57  ;;  %v1165_v29 = vmul.f32 %v1162_v51, %v2375_v46  ;;  %v1166_v33 = vmul.f32 %v1162_v51, %v2378_v53 }
 0x105   :  { %v1149_v3 = vmul.f32 0.5, %v1145_v15  ;;  %1869 = vtanh.f32 %v1146_v8  ;;  %v1167_v31 = vstv %s2678_s25  ;;  %v1176_v37 = vstv %s2684_s26  ;;  %s2907_s25 = sld [smem:[#allocation2 + $0x6d]] }
 0x106   :  { %1871 = vtanh.f32 %v1147_v9  ;;  %v1168_v56 = vmul.f32 %v1167_v31, %v2404_v59  ;;  %v1169_v40 = vmul.f32 %v1167_v31, %v2406_v43  ;;  %v1170_v7 = vmul.f32 %v1167_v31, %v2412_v34  ;;  %s2913_s26 = sld [smem:[#allocation2 + $0x72]] }
 0x107   :  { %1873 = vtanh.f32 %v1148_v21  ;;  %v1171_v45 = vmul.f32 %v1167_v31, %v2418_v61  ;;  %v1177_v54 = vmul.f32 %v1176_v37, %v2456_v44  ;;  %v1178_v46 = vmul.f32 %v1176_v37, %v2458_v25 }
 0x108   :  { %1875 = vtanh.f32 %v1149_v3  ;;  %v1172_v53 = vadd.f32 %v1168_v56, %v1163_v63  ;;  %v1173_v14 = vadd.f32 %v1169_v40, %v1164_v36  ;;  %v1174_v17 = vadd.f32 %v1170_v7, %v1165_v29 }
 0x109   :  { %v1175_v59 = vadd.f32 %v1171_v45, %v1166_v33  ;;  %v1179_v43 = vmul.f32 %v1176_v37, %v2460_v35  ;;  %v1180_v34 = vmul.f32 %v1176_v37, %v2465_v48  ;;  %v1185_v39 = vstv %s2693_s27  ;;  %s2919_s27 = sld [smem:[#allocation2 + $0x77]] }
 0x10a   :  { %v1181_v61 = vadd.f32 %v1177_v54, %v1172_v53  ;;  %v1182_v18 = vadd.f32 %v1178_v46, %v1173_v14  ;;  %v1186_v44 = vmul.f32 %v1185_v39, %v2498_v50  ;;  %v1187_v25 = vmul.f32 %v1185_v39, %v2504_v4 }
 0x10b   :  { %v1870_v2 = vpop.eup %1869  ;;  %v1183_v16 = vadd.f32 %v1179_v43, %v1174_v17  ;;  %v1184_v47 = vadd.f32 %v1180_v34, %v1175_v59  ;;  %v1188_v22 = vmul.f32 %v1185_v39, %v2508_v12  ;;  %v1189_v51 = vmul.f32 %v1185_v39, %v2513_v6 }
 0x10c   :  { %v1872_v35 = vpop.eup %1871  ;;  %v1154_v48 = vmul.f32 0.5, %v1870_v2  ;;  %v1190_v13 = vadd.f32 %v1186_v44, %v1181_v61  ;;  %v1191_v11 = vadd.f32 %v1187_v25, %v1182_v18  ;;  %v1194_v28 = vstv %s2703_s1  ;;  %s2930_s1 = sld [smem:[#allocation2 + $0x7c]] }
 0x10d   :  { %v1874_v30 = vpop.eup %1873  ;;  %v1155_v50 = vmul.f32 0.5, %v1872_v35  ;;  %v1192_v4 = vadd.f32 %v1188_v22, %v1183_v16  ;;  %v1193_v52 = vadd.f32 %v1189_v51, %v1184_v47  ;;  %v1195_v55 = vmul.f32 %v1194_v28, %v2550_v20 }
 0x10e   :  { %v1876_v23 = vpop.eup %1875  ;;  %v1156_v26 = vmul.f32 0.5, %v1874_v30  ;;  %v2732_v12 = vadd.f32 0.5, %v1154_v48  ;;  %v1196_v6 = vmul.f32 %v1194_v28, %v2554_v0  ;;  %v1197_v57 = vmul.f32 %v1194_v28, %v2558_v1 }
 0x10f   :  { %v1157_v63 = vmul.f32 0.5, %v1876_v23  ;;  %v2736_v15 = vadd.f32 0.5, %v1155_v50  ;;  %v1198_v8 = vmul.f32 %v1194_v28, %v2565_v49  ;;  %v1199_v36 = vadd.f32 %v1195_v55, %v1190_v13 }
 0x110   :  { %v2739_v9 = vadd.f32 0.5, %v1156_v26  ;;  %v1200_v21 = vadd.f32 %v1196_v6, %v1191_v11  ;;  %v1201_v29 = vadd.f32 %v1197_v57, %v1192_v4  ;;  %v1203_v20 = vstv %s2715_s28  ;;  %s2939_s28 = sld [smem:[#allocation2 + $0x81]] }
 0x111   :  { %v2744_v33 = vadd.f32 0.5, %v1157_v63  ;;  %v1202_v3 = vadd.f32 %v1198_v8, %v1193_v52  ;;  %v1204_v0 = vadd.f32 %v1203_v20, %v1199_v36  ;;  %v1224_v1 = vstv %s2717_s29  ;;  %s2944_s29 = sld [smem:[#allocation2 + $0x82]] }
 0x112   :  { %v1205_v31 = vadd.f32 %v1203_v20, %v1200_v21  ;;  %v1206_v37 = vadd.f32 %v1203_v20, %v1201_v29  ;;  %v1225_v49 = vmul.f32 %v1224_v1, %v2610_v38  ;;  %v1226_v56 = vmul.f32 %v1224_v1, %v2613_v62 }
 0x113   :  { %v1207_v40 = vadd.f32 %v1203_v20, %v1202_v3  ;;  %v1208_v7 = vmul.f32 0.5, %v1204_v0  ;;  %v1227_v45 = vmul.f32 %v1224_v1, %v2615_v10  ;;  %v1228_v54 = vmul.f32 %v1224_v1, %v2618_v19 }
 0x114   :  { %v1209_v46 = vmul.f32 0.5, %v1205_v31  ;;  %v1210_v53 = vmul.f32 0.5, %v1206_v37  ;;  %v1229_v14 = vstv %s2724_s30  ;;  %v1238_v17 = vstv %s2728_s3  ;;  %s2954_s30 = sld [smem:[#allocation2 + $0x83]] }
 0x115   :  { %v1211_v59 = vmul.f32 0.5, %v1207_v40  ;;  %1877 = vtanh.f32 %v1208_v7  ;;  %v1230_v43 = vmul.f32 %v1229_v14, %v2642_v42  ;;  %v1231_v34 = vmul.f32 %v1229_v14, %v2644_v5  ;;  %s2958_s3 = sld [smem:[#allocation2 + $0x84]] }
 0x116   :  { %1879 = vtanh.f32 %v1209_v46  ;;  %v1232_v39 = vmul.f32 %v1229_v14, %v2650_v24  ;;  %v1233_v61 = vmul.f32 %v1229_v14, %v2655_v58  ;;  %v1239_v18 = vmul.f32 %v1238_v17, %v2691_v27 }
 0x117   :  { %1881 = vtanh.f32 %v1210_v53  ;;  %v1234_v44 = vadd.f32 %v1230_v43, %v1225_v49  ;;  %v1235_v25 = vadd.f32 %v1231_v34, %v1226_v56  ;;  %v1240_v2 = vmul.f32 %v1238_v17, %v2695_v32 }
 0x118   :  { %1883 = vtanh.f32 %v1211_v59  ;;  %v1236_v16 = vadd.f32 %v1232_v39, %v1227_v45  ;;  %v1237_v47 = vadd.f32 %v1233_v61, %v1228_v54  ;;  %v1241_v22 = vmul.f32 %v1238_v17, %v2697_v41 }
 0x119   :  { %v1242_v51 = vmul.f32 %v1238_v17, %v2700_v60  ;;  %v1243_v35 = vadd.f32 %v1239_v18, %v1234_v44  ;;  %v1244_v48 = vadd.f32 %v1240_v2, %v1235_v25  ;;  %v1247_v13 = vstv %s2742_s4  ;;  %s2965_s4 = sld [smem:[#allocation2 + $0x85]] }
 0x11a   :  { %v1245_v11 = vadd.f32 %v1241_v22, %v1236_v16  ;;  %v1248_v28 = vmul.f32 %v1247_v13, %v2732_v12  ;;  %v1249_v30 = vmul.f32 %v1247_v13, %v2736_v15  ;;  %v1250_v50 = vmul.f32 %v1247_v13, %v2739_v9 }
 0x11b   :  { %v1878_v4 = vpop.eup %1877  ;;  %v1246_v52 = vadd.f32 %v1242_v51, %v1237_v47  ;;  %v1251_v55 = vmul.f32 %v1247_v13, %v2744_v33  ;;  %v1256_v23 = vstv %s2747_s5  ;;  %v1265_v26 = vstv %s2751_s6  ;;  %s2974_s5 = sld [smem:[#allocation2 + $0x86]] }
 0x11c   :  { %v1880_v6 = vpop.eup %1879  ;;  %v1216_v57 = vmul.f32 0.5, %v1878_v4  ;;  %v1252_v63 = vadd.f32 %v1248_v28, %v1243_v35  ;;  %v1253_v8 = vadd.f32 %v1249_v30, %v1244_v48  ;;  %v1254_v36 = vadd.f32 %v1250_v50, %v1245_v11  ;;  %s2979_s6 = sld [smem:[#allocation2 + $0x87]] }
 0x11d   :  { %v1882_v21 = vpop.eup %1881  ;;  %v1217_v29 = vmul.f32 0.5, %v1880_v6  ;;  %v1255_v20 = vadd.f32 %v1251_v55, %v1246_v52  ;;  %v1286_v3 = vstv %s2755_s7  ;;  %v1291_v0 = vstv %s2759_s8 }
 0x11e   :  { %v1884_v1 = vpop.eup %1883  ;;  %v1218_v31 = vmul.f32 0.5, %v1882_v21  ;;  %v2782_v37 = vadd.f32 0.5, %v1216_v57  ;;  %v1287_v49 = vmul.f32 %v1286_v3, %v2610_v38  ;;  %v1288_v56 = vmul.f32 %v1286_v3, %v2613_v62 }
 0x11f   :  { %v1219_v40 = vmul.f32 0.5, %v1884_v1  ;;  %v2786_v7 = vadd.f32 0.5, %v1217_v29  ;;  %v1289_v45 = vmul.f32 %v1286_v3, %v2615_v10  ;;  %v1290_v54 = vmul.f32 %v1286_v3, %v2618_v19 }
 0x120   :  { %v2790_v46 = vadd.f32 0.5, %v1218_v31  ;;  %v1257_v53 = vmul.f32 %v1256_v23, %v2782_v37  ;;  %v1292_v14 = vmul.f32 %v1291_v0, %v2642_v42  ;;  %v1293_v17 = vmul.f32 %v1291_v0, %v2644_v5 }
 0x121   :  { %v2795_v59 = vadd.f32 0.5, %v1219_v40  ;;  %v1258_v43 = vmul.f32 %v1256_v23, %v2786_v7  ;;  %v1294_v34 = vmul.f32 %v1291_v0, %v2650_v24  ;;  %v1295_v39 = vmul.f32 %v1291_v0, %v2655_v58 }
 0x122   :  { %v1259_v61 = vmul.f32 %v1256_v23, %v2790_v46  ;;  %v1261_v18 = vadd.f32 %v1257_v53, %v1252_v63  ;;  %v1296_v44 = vadd.f32 %v1292_v14, %v1287_v49  ;;  %v1297_v25 = vadd.f32 %v1293_v17, %v1288_v56 }
 0x123   :  { %v1260_v2 = vmul.f32 %v1256_v23, %v2795_v59  ;;  %v1262_v16 = vadd.f32 %v1258_v43, %v1253_v8  ;;  %v1298_v47 = vadd.f32 %v1294_v34, %v1289_v45  ;;  %v1299_v22 = vadd.f32 %v1295_v39, %v1290_v54 }
 0x124   :  { %v1263_v51 = vadd.f32 %v1259_v61, %v1254_v36  ;;  %v1266_v35 = vadd.f32 %v1265_v26, %v1261_v18  ;;  %v1300_v48 = vstv %s2773_s9  ;;  %v1309_v13 = vstv %s2778_s10 }
 0x125   :  { %v1264_v11 = vadd.f32 %v1260_v2, %v1255_v20  ;;  %v1267_v28 = vadd.f32 %v1265_v26, %v1262_v16  ;;  %v1301_v30 = vmul.f32 %v1300_v48, %v2691_v27  ;;  %v1302_v50 = vmul.f32 %v1300_v48, %v2695_v32 }
 0x126   :  { %v1268_v4 = vadd.f32 %v1265_v26, %v1263_v51  ;;  %v1270_v52 = vmul.f32 0.5, %v1266_v35  ;;  %v1303_v55 = vmul.f32 %v1300_v48, %v2697_v41  ;;  %v1304_v23 = vmul.f32 %v1300_v48, %v2700_v60 }
 0x127   :  { %v1269_v6 = vadd.f32 %v1265_v26, %v1264_v11  ;;  %v1271_v57 = vmul.f32 0.5, %v1267_v28  ;;  %v1305_v63 = vadd.f32 %v1301_v30, %v1296_v44  ;;  %v1306_v8 = vadd.f32 %v1302_v50, %v1297_v25 }
 0x128   :  { %v1272_v36 = vmul.f32 0.5, %v1268_v4  ;;  %1885 = vtanh.f32 %v1270_v52  ;;  %v1307_v21 = vadd.f32 %v1303_v55, %v1298_v47  ;;  %v1308_v29 = vadd.f32 %v1304_v23, %v1299_v22 }
 0x129   :  { %v1273_v20 = vmul.f32 0.5, %v1269_v6  ;;  %1887 = vtanh.f32 %v1271_v57  ;;  %v1310_v3 = vmul.f32 %v1309_v13, %v2732_v12  ;;  %v1311_v0 = vmul.f32 %v1309_v13, %v2736_v15 }
 0x12a   :  { %1889 = vtanh.f32 %v1272_v36  ;;  %v1312_v1 = vmul.f32 %v1309_v13, %v2739_v9  ;;  %v1313_v26 = vmul.f32 %v1309_v13, %v2744_v33  ;;  %v1318_v31 = vstv %s2800_s11 }
 0x12b   :  { %1891 = vtanh.f32 %v1273_v20  ;;  %v1314_v49 = vadd.f32 %v1310_v3, %v1305_v63  ;;  %v1315_v56 = vadd.f32 %v1311_v0, %v1306_v8  ;;  %v1319_v40 = vmul.f32 %v1318_v31, %v2782_v37 }
 0x12c   :  { %v1316_v45 = vadd.f32 %v1312_v1, %v1307_v21  ;;  %v1317_v54 = vadd.f32 %v1313_v26, %v1308_v29  ;;  %v1320_v53 = vmul.f32 %v1318_v31, %v2786_v7  ;;  %v1321_v14 = vmul.f32 %v1318_v31, %v2790_v46 }
 0x12d   :  { %v1322_v17 = vmul.f32 %v1318_v31, %v2795_v59  ;;  %v1323_v43 = vadd.f32 %v1319_v40, %v1314_v49  ;;  %v1327_v34 = vstv %s2808_s13  ;;  %v1348_v39 = vstv %s2804_s12 }
 0x12e   :  { %v1886_v61 = vpop.eup %1885  ;;  %v1324_v18 = vadd.f32 %v1320_v53, %v1315_v56  ;;  %v1325_v44 = vadd.f32 %v1321_v14, %v1316_v45  ;;  %v1349_v48 = vmul.f32 %v1348_v39, %v2610_v38  ;;  %v1350_v30 = vmul.f32 %v1348_v39, %v2613_v62 }
 0x12f   :  { %v1888_v25 = vpop.eup %1887  ;;  %v1278_v2 = vmul.f32 0.5, %v1886_v61  ;;  %v1326_v16 = vadd.f32 %v1322_v17, %v1317_v54  ;;  %v1328_v47 = vadd.f32 %v1327_v34, %v1323_v43  ;;  %v1351_v50 = vmul.f32 %v1348_v39, %v2615_v10 }
 0x130   :  { %v1890_v22 = vpop.eup %1889  ;;  %v1329_v51 = vadd.f32 %v1327_v34, %v1324_v18  ;;  %v1330_v35 = vadd.f32 %v1327_v34, %v1325_v44  ;;  %v1279_v11 = vmul.f32 0.5, %v1888_v25  ;;  %v1352_v23 = vmul.f32 %v1348_v39, %v2618_v19 }
 0x131   :  { %v1892_v13 = vpop.eup %1891  ;;  %v1332_v28 = vmul.f32 0.5, %v1328_v47  ;;  %v1331_v4 = vadd.f32 %v1327_v34, %v1326_v16  ;;  %v1280_v6 = vmul.f32 0.5, %v1890_v22  ;;  %v2837_v57 = vadd.f32 0.5, %v1278_v2 }
 0x132   :  { %v1333_v52 = vmul.f32 0.5, %v1329_v51  ;;  %v1334_v55 = vmul.f32 0.5, %v1330_v35  ;;  %v1353_v63 = vstv %s2819_s14  ;;  %v1281_v8 = vmul.f32 0.5, %v1892_v13 }
 0x133   :  { %1893 = vtanh.f32 %v1332_v28  ;;  %v1354_v36 = vmul.f32 %v1353_v63, %v2642_v42  ;;  %v1355_v21 = vmul.f32 %v1353_v63, %v2644_v5  ;;  %v1356_v29 = vmul.f32 %v1353_v63, %v2650_v24 }
 0x134   :  { %1895 = vtanh.f32 %v1333_v52  ;;  %v1357_v20 = vmul.f32 %v1353_v63, %v2655_v58  ;;  %v1362_v3 = vstv %s2824_s15  ;;  %v1335_v0 = vmul.f32 0.5, %v1331_v4 }
 0x135   :  { %1897 = vtanh.f32 %v1334_v55  ;;  %v1358_v1 = vadd.f32 %v1354_v36, %v1349_v48  ;;  %v1359_v26 = vadd.f32 %v1355_v21, %v1350_v30  ;;  %v1363_v31 = vmul.f32 %v1362_v3, %v2691_v27 }
 0x136   :  { %v1360_v49 = vadd.f32 %v1356_v29, %v1351_v50  ;;  %v1361_v56 = vadd.f32 %v1357_v20, %v1352_v23  ;;  %v1364_v40 = vmul.f32 %v1362_v3, %v2695_v32  ;;  %v1365_v45 = vmul.f32 %v1362_v3, %v2697_v41 }
 0x137   :  { %v1366_v54 = vmul.f32 %v1362_v3, %v2700_v60  ;;  %v1367_v53 = vadd.f32 %v1363_v31, %v1358_v1  ;;  %v1371_v14 = vstv %s2829_s16  ;;  %v1380_v17 = vstv %s2831_s17 }
 0x138   :  { %v1368_v34 = vadd.f32 %v1364_v40, %v1359_v26  ;;  %v1369_v39 = vadd.f32 %v1365_v45, %v1360_v49  ;;  %v1372_v61 = vmul.f32 %v1371_v14, %v2732_v12  ;;  %v1373_v18 = vmul.f32 %v1371_v14, %v2736_v15 }
 0x139   :  { %v1894_v43 = vpop.eup %1893  ;;  %v2861_v25 = vadd.f32 0.5, %v1279_v11  ;;  %v1370_v2 = vadd.f32 %v1366_v54, %v1361_v56  ;;  %v1374_v16 = vmul.f32 %v1371_v14, %v2739_v9  ;;  %v1375_v47 = vmul.f32 %v1371_v14, %v2744_v33 }
 0x13a   :  { %v1896_v44 = vpop.eup %1895  ;;  %v1340_v51 = vmul.f32 0.5, %v1894_v43  ;;  %v1376_v35 = vadd.f32 %v1372_v61, %v1367_v53  ;;  %v1377_v48 = vadd.f32 %v1373_v18, %v1368_v34  ;;  %v1381_v13 = vmul.f32 %v1380_v17, %v2782_v37 }
 0x13b   :  { %v1898_v22 = vpop.eup %1897  ;;  %v2866_v28 = vadd.f32 0.5, %v1280_v6  ;;  %v2868_v30 = vadd.f32 0.5, %v1281_v8  ;;  %v1378_v50 = vadd.f32 %v1374_v16, %v1369_v39  ;;  %v1379_v11 = vadd.f32 %v1375_v47, %v1370_v2 }
 0x13c   :  { %1899 = vtanh.f32 %v1335_v0  ;;  %v2870_v4 = vmul.f32 0.5, %v1896_v44  ;;  %v1382_v52 = vmul.f32 %v1380_v17, %v2786_v7  ;;  %v1383_v55 = vmul.f32 %v1380_v17, %v2790_v46 }
 0x13d   :  { %v2874_v23 = vmul.f32 0.5, %v1898_v22  ;;  %v1384_v63 = vmul.f32 %v1380_v17, %v2795_v59  ;;  %v1385_v36 = vadd.f32 %v1381_v13, %v1376_v35  ;;  %v1389_v21 = vstv %s2845_s18 }
 0x13e   :  { %v2880_v6 = vadd.f32 0.5, %v1340_v51  ;;  %v1386_v8 = vadd.f32 %v1382_v52, %v1377_v48  ;;  %v1387_v29 = vadd.f32 %v1383_v55, %v1378_v50  ;;  %v1410_v20 = vstv %s2848_s19 }
 0x13f   :  { %v1388_v3 = vadd.f32 %v1384_v63, %v1379_v11  ;;  %v1390_v0 = vadd.f32 %v1389_v21, %v1385_v36  ;;  %v1411_v1 = vmul.f32 %v1410_v20, %v2610_v38  ;;  %v1412_v26 = vmul.f32 %v1410_v20, %v2613_v62 }
 0x140   :  { %v1391_v31 = vadd.f32 %v1389_v21, %v1386_v8  ;;  %v1392_v49 = vadd.f32 %v1389_v21, %v1387_v29  ;;  %v1413_v56 = vmul.f32 %v1410_v20, %v2615_v10  ;;  %v1414_v40 = vmul.f32 %v1410_v20, %v2618_v19 }
 0x141   :  { %v1393_v45 = vadd.f32 %v1389_v21, %v1388_v3  ;;  %v1394_v54 = vmul.f32 0.5, %v1390_v0  ;;  %v1415_v53 = vstv %s2855_s20  ;;  %v1424_v14 = vstv %s2859_s21 }
 0x142   :  { %v1900_v17 = vpop.eup %1899  ;;  %v1395_v43 = vmul.f32 0.5, %v1391_v31  ;;  %v1396_v34 = vmul.f32 0.5, %v1392_v49  ;;  %v1416_v39 = vmul.f32 %v1415_v53, %v2642_v42  ;;  %v1417_v61 = vmul.f32 %v1415_v53, %v2644_v5 }
 0x143   :  { %v1397_v18 = vmul.f32 0.5, %v1393_v45  ;;  %1901 = vtanh.f32 %v1394_v54  ;;  %v1418_v44 = vmul.f32 %v1415_v53, %v2650_v24  ;;  %v1419_v2 = vmul.f32 %v1415_v53, %v2655_v58 }
 0x144   :  { %1903 = vtanh.f32 %v1395_v43  ;;  %v1420_v16 = vadd.f32 %v1416_v39, %v1411_v1  ;;  %v1421_v47 = vadd.f32 %v1417_v61, %v1412_v26  ;;  %v1425_v22 = vmul.f32 %v1424_v14, %v2691_v27 }
 0x145   :  { %1905 = vtanh.f32 %v1396_v34  ;;  %v1422_v51 = vadd.f32 %v1418_v44, %v1413_v56  ;;  %v1423_v35 = vadd.f32 %v1419_v2, %v1414_v40  ;;  %v1426_v48 = vmul.f32 %v1424_v14, %v2695_v32 }
 0x146   :  { %1907 = vtanh.f32 %v1397_v18  ;;  %v1427_v13 = vmul.f32 %v1424_v14, %v2697_v41  ;;  %v1428_v50 = vmul.f32 %v1424_v14, %v2700_v60  ;;  %v1429_v11 = vadd.f32 %v1425_v22, %v1420_v16 }
 0x147   :  { %v1343_v52 = vmul.f32 0.5, %v1900_v17  ;;  %v1430_v55 = vadd.f32 %v1426_v48, %v1421_v47  ;;  %v1433_v63 = vstv %s2878_s0  ;;  %v1442_v36 = vstv %s2883_s22 }
 0x148   :  { %v1431_v21 = vadd.f32 %v1427_v13, %v1422_v51  ;;  %v1432_v8 = vadd.f32 %v1428_v50, %v1423_v35  ;;  %v1434_v29 = vmul.f32 %v1433_v63, %v2732_v12  ;;  %v1435_v20 = vmul.f32 %v1433_v63, %v2736_v15 }
 0x149   :  { %v1902_v3 = vpop.eup %1901  ;;  %v1436_v0 = vmul.f32 %v1433_v63, %v2739_v9  ;;  %v1437_v1 = vmul.f32 %v1433_v63, %v2744_v33  ;;  %v1443_v26 = vmul.f32 %v1442_v36, %v2782_v37  ;;  %v1444_v31 = vmul.f32 %v1442_v36, %v2786_v7 }
 0x14a   :  { %v1904_v49 = vpop.eup %1903  ;;  %v2916_v56 = vadd.f32 0.5, %v2870_v4  ;;  %v1438_v40 = vadd.f32 %v1434_v29, %v1429_v11  ;;  %v1439_v45 = vadd.f32 %v1435_v20, %v1430_v55  ;;  %v1445_v54 = vmul.f32 %v1442_v36, %v2790_v46 }
 0x14b   :  { %v1906_v53 = vpop.eup %1905  ;;  %v1440_v14 = vadd.f32 %v1436_v0, %v1431_v21  ;;  %v1441_v17 = vadd.f32 %v1437_v1, %v1432_v8  ;;  %v1446_v43 = vmul.f32 %v1442_v36, %v2795_v59  ;;  %v1451_v34 = vstv %s2893_s23 }
 0x14c   :  { %v1908_v39 = vpop.eup %1907  ;;  %v2924_v61 = vadd.f32 0.5, %v2874_v23  ;;  %v2926_v18 = vadd.f32 0.5, %v1343_v52  ;;  %v1447_v4 = vadd.f32 %v1443_v26, %v1438_v40  ;;  %v1448_v44 = vadd.f32 %v1444_v31, %v1439_v45 }
 0x14d   :  { %v1402_v2 = vmul.f32 0.5, %v1902_v3  ;;  %v1403_v16 = vmul.f32 0.5, %v1904_v49  ;;  %v1449_v47 = vadd.f32 %v1445_v54, %v1440_v14  ;;  %v1450_v22 = vadd.f32 %v1446_v43, %v1441_v17 }
 0x14e   :  { %v1404_v51 = vmul.f32 0.5, %v1906_v53  ;;  %v1452_v35 = vadd.f32 %v1451_v34, %v1447_v4  ;;  %v1453_v48 = vadd.f32 %v1451_v34, %v1448_v44  ;;  %v1472_v13 = vstv %s2899_s24 }
 0x14f   :  { %v1405_v50 = vmul.f32 0.5, %v1908_v39  ;;  %v1454_v11 = vadd.f32 %v1451_v34, %v1449_v47  ;;  %v1455_v55 = vadd.f32 %v1451_v34, %v1450_v22  ;;  %v1473_v63 = vmul.f32 %v1472_v13, %v2610_v38 }
 0x150   :  { %v1456_v23 = vmul.f32 0.5, %v1452_v35  ;;  %v1457_v52 = vmul.f32 0.5, %v1453_v48  ;;  %v1474_v36 = vmul.f32 %v1472_v13, %v2613_v62  ;;  %v1475_v21 = vmul.f32 %v1472_v13, %v2615_v10 }
 0x151   :  { %v1458_v8 = vmul.f32 0.5, %v1454_v11  ;;  %v1459_v29 = vmul.f32 0.5, %v1455_v55  ;;  %v1476_v20 = vmul.f32 %v1472_v13, %v2618_v19  ;;  %v1477_v3 = vstv %s2907_s25 }
 0x152   :  { %1909 = vtanh.f32 %v1456_v23  ;;  %v1478_v0 = vmul.f32 %v1477_v3, %v2642_v42  ;;  %v1479_v38 = vmul.f32 %v1477_v3, %v2644_v5  ;;  %v1480_v1 = vmul.f32 %v1477_v3, %v2650_v24 }
 0x153   :  { %1911 = vtanh.f32 %v1457_v52  ;;  %v1481_v26 = vmul.f32 %v1477_v3, %v2655_v58  ;;  %v1486_v62 = vstv %s2913_s26  ;;  %v1495_v31 = vstv %s2919_s27 }
 0x154   :  { %1913 = vtanh.f32 %v1458_v8  ;;  %v1482_v10 = vadd.f32 %v1478_v0, %v1473_v63  ;;  %v1483_v49 = vadd.f32 %v1479_v38, %v1474_v36  ;;  %v1484_v40 = vadd.f32 %v1480_v1, %v1475_v21 }
 0x155   :  { %1915 = vtanh.f32 %v1459_v29  ;;  %v1485_v19 = vadd.f32 %v1481_v26, %v1476_v20  ;;  %v1487_v42 = vmul.f32 %v1486_v62, %v2691_v27  ;;  %v1488_v5 = vmul.f32 %v1486_v62, %v2695_v32 }
 0x156   :  { %v1489_v24 = vmul.f32 %v1486_v62, %v2697_v41  ;;  %v1490_v45 = vmul.f32 %v1486_v62, %v2700_v60  ;;  %v1496_v58 = vmul.f32 %v1495_v31, %v2732_v12  ;;  %v1497_v54 = vmul.f32 %v1495_v31, %v2736_v15 }
 0x157   :  { %v1491_v53 = vadd.f32 %v1487_v42, %v1482_v10  ;;  %v1492_v14 = vadd.f32 %v1488_v5, %v1483_v49  ;;  %v1498_v17 = vmul.f32 %v1495_v31, %v2739_v9  ;;  %v1499_v43 = vmul.f32 %v1495_v31, %v2744_v33 }
 0x158   :  { %v1910_v34 = vpop.eup %1909  ;;  %v1406_v27 = vadd.f32 0.5, %v1402_v2  ;;  %v1493_v39 = vadd.f32 %v1489_v24, %v1484_v40  ;;  %v1494_v32 = vadd.f32 %v1490_v45, %v1485_v19  ;;  %v1504_v4 = vstv %s2930_s1 }
 0x159   :  { %v1912_v41 = vpop.eup %1911  ;;  %v1407_v60 = vadd.f32 0.5, %v1403_v16  ;;  %v1500_v44 = vadd.f32 %v1496_v58, %v1491_v53  ;;  %v1501_v12 = vadd.f32 %v1497_v54, %v1492_v14  ;;  %v1505_v15 = vmul.f32 %v1504_v4, %v2782_v37 }
 0x15a   :  { %v1914_v47 = vpop.eup %1913  ;;  %v1408_v9 = vadd.f32 0.5, %v1404_v51  ;;  %v1502_v33 = vadd.f32 %v1498_v17, %v1493_v39  ;;  %v1503_v22 = vadd.f32 %v1499_v43, %v1494_v32  ;;  %v1506_v35 = vmul.f32 %v1504_v4, %v2786_v7 }
 0x15b   :  { %v1916_v2 = vpop.eup %1915  ;;  %v1409_v48 = vadd.f32 0.5, %v1405_v50  ;;  %v1507_v13 = vmul.f32 %v1504_v4, %v2790_v46  ;;  %v1508_v11 = vmul.f32 %v1504_v4, %v2795_v59  ;;  %v1513_v16 = vstv %s2939_s28 }
 0x15c   :  { %v1464_v55 = vmul.f32 0.5, %v1910_v34  ;;  %v1465_v63 = vmul.f32 0.5, %v1912_v41  ;;  %v1509_v23 = vadd.f32 %v1505_v15, %v1500_v44  ;;  %v1510_v37 = vadd.f32 %v1506_v35, %v1501_v12 }
 0x15d   :  { %v1466_v52 = vmul.f32 0.5, %v1914_v47  ;;  %v1511_v36 = vadd.f32 %v1507_v13, %v1502_v33  ;;  %v1512_v51 = vadd.f32 %v1508_v11, %v1503_v22  ;;  %v1534_v21 = vstv %s2944_s29 }
 0x15e   :  { %v1467_v8 = vmul.f32 0.5, %v1916_v2  ;;  %v1514_v7 = vadd.f32 %v1513_v16, %v1509_v23  ;;  %v1515_v29 = vadd.f32 %v1513_v16, %v1510_v37  ;;  %v1535_v50 = vmul.f32 %v1534_v21, %v2837_v57 }
 0x15f   :  { %v1516_v46 = vadd.f32 %v1513_v16, %v1511_v36  ;;  %v1517_v59 = vadd.f32 %v1513_v16, %v1512_v51  ;;  %v1536_v20 = vmul.f32 %v1534_v21, %v2861_v25  ;;  %v1537_v3 = vmul.f32 %v1534_v21, %v2866_v28 }
 0x160   :  { %v1518_v0 = vmul.f32 0.5, %v1514_v7  ;;  %v1519_v38 = vmul.f32 0.5, %v1515_v29  ;;  %v1538_v1 = vmul.f32 %v1534_v21, %v2868_v30  ;;  %v1539_v26 = vstv %s2954_s30 }
 0x161   :  { %v1520_v62 = vmul.f32 0.5, %v1516_v46  ;;  %v1521_v31 = vmul.f32 0.5, %v1517_v59  ;;  %v1540_v10 = vmul.f32 %v1539_v26, %v2880_v6  ;;  %v1541_v49 = vmul.f32 %v1539_v26, %v2916_v56 }
 0x162   :  { %1917 = vtanh.f32 %v1518_v0  ;;  %v1542_v57 = vmul.f32 %v1539_v26, %v2924_v61  ;;  %v1543_v25 = vmul.f32 %v1539_v26, %v2926_v18  ;;  %v1548_v40 = vstv %s2958_s3 }
 0x163   :  { %v1468_v28 = vadd.f32 0.5, %v1464_v55  ;;  %1919 = vtanh.f32 %v1519_v38  ;;  %v1544_v19 = vadd.f32 %v1540_v10, %v1535_v50  ;;  %v1549_v30 = vmul.f32 %v1548_v40, %v1406_v27 }
 0x164   :  { %v1469_v42 = vadd.f32 0.5, %v1465_v63  ;;  %1921 = vtanh.f32 %v1520_v62  ;;  %v1545_v5 = vadd.f32 %v1541_v49, %v1536_v20  ;;  %v1550_v24 = vmul.f32 %v1548_v40, %v1407_v60 }
 0x165   :  { %v1470_v6 = vadd.f32 0.5, %v1466_v52  ;;  %1923 = vtanh.f32 %v1521_v31  ;;  %v1546_v56 = vadd.f32 %v1542_v57, %v1537_v3  ;;  %v1551_v45 = vmul.f32 %v1548_v40, %v1408_v9 }
 0x166   :  { %v1471_v58 = vadd.f32 0.5, %v1467_v8  ;;  %v1547_v61 = vadd.f32 %v1543_v25, %v1538_v1  ;;  %v1552_v18 = vmul.f32 %v1548_v40, %v1409_v48  ;;  %v1557_v54 = vstv %s2965_s4 }
 0x167   :  { %v1553_v53 = vadd.f32 %v1549_v30, %v1544_v19  ;;  %v1558_v14 = vmul.f32 %v1557_v54, %v1468_v28  ;;  %v1554_v43 = vadd.f32 %v1550_v24, %v1545_v5  ;;  %v1559_v34 = vmul.f32 %v1557_v54, %v1469_v42 }
 0x168   :  { %v1918_v17 = vpop.eup %1917  ;;  %v1555_v32 = vadd.f32 %v1551_v45, %v1546_v56  ;;  %v1560_v4 = vmul.f32 %v1557_v54, %v1470_v6  ;;  %v1556_v44 = vadd.f32 %v1552_v18, %v1547_v61  ;;  %v1561_v12 = vmul.f32 %v1557_v54, %v1471_v58 }
 0x169   :  { %v1920_v27 = vpop.eup %1919  ;;  %v1526_v39 = vmul.f32 0.5, %v1918_v17  ;;  %v1566_v15 = vstv %s2974_s5  ;;  %v1562_v22 = vadd.f32 %v1558_v14, %v1553_v53  ;;  %v1563_v48 = vadd.f32 %v1559_v34, %v1554_v43 }
 0x16a   :  { %v1922_v41 = vpop.eup %1921  ;;  %v1527_v60 = vmul.f32 0.5, %v1920_v27  ;;  %v1564_v11 = vadd.f32 %v1560_v4, %v1555_v32  ;;  %v1565_v63 = vadd.f32 %v1561_v12, %v1556_v44  ;;  %v1575_v37 = vstv %s2979_s6 }
 0x16b   :  { %v1924_v47 = vpop.eup %1923  ;;  %v1528_v9 = vmul.f32 0.5, %v1922_v41  ;;  %v1530_v33 = vadd.f32 0.5, %v1526_v39 }
 0x16c   :  { %v1529_v35 = vmul.f32 0.5, %v1924_v47  ;;  %v1531_v2 = vadd.f32 0.5, %v1527_v60 }
 0x16d   :  { %v1532_v13 = vadd.f32 0.5, %v1528_v9  ;;  %v1567_v16 = vmul.f32 %v1566_v15, %v1530_v33 }
 0x16e   :  { %v1533_v55 = vadd.f32 0.5, %v1529_v35  ;;  %v1568_v23 = vmul.f32 %v1566_v15, %v1531_v2 }
 0x16f   :  { %v1569_v52 = vmul.f32 %v1566_v15, %v1532_v13  ;;  %v1571_v36 = vadd.f32 %v1567_v16, %v1562_v22 }
 0x170   :  { %v1570_v51 = vmul.f32 %v1566_v15, %v1533_v55  ;;  %v1572_v21 = vadd.f32 %v1568_v23, %v1563_v48 }
 0x171   :  { %v1573_v8 = vadd.f32 %v1569_v52, %v1564_v11  ;;  %v1576_v7 = vadd.f32 %v1575_v37, %v1571_v36 }
 0x172   :  { %v1574_v29 = vadd.f32 %v1570_v51, %v1565_v63  ;;  %v1577_v50 = vadd.f32 %v1575_v37, %v1572_v21 }
 0x173   :  { %v1578_v46 = vadd.f32 %v1575_v37, %v1573_v8  ;;  %1580 = vst [vmem:[%s2998_s2] sm:$0xff] %v1576_v7 }
 0x174   :  { %v1579_v59 = vadd.f32 %v1575_v37, %v1574_v29  ;;  %1581 = vst [vmem:[%s2998_s2 + $0x8] sm:$0xff] %v1577_v50 }
 0x175   :  { %1582 = vst [vmem:[%s2998_s2 + $0x10] sm:$0xff] %v1578_v46 }
 0x176   :  { %1583 = vst [vmem:[%s2998_s2 + $0x18] sm:$0xff] %v1579_v59 }
 0x177   :  { %1588 = vsyncpa [#allocation3], 1 }

</bundles_post_ra>
